<compile_context>
chip_gen: v6e
topology: v6e:2x2x1
jax: 0.10.0
libtpu: 0.0.40
codegen_flags: <defaults>
</compile_context>

<pallas_src>
import math
from functools import partial

import jax
import jax.numpy as jnp
from jax.experimental import pallas as pl
from jax.experimental.pallas import tpu as pltpu

EPS = 1e-5  # torch LayerNorm default
MATMUL_INPUT_DTYPE = jnp.bfloat16  # MXU-native; accumulation stays float32
_INV_SQRT2 = 1.0 / math.sqrt(2.0)


def _vmem_budget():
    """(TN_target, TK_target, vmem_limit): generous on 128 MiB parts (v5e/v6e),
    conservative on v7x (64 MiB physical VMEM)."""
    try:
        vmem = int(pltpu.get_tpu_info().vmem_capacity_bytes)
    except Exception:
        vmem = 64 * 1024 * 1024
    if vmem >= 100 * 1024 * 1024:      # v5e / v6e
        return 1024, 1024, 64 * 1024 * 1024
    return 512, 512, 32 * 1024 * 1024  # v7x (and unknown): stay conservative


_TN_TARGET, _TK_TARGET, _VMEM_LIMIT = _vmem_budget()
_TM_TARGET = 256
_ATTN_TQ_TARGET = 256
_ATTN_TKV_TARGET = 256


def _pick_tile(dim, target, align):
    """Largest tile <= target that divides `dim` and is a multiple of `align`;
    falls back to the full dim (full-extent blocks are always legal)."""
    if dim <= target:
        return dim
    t = (target // align) * align
    while t >= align:
        if dim % t == 0:
            return t
        t -= align
    return dim


# ----------------------------- fused matmul kernel ---------------------------

def _fused_matmul_kernel(*refs, has_ln, has_bias, has_res, act, eps, multi_k,
                         cache_ln):
    it = iter(refs)
    x_ref = next(it)
    w_ref = next(it)
    lnw_ref = next(it) if has_ln else None
    lnb_ref = next(it) if has_ln else None
    b_ref = next(it) if has_bias else None
    res_ref = next(it) if has_res else None
    o_ref = next(it)
    xln_ref = next(it) if cache_ln else None

    def _layernorm():
        x = x_ref[...].astype(jnp.float32)
        mean = jnp.mean(x, axis=-1, keepdims=True)
        var = jnp.mean(jnp.square(x - mean), axis=-1, keepdims=True)
        x = (x - mean) * jax.lax.rsqrt(var + eps)
        x = x * lnw_ref[...] + lnb_ref[...]
        return x.astype(MATMUL_INPUT_DTYPE)

    if has_ln:
        if cache_ln:
            # LN of this (TM, K) tile depends only on the M index: compute it
            # once at the first N step and reuse the VMEM cache afterwards.
            @pl.when(pl.program_id(1) == 0)
            def _fill_cache():
                xln_ref[...] = _layernorm()

            x_mm = xln_ref[...]
        else:
            x_mm = _layernorm()
    else:
        x_mm = x_ref[...].astype(MATMUL_INPUT_DTYPE)

    part = jnp.dot(x_mm, w_ref[...].astype(MATMUL_INPUT_DTYPE),
                   preferred_element_type=jnp.float32)

    def _finalize(acc):
        if has_bias:
            acc = acc + b_ref[...].astype(jnp.float32)
        if act == "gelu":  # exact (erf) GELU, matching torch.nn.GELU()
            acc = 0.5 * acc * (1.0 + jax.lax.erf(acc * _INV_SQRT2))
        if has_res:
            acc = acc + res_ref[...].astype(jnp.float32)
        o_ref[...] = acc.astype(o_ref.dtype)

    if multi_k:
        k = pl.program_id(2)

        @pl.when(k == 0)
        def _first():
            o_ref[...] = part           # f32 output block doubles as accumulator

        @pl.when(k > 0)
        def _acc():
            o_ref[...] += part

        @pl.when(k == pl.num_programs(2) - 1)
        def _fin():
            _finalize(o_ref[...])
    else:
        _finalize(part)


def pallas_linear(x, w, b=None, *, ln_w=None, ln_b=None, residual=None, act=None):
    """y = [LN(x)] @ w [+ b] [-> GELU] [+ residual], tiled over (M, N, K)."""
    M, K = x.shape
    N = w.shape[1]
    has_ln = ln_w is not None
    has_bias = b is not None
    has_res = residual is not None

    TM = _pick_tile(M, _TM_TARGET, 8)
    TN = _pick_tile(N, _TN_TARGET, 128)
    TK = K if has_ln else _pick_tile(K, _TK_TARGET, 128)  # LN needs the full row
    gm, gn, gk = M // TM, N // TN, K // TK
    multi_k = gk > 1
    cache_ln = has_ln and gn > 1
    if multi_k:
        assert x.dtype == jnp.float32, "multi-K accumulation needs an f32 output"

    in_specs = [
        pl.BlockSpec((TM, TK), lambda i, j, k: (i, k)),
        pl.BlockSpec((TK, TN), lambda i, j, k: (k, j)),
    ]
    inputs = [x, w]
    if has_ln:
        in_specs += [pl.BlockSpec((1, TK), lambda i, j, k: (0, k)),
                     pl.BlockSpec((1, TK), lambda i, j, k: (0, k))]
        inputs += [ln_w.reshape(1, K).astype(jnp.float32),
                   ln_b.reshape(1, K).astype(jnp.float32)]
    if has_bias:
        in_specs.append(pl.BlockSpec((1, TN), lambda i, j, k: (0, j)))
        inputs.append(b.reshape(1, N).astype(jnp.float32))
    if has_res:
        in_specs.append(pl.BlockSpec((TM, TN), lambda i, j, k: (i, j)))
        inputs.append(residual)

    kernel = partial(_fused_matmul_kernel, has_ln=has_ln, has_bias=has_bias,
                     has_res=has_res, act=act, eps=EPS, multi_k=multi_k,
                     cache_ln=cache_ln)

    bytes_accessed = (M * K * x.dtype.itemsize + K * N * w.dtype.itemsize
                      + M * N * x.dtype.itemsize
                      + (M * N * residual.dtype.itemsize if has_res else 0))
    cost = pl.CostEstimate(flops=2 * M * N * K,
                           transcendentals=(M * N if act == "gelu" else 0),
                           bytes_accessed=bytes_accessed)

    # The LN cache is revisited across the N axis -> that axis must stay on one
    # core ("arbitrary"); otherwise M and N shard across TensorCores.
    semantics = (("parallel", "arbitrary", "arbitrary") if cache_ln
                 else ("parallel", "parallel", "arbitrary"))

    return pl.pallas_call(
        kernel,
        out_shape=jax.ShapeDtypeStruct((M, N), x.dtype),
        grid=(gm, gn, gk),
        in_specs=in_specs,
        out_specs=pl.BlockSpec((TM, TN), lambda i, j, k: (i, j)),
        scratch_shapes=([pltpu.VMEM((TM, K), MATMUL_INPUT_DTYPE)]
                        if cache_ln else []),
        compiler_params=pltpu.CompilerParams(
            dimension_semantics=semantics,
            vmem_limit_bytes=_VMEM_LIMIT,
        ),
        cost_estimate=cost,
    )(*inputs)


# ------------------------- flash attention kernel ----------------------------

def _attention_kernel(*refs, n_head, dh, q_off, k_off, v_off, scale, has_mask):
    it = iter(refs)
    q_ref = next(it)           # (1, TQ, Wq)   packed activation (q at q_off)
    kv_ref = next(it)          # (1, TKV, Wkv) packed activation (k/v at offsets)
    m_ref = next(it) if has_mask else None
    o_ref = next(it)           # (1, TQ, D) merged-head, lane-dense
    mscr = next(it)            # (H, TQ, 1) running max
    lscr = next(it)            # (H, TQ, 1) running denom
    accscr = next(it)          # (H, TQ, Dh) running weighted sum

    j = pl.program_id(2)

    @pl.when(j == 0)
    def _init():
        mscr[...] = jnp.full(mscr.shape, -jnp.inf, mscr.dtype)
        lscr[...] = jnp.zeros(lscr.shape, lscr.dtype)
        accscr[...] = jnp.zeros(accscr.shape, accscr.dtype)

    mask = m_ref[...] if has_mask else None  # (TQ, TKV) additive, f32

    qk_dims = (((1,), (1,)), ((), ()))  # (TQ,Dh) x (TKV,Dh) -> (TQ,TKV)
    for h in range(n_head):
        # per-head column slices straight out of the packed projection output;
        # 1/sqrt(Dh) is folded into q before the QK^T matmul.
        q = (q_ref[0, :, q_off + h * dh: q_off + (h + 1) * dh]
             .astype(jnp.float32) * scale)
        k = kv_ref[0, :, k_off + h * dh: k_off + (h + 1) * dh]
        v = kv_ref[0, :, v_off + h * dh: v_off + (h + 1) * dh]

        s = jax.lax.dot_general(q.astype(MATMUL_INPUT_DTYPE),
                                k.astype(MATMUL_INPUT_DTYPE),
                                qk_dims, preferred_element_type=jnp.float32)
        if has_mask:
            s = s + mask

        # online softmax.  NOTE: the first KV block always contains at least
        # one unmasked column (causal mask / no mask), so m_new is finite.
        m_prev = mscr[h]
        m_new = jnp.maximum(m_prev, jnp.max(s, axis=-1, keepdims=True))
        alpha = jnp.exp(m_prev - m_new)
        p = jnp.exp(s - m_new)
        lscr[h] = alpha * lscr[h] + jnp.sum(p, axis=-1, keepdims=True)
        accscr[h] = alpha * accscr[h] + jnp.dot(
            p.astype(MATMUL_INPUT_DTYPE), v.astype(MATMUL_INPUT_DTYPE),
            preferred_element_type=jnp.float32)
        mscr[h] = m_new

    @pl.when(j == pl.num_programs(2) - 1)
    def _finalize():
        for h in range(n_head):
            out_h = accscr[h] * pl.reciprocal(lscr[h], approx=True)
            o_ref[0, :, h * dh:(h + 1) * dh] = out_h.astype(o_ref.dtype)


def pallas_attention(q_src, kv_src, mask, *, n_head, d_model, q_off, k_off, v_off):
    """Multi-head attention reading q/k/v directly from packed projections.

    q_src:  (B, Sq, Wq)  with q occupying columns [q_off, q_off + D)
    kv_src: (B, Sk, Wkv) with k at [k_off, k_off+D) and v at [v_off, v_off+D)
    mask:   (Sq, Sk) additive mask or None.  Returns (B, Sq, D)."""
    B, Sq, _Wq = q_src.shape
    Bk, Sk, _Wkv = kv_src.shape
    assert Bk == B
    dh = d_model // n_head
    scale = 1.0 / math.sqrt(dh)
    has_mask = mask is not None

    TQ = _pick_tile(Sq, _ATTN_TQ_TARGET, 8)
    TKV = _pick_tile(Sk, _ATTN_TKV_TARGET, 128)
    n_q, n_kv = Sq // TQ, Sk // TKV

    in_specs = [
        pl.BlockSpec((1, TQ, _Wq), lambda b, qi, j: (b, qi, 0)),
        pl.BlockSpec((1, TKV, _Wkv), lambda b, qi, j: (b, j, 0)),
    ]
    inputs = [q_src, kv_src]
    if has_mask:
        in_specs.append(pl.BlockSpec((TQ, TKV), lambda b, qi, j: (qi, j)))
        inputs.append(mask.astype(jnp.float32))

    cost = pl.CostEstimate(
        flops=4 * B * Sq * Sk * d_model,
        transcendentals=B * n_head * Sq * Sk,
        bytes_accessed=(q_src.size * q_src.dtype.itemsize
                        + kv_src.size * kv_src.dtype.itemsize
                        + B * Sq * d_model * 4))

    kernel = partial(_attention_kernel, n_head=n_head, dh=dh, q_off=q_off,
                     k_off=k_off, v_off=v_off, scale=scale, has_mask=has_mask)

    return pl.pallas_call(
        kernel,
        out_shape=jax.ShapeDtypeStruct((B, Sq, d_model), q_src.dtype),
        grid=(B, n_q, n_kv),
        in_specs=in_specs,
        out_specs=pl.BlockSpec((1, TQ, d_model), lambda b, qi, j: (b, qi, 0)),
        scratch_shapes=[pltpu.VMEM((n_head, TQ, 1), jnp.float32),
                        pltpu.VMEM((n_head, TQ, 1), jnp.float32),
                        pltpu.VMEM((n_head, TQ, dh), jnp.float32)],
        compiler_params=pltpu.CompilerParams(
            dimension_semantics=("parallel", "parallel", "arbitrary"),
            vmem_limit_bytes=_VMEM_LIMIT,
        ),
        cost_estimate=cost,
    )(*inputs)


# --------------------------- model (JAX glue) --------------------------------

def self_attention_block(x, p, n_head, attn_mask):
    B, S, D = x.shape
    x2 = x.reshape(B * S, D)
    # LN(ln_1) fused into the packed QKV projection
    qkv = pallas_linear(x2, p["w_in"], p["b_in"], ln_w=p["ln_1_w"], ln_b=p["ln_1_b"])
    qkv = qkv.reshape(B, S, 3 * D)
    # attention reads q/k/v straight out of the packed projection (no transposes)
    attn = pallas_attention(qkv, qkv, attn_mask, n_head=n_head, d_model=D,
                            q_off=0, k_off=D, v_off=2 * D)
    # out-projection with the residual add fused into the epilogue
    x = pallas_linear(attn.reshape(B * S, D), p["wo"], p["bo"], residual=x2)
    # MLP: LN(ln_2)+c_fc+GELU fused, then c_proj with fused residual
    h = pallas_linear(x, p["c_fc_w"], p["c_fc_b"],
                      ln_w=p["ln_2_w"], ln_b=p["ln_2_b"], act="gelu")
    x = pallas_linear(h, p["c_proj_w"], p["c_proj_b"], residual=x).reshape(B, S, D)
    return x


def cross_attention_block(x, image_embs, p, n_head):
    B, S, D = x.shape
    Bi, Si, _ = image_embs.shape
    x2 = x.reshape(B * S, D)
    img2 = image_embs.reshape(Bi * Si, D)
    # Q from LN(ln_1)(text); packed K|V from LN(ln_1_kv)(image)
    q = pallas_linear(x2, p["wq"], p["bq"], ln_w=p["ln_1_w"], ln_b=p["ln_1_b"])
    kv = pallas_linear(img2, p["w_kv"], p["b_kv"],
                       ln_w=p["ln_1_kv_w"], ln_b=p["ln_1_kv_b"])
    attn = pallas_attention(q.reshape(B, S, D), kv.reshape(Bi, Si, 2 * D), None,
                            n_head=n_head, d_model=D, q_off=0, k_off=0, v_off=D)
    x = pallas_linear(attn.reshape(B * S, D), p["wo"], p["bo"], residual=x2)
    h = pallas_linear(x, p["c_fc_w"], p["c_fc_b"],
                      ln_w=p["ln_2_w"], ln_b=p["ln_2_b"], act="gelu")
    x = pallas_linear(h, p["c_proj_w"], p["c_proj_b"], residual=x).reshape(B, S, D)
    return x


def multimodal_transformer_forward(image_embs, text_embs, params, *, n_head):
    seq = text_embs.shape[1]
    attn_mask = params["attn_mask"][:seq, :seq]  # causal (-inf above diag)
    x = text_embs
    for p_self, p_cross in zip(params["resblocks"], params["cross_attn"]):
        x = self_attention_block(x, p_self, n_head, attn_mask)
        x = cross_attention_block(x, image_embs, p_cross, n_head)
    B, S, D = x.shape
    # ln_final fused into the text projection (no bias on the projection)
    out = pallas_linear(x.reshape(B * S, D), params["text_projection"],
                        ln_w=params["ln_final_w"], ln_b=params["ln_final_b"])
    return out.reshape(B, S, params["text_projection"].shape[1])


# --------------------------- pure-JAX reference ------------------------------

def _ref_layernorm(x, w, b, eps=EPS):
    mean = jnp.mean(x, axis=-1, keepdims=True)
    var = jnp.mean(jnp.square(x - mean), axis=-1, keepdims=True)
    return (x - mean) * jax.lax.rsqrt(var + eps) * w + b


def _ref_gelu(x):
    return 0.5 * x * (1.0 + jax.lax.erf(x * _INV_SQRT2))


def _ref_linear(x, w, b, mm):
    y = jnp.dot(x.astype(mm), w.astype(mm), preferred_element_type=jnp.float32)
    if b is not None:
        y = y + b
    return y


def _ref_attention(q, k, v, mask, n_head, scale, mm):
    B, Sq, D = q.shape
    Sk = k.shape[1]
    dh = D // n_head
    qh = (q * scale).reshape(B, Sq, n_head, dh).transpose(0, 2, 1, 3).astype(mm)
    kh = k.reshape(B, Sk, n_head, dh).transpose(0, 2, 1, 3).astype(mm)
    vh = v.reshape(B, Sk, n_head, dh).transpose(0, 2, 1, 3).astype(mm)
    s = jnp.einsum("bhqd,bhkd->bhqk", qh, kh, preferred_element_type=jnp.float32)
    if mask is not None:
        s = s + mask
    m = jnp.max(s, axis=-1, keepdims=True)
    e = jnp.exp(s - m)
    o = jnp.einsum("bhqk,bhkd->bhqd", e.astype(mm), vh,
                   preferred_element_type=jnp.float32)
    o = o / jnp.sum(e, axis=-1, keepdims=True)
    return o.transpose(0, 2, 1, 3).reshape(B, Sq, D)


def _ref_block(x, p, n_head, mm, attn_mask=None, kv=None):
    D = x.shape[-1]
    scale = 1.0 / math.sqrt(D // n_head)
    q_in = _ref_layernorm(x, p["ln_1_w"], p["ln_1_b"])
    kv_in = (_ref_layernorm(kv, p["ln_1_kv_w"], p["ln_1_kv_b"])
             if kv is not None else q_in)
    q = _ref_linear(q_in, p["wq"], p["bq"], mm)
    k = _ref_linear(kv_in, p["wk"], p["bk"], mm)
    v = _ref_linear(kv_in, p["wv"], p["bv"], mm)
    attn = _ref_attention(q, k, v, attn_mask, n_head, scale, mm)
    x = x + _ref_linear(attn, p["wo"], p["bo"], mm)
    y = _ref_layernorm(x, p["ln_2_w"], p["ln_2_b"])
    y = _ref_gelu(_ref_linear(y, p["c_fc_w"], p["c_fc_b"], mm))
    x = x + _ref_linear(y, p["c_proj_w"], p["c_proj_b"], mm)
    return x


def _ref_forward(image_embs, text_embs, params, n_head, mm):
    seq = text_embs.shape[1]
    mask = params["attn_mask"][:seq, :seq]
    x = text_embs
    for p_self, p_cross in zip(params["resblocks"], params["cross_attn"]):
        x = _ref_block(x, p_self, n_head, mm, attn_mask=mask)
        x = _ref_block(x, p_cross, n_head, mm, kv=image_embs)
    x = _ref_layernorm(x, params["ln_final_w"], params["ln_final_b"])
    return _ref_linear(x, params["text_projection"], None, mm)


# --------------------------- deterministic init -------------------------------

def init_params(key, *, width, layers, heads, mlp_ratio, output_dim, context_length):
    d = width
    mw = int(d * mlp_ratio)
    attn_std = d ** -0.5
    proj_std = (d ** -0.5) * ((2 * layers) ** -0.5)
    fc_std = (2 * d) ** -0.5

    def norm(k, shape, std):
        return (std * jax.random.normal(k, shape)).astype(jnp.float32)

    def make_block(k, cross):
        ks = jax.random.split(k, 12)
        p = {
            "ln_1_w": jnp.ones((d,), jnp.float32),
            "ln_1_b": jnp.zeros((d,), jnp.float32),
            "ln_2_w": jnp.ones((d,), jnp.float32),
            "ln_2_b": jnp.zeros((d,), jnp.float32),
            "wq": norm(ks[0], (d, d), attn_std),
            "wk": norm(ks[1], (d, d), attn_std),
            "wv": norm(ks[2], (d, d), attn_std),
            "bq": norm(ks[3], (d,), 0.02),
            "bk": norm(ks[4], (d,), 0.02),
            "bv": norm(ks[5], (d,), 0.02),
            "wo": norm(ks[6], (d, d), proj_std),
            "bo": norm(ks[7], (d,), 0.02),
            "c_fc_w": norm(ks[8], (d, mw), fc_std),
            "c_fc_b": norm(ks[9], (mw,), 0.02),
            "c_proj_w": norm(ks[10], (mw, d), proj_std),
            "c_proj_b": norm(ks[11], (d,), 0.02),
        }
        if cross:
            p["ln_1_kv_w"] = jnp.ones((d,), jnp.float32)
            p["ln_1_kv_b"] = jnp.zeros((d,), jnp.float32)
        return p

    keys = jax.random.split(key, 2 * layers + 1)
    resblocks = [make_block(keys[i], cross=False) for i in range(layers)]
    cross_blocks = [make_block(keys[layers + i], cross=True) for i in range(layers)]
    # causal additive mask: -inf strictly above the diagonal (torch triu_(1))
    mask = jnp.triu(jnp.full((context_length, context_length), -jnp.inf, jnp.float32), k=1)
    return {
        "resblocks": resblocks,
        "cross_attn": cross_blocks,
        "attn_mask": mask,
        "ln_final_w": jnp.ones((d,), jnp.float32),
        "ln_final_b": jnp.zeros((d,), jnp.float32),
        "text_projection": norm(keys[-1], (d, output_dim), d ** -0.5),
    }


def prepare_pallas_params(params):
    """Pack QKV / KV projections and pre-cast matmul weights to bf16 (once,
    outside the jit).  LN params, biases and the mask stay f32."""
    mm = MATMUL_INPUT_DTYPE

    def common(p):
        return {
            "ln_1_w": p["ln_1_w"], "ln_1_b": p["ln_1_b"],
            "ln_2_w": p["ln_2_w"], "ln_2_b": p["ln_2_b"],
            "wo": p["wo"].astype(mm), "bo": p["bo"],
            "c_fc_w": p["c_fc_w"].astype(mm), "c_fc_b": p["c_fc_b"],
            "c_proj_w": p["c_proj_w"].astype(mm), "c_proj_b": p["c_proj_b"],
        }

    self_blocks = []
    for p in params["resblocks"]:
        b = common(p)
        b["w_in"] = jnp.concatenate([p["wq"], p["wk"], p["wv"]], axis=1).astype(mm)
        b["b_in"] = jnp.concatenate([p["bq"], p["bk"], p["bv"]])
        self_blocks.append(b)

    cross_blocks = []
    for p in params["cross_attn"]:
        b = common(p)
        b["ln_1_kv_w"] = p["ln_1_kv_w"]
        b["ln_1_kv_b"] = p["ln_1_kv_b"]
        b["wq"] = p["wq"].astype(mm)
        b["bq"] = p["bq"]
        b["w_kv"] = jnp.concatenate([p["wk"], p["wv"]], axis=1).astype(mm)
        b["b_kv"] = jnp.concatenate([p["bk"], p["bv"]])
        cross_blocks.append(b)

    return {"resblocks": self_blocks, "cross_attn": cross_blocks,
            "attn_mask": params["attn_mask"],
            "ln_final_w": params["ln_final_w"], "ln_final_b": params["ln_final_b"],
            "text_projection": params["text_projection"].astype(mm)}


# ------------------------------- self tests -----------------------------------

def _selftest_linear():
    key = jax.random.PRNGKey(1)
    ks = jax.random.split(key, 8)
    # (a) LN prologue cached across several N tiles (gn > 1), fused GELU
    M, K, N = 256, 384, 1536
    x = jax.random.normal(ks[0], (M, K), jnp.float32)
    w = (K ** -0.5 * jax.random.normal(ks[1], (K, N), jnp.float32)).astype(MATMUL_INPUT_DTYPE)
    b = 0.02 * jax.random.normal(ks[2], (N,), jnp.float32)
    lw = 1.0 + 0.1 * jax.random.normal(ks[3], (K,), jnp.float32)
    lb = 0.1 * jax.random.normal(ks[4], (K,), jnp.float32)
    out = jax.block_until_ready(pallas_linear(x, w, b, ln_w=lw, ln_b=lb, act="gelu"))
    ref = _ref_gelu(_ref_linear(_ref_layernorm(x, lw, lb), w, b, MATMUL_INPUT_DTYPE))
    err = float(jnp.max(jnp.abs(out - ref)))
    assert jnp.allclose(out, ref, atol=2e-3, rtol=2e-3), f"linear(a) err {err}"

    # (b) multi-K accumulation into the output block, fused residual
    M, K, N = 256, 1536, 256
    x = jax.random.normal(ks[5], (M, K), jnp.float32)
    w = (K ** -0.5 * jax.random.normal(ks[6], (K, N), jnp.float32)).astype(MATMUL_INPUT_DTYPE)
    res = jax.random.normal(ks[7], (M, N), jnp.float32)
    out = jax.block_until_ready(pallas_linear(x, w, None, residual=res))
    ref = _ref_linear(x, w, None, MATMUL_INPUT_DTYPE) + res
    err = float(jnp.max(jnp.abs(out - ref)))
    assert jnp.allclose(out, ref, atol=2e-3, rtol=2e-3), f"linear(b) err {err}"


def _selftest_attention():
    key = jax.random.PRNGKey(2)
    ks = jax.random.split(key, 6)
    # (a) causal self-attention from a packed QKV activation, multiple KV blocks
    B, H, dh, S = 1, 4, 64, 512
    D = H * dh
    q = jax.random.normal(ks[0], (B, S, D), jnp.float32)
    k = jax.random.normal(ks[1], (B, S, D), jnp.float32)
    v = jax.random.normal(ks[2], (B, S, D), jnp.float32)
    mask = jnp.triu(jnp.full((S, S), -jnp.inf, jnp.float32), k=1)
    qkv = jnp.concatenate([q, k, v], axis=-1)
    out = jax.block_until_ready(
        pallas_attention(qkv, qkv, mask, n_head=H, d_model=D,
                         q_off=0, k_off=D, v_off=2 * D))
    ref = _ref_attention(q, k, v, mask, H, 1.0 / math.sqrt(dh), MATMUL_INPUT_DTYPE)
    err = float(jnp.max(jnp.abs(out - ref)))
    assert jnp.allclose(out, ref, atol=1e-2, rtol=1e-2), f"attn(a) err {err}"

    # (b) cross-attention style: separate q, packed K|V, no mask, Sk != Sq
    B, H, dh, Sq, Sk = 2, 4, 64, 64, 384
    D = H * dh
    q = jax.random.normal(ks[3], (B, Sq, D), jnp.float32)
    k = jax.random.normal(ks[4], (B, Sk, D), jnp.float32)
    v = jax.random.normal(ks[5], (B, Sk, D), jnp.float32)
    kv = jnp.concatenate([k, v], axis=-1)
    out = jax.block_until_ready(
        pallas_attention(q, kv, None, n_head=H, d_model=D, q_off=0, k_off=0, v_off=D))
    ref = _ref_attention(q, k, v, None, H, 1.0 / math.sqrt(dh), MATMUL_INPUT_DTYPE)
    err = float(jnp.max(jnp.abs(out - ref)))
    assert jnp.allclose(out, ref, atol=1e-2, rtol=1e-2), f"attn(b) err {err}"


# ----------------------------------- main -------------------------------------

if __name__ == "__main__":
    # kernel-level self tests exercise the LN-cache, multi-K and flash paths
    _selftest_linear()
    _selftest_attention()

    B = 2
    width = 32
    heads = 4
    layers = 2
    mlp_ratio = 4.0
    context_length = 8   # text sequence length (== text_embs.shape[1])
    image_len = 16       # number of image tokens
    output_dim = 64

    key = jax.random.PRNGKey(0)
    k_img, k_txt, k_par = jax.random.split(key, 3)
    image_embs = jax.random.normal(k_img, (B, image_len, width), jnp.float32)
    text_embs = jax.random.normal(k_txt, (B, context_length, width), jnp.float32)
    params = init_params(k_par, width=width, layers=layers, heads=heads,
                         mlp_ratio=mlp_ratio, output_dim=output_dim,
                         context_length=context_length)
    pparams = prepare_pallas_params(params)

    fwd = jax.jit(partial(multimodal_transformer_forward, n_head=heads))
    out = jax.block_until_ready(fwd(image_embs, text_embs, pparams))
    assert out.shape == (B, context_length, output_dim)
    assert bool(jnp.all(jnp.isfinite(out)))

    # tight check vs a reference using the same bf16 matmul quantization,
    # loose check vs the pure-f32 reference (bf16 MXU inputs by design).
    ref_mm = _ref_forward(image_embs, text_embs, params, heads, MATMUL_INPUT_DTYPE)
    err_mm = float(jnp.max(jnp.abs(out - ref_mm)))
    assert jnp.allclose(out, ref_mm, atol=2e-2, rtol=2e-2), f"bf16-ref err {err_mm}"

    ref_f32 = _ref_forward(image_embs, text_embs, params, heads, jnp.float32)
    err_f32 = float(jnp.max(jnp.abs(out - ref_f32)))
    assert jnp.allclose(out, ref_f32, atol=1e-1, rtol=1e-1), f"f32-ref err {err_f32}"

    print("KERNEL_OK")
</pallas_src>

<mosaic_0001>
module attributes {stable_mosaic.version = 11 : i64} {
  func.func @_fused_matmul_kernel(%arg0: i32, %arg1: i32, %arg2: i32, %arg3: memref<256x384xf32, #tpu.memory_space<vmem>>, %arg4: memref<384x512xbf16, #tpu.memory_space<vmem>>, %arg5: memref<1x384xf32, #tpu.memory_space<vmem>>, %arg6: memref<1x384xf32, #tpu.memory_space<vmem>>, %arg7: memref<1x512xf32, #tpu.memory_space<vmem>>, %arg8: memref<256x512xf32, #tpu.memory_space<vmem>>, %arg9: memref<256x384xbf16, #tpu.memory_space<vmem>>) attributes {dimension_semantics = [#tpu.dimension_semantics<parallel>, #tpu.dimension_semantics<arbitrary>, #tpu.dimension_semantics<arbitrary>], iteration_bounds = array<i64: 1, 3, 1>, scalar_prefetch = 0 : i64, scratch_operands = 1 : i64, tpu.core_type = #tpu.core_type<tc>, window_params = [{transform_indices = @transform_0, window_bounds = array<i64: 256, 384>}, {transform_indices = @transform_1, window_bounds = array<i64: 384, 512>}, {transform_indices = @transform_2, window_bounds = array<i64: 1, 384>}, {transform_indices = @transform_3, window_bounds = array<i64: 1, 384>}, {transform_indices = @transform_4, window_bounds = array<i64: 1, 512>}, {transform_indices = @transform_5, window_bounds = array<i64: 256, 512>}]} {
    %c0_i32 = arith.constant 0 : i32
    %0 = arith.cmpi eq, %arg1, %c0_i32 : i32
    %1 = arith.extui %0 : i1 to i32
    %c0_i32_0 = arith.constant 0 : i32
    %2 = arith.cmpi ne, %1, %c0_i32_0 : i32
    scf.if %2 {
      %c0_11 = arith.constant 0 : index
      %c0_12 = arith.constant 0 : index
      %18 = vector.load %arg3[%c0_11, %c0_12] : memref<256x384xf32, #tpu.memory_space<vmem>>, vector<256x384xf32>
      %cst_13 = arith.constant dense<0.000000e+00> : vector<256xf32>
      %19 = vector.multi_reduction <add>, %18, %cst_13 [1] : vector<256x384xf32> to vector<256xf32>
      %20 = vector.shape_cast %19 : vector<256xf32> to vector<256x1xf32>
      %cst_14 = arith.constant 3.840000e+02 : f32
      %21 = vector.broadcast %cst_14 : f32 to vector<256x1xf32>
      %22 = arith.divf %20, %21 : vector<256x1xf32>
      %23 = vector.broadcast %22 : vector<256x1xf32> to vector<256x384xf32>
      %24 = arith.subf %18, %23 : vector<256x384xf32>
      %25 = arith.mulf %24, %24 : vector<256x384xf32>
      %cst_15 = arith.constant dense<0.000000e+00> : vector<256xf32>
      %26 = vector.multi_reduction <add>, %25, %cst_15 [1] : vector<256x384xf32> to vector<256xf32>
      %27 = vector.shape_cast %26 : vector<256xf32> to vector<256x1xf32>
      %cst_16 = arith.constant 3.840000e+02 : f32
      %28 = vector.broadcast %cst_16 : f32 to vector<256x1xf32>
      %29 = arith.divf %27, %28 : vector<256x1xf32>
      %30 = vector.broadcast %22 : vector<256x1xf32> to vector<256x384xf32>
      %31 = arith.subf %18, %30 : vector<256x384xf32>
      %cst_17 = arith.constant 9.99999974E-6 : f32
      %32 = vector.broadcast %cst_17 : f32 to vector<256x1xf32>
      %33 = arith.addf %29, %32 : vector<256x1xf32>
      %34 = math.rsqrt %33 : vector<256x1xf32>
      %35 = vector.broadcast %34 : vector<256x1xf32> to vector<256x384xf32>
      %36 = arith.mulf %31, %35 : vector<256x384xf32>
      %c0_18 = arith.constant 0 : index
      %c0_19 = arith.constant 0 : index
      %37 = vector.load %arg5[%c0_18, %c0_19] : memref<1x384xf32, #tpu.memory_space<vmem>>, vector<1x384xf32>
      %38 = vector.broadcast %37 : vector<1x384xf32> to vector<256x384xf32>
      %39 = arith.mulf %36, %38 : vector<256x384xf32>
      %c0_20 = arith.constant 0 : index
      %c0_21 = arith.constant 0 : index
      %40 = vector.load %arg6[%c0_20, %c0_21] : memref<1x384xf32, #tpu.memory_space<vmem>>, vector<1x384xf32>
      %41 = vector.broadcast %40 : vector<1x384xf32> to vector<256x384xf32>
      %42 = arith.addf %39, %41 : vector<256x384xf32>
      %43 = arith.truncf %42 : vector<256x384xf32> to vector<256x384xbf16>
      %c0_22 = arith.constant 0 : index
      %c0_23 = arith.constant 0 : index
      %44 = vector.load %arg9[%c0_22, %c0_23] : memref<256x384xbf16, #tpu.memory_space<vmem>>, vector<256x384xbf16>
      tpu.vector_store %arg9[%c0_22, %c0_23], %43 {strides = array<i32>} : memref<256x384xbf16, #tpu.memory_space<vmem>>, vector<256x384xbf16>,
    } else {
    }
    %c0 = arith.constant 0 : index
    %c0_1 = arith.constant 0 : index
    %3 = vector.load %arg9[%c0, %c0_1] : memref<256x384xbf16, #tpu.memory_space<vmem>>, vector<256x384xbf16>
    %c0_2 = arith.constant 0 : index
    %c0_3 = arith.constant 0 : index
    %4 = vector.load %arg4[%c0_2, %c0_3] : memref<384x512xbf16, #tpu.memory_space<vmem>>, vector<384x512xbf16>
    %cst = arith.constant dense<0.000000e+00> : vector<256x512xf32>
    %5 = tpu.matmul %3, %4, %cst {dimension_numbers = #tpu.dot_dimension_numbers<[1], [0], [0], [1], [0, 0, 1, 1], [], []>} : vector<256x384xbf16>, vector<384x512xbf16>, vector<256x512xf32> -> vector<256x512xf32>
    %c0_4 = arith.constant 0 : index
    %c0_5 = arith.constant 0 : index
    %6 = vector.load %arg7[%c0_4, %c0_5] : memref<1x512xf32, #tpu.memory_space<vmem>>, vector<1x512xf32>
    %7 = vector.broadcast %6 : vector<1x512xf32> to vector<256x512xf32>
    %8 = arith.addf %5, %7 : vector<256x512xf32>
    %cst_6 = arith.constant 5.000000e-01 : f32
    %9 = vector.broadcast %cst_6 : f32 to vector<256x512xf32>
    %10 = arith.mulf %9, %8 : vector<256x512xf32>
    %cst_7 = arith.constant 0.707106769 : f32
    %11 = vector.broadcast %cst_7 : f32 to vector<256x512xf32>
    %12 = arith.mulf %8, %11 : vector<256x512xf32>
    %13 = math.erf %12 : vector<256x512xf32>
    %cst_8 = arith.constant 1.000000e+00 : f32
    %14 = vector.broadcast %cst_8 : f32 to vector<256x512xf32>
    %15 = arith.addf %14, %13 : vector<256x512xf32>
    %16 = arith.mulf %10, %15 : vector<256x512xf32>
    %c0_9 = arith.constant 0 : index
    %c0_10 = arith.constant 0 : index
    %17 = vector.load %arg8[%c0_9, %c0_10] : memref<256x512xf32, #tpu.memory_space<vmem>>, vector<256x512xf32>
    tpu.vector_store %arg8[%c0_9, %c0_10], %16 {strides = array<i32>} : memref<256x512xf32, #tpu.memory_space<vmem>>, vector<256x512xf32>,
    return
  }
  func.func @transform_0(%arg0: i32, %arg1: i32, %arg2: i32) -> (i32, i32) {
    %c0_i32 = arith.constant 0 : i32
    return %arg0, %arg2 : i32, i32
  }
  func.func @transform_1(%arg0: i32, %arg1: i32, %arg2: i32) -> (i32, i32) {
    %c0_i32 = arith.constant 0 : i32
    return %arg2, %arg1 : i32, i32
  }
  func.func @transform_2(%arg0: i32, %arg1: i32, %arg2: i32) -> (i32, i32) {
    %c0_i32 = arith.constant 0 : i32
    %c0_i32_0 = arith.constant 0 : i32
    return %c0_i32, %arg2 : i32, i32
  }
  func.func @transform_3(%arg0: i32, %arg1: i32, %arg2: i32) -> (i32, i32) {
    %c0_i32 = arith.constant 0 : i32
    %c0_i32_0 = arith.constant 0 : i32
    return %c0_i32, %arg2 : i32, i32
  }
  func.func @transform_4(%arg0: i32, %arg1: i32, %arg2: i32) -> (i32, i32) {
    %c0_i32 = arith.constant 0 : i32
    %c0_i32_0 = arith.constant 0 : i32
    return %c0_i32, %arg1 : i32, i32
  }
  func.func @transform_5(%arg0: i32, %arg1: i32, %arg2: i32) -> (i32, i32) {
    %c0_i32 = arith.constant 0 : i32
    return %arg0, %arg1 : i32, i32
  }
}

</mosaic_0001>

<bundles_post_ra>
// kernel: tpu_custom_call.1
= control target key start
LH: loop header
LB: loop body
LE: loop exit
PB: predicated region body
PF: predicated region fallthrough
CT: control target
= control target key end

     0   :  { %s8557_s0 = inlined_call_operand.hbm [shape: f32[256,384], index: 0, kind: input, shape index: {}]   ;;  %s8558_s1 = inlined_call_operand.hbm [shape: bf16[384,1536], index: 1, kind: input, shape index: {}]   ;;  %s8559_s2 = inlined_call_operand.hbm [shape: f32[1,384], index: 2, kind: input, shape index: {}]   ;;  %s8560_s3 = inlined_call_operand.hbm [shape: f32[1,384], index: 3, kind: input, shape index: {}]   ;;  %s8561_s4 = inlined_call_operand.hbm [shape: f32[1,1536], index: 4, kind: input, shape index: {}]   ;;  %s8562_s5 = inlined_call_operand.hbm [shape: f32[256,1536], index: 5, kind: output, shape index: {}]  }
   0x1   :  { %8675 = sst [smem:[#allocation90_spill]] %s8557_s0 }
   0x2   :  { %8676 = sst [smem:[#allocation91_spill]] %s8558_s1 }
   0x3   :  { %8677 = sst [smem:[#allocation92_spill]] %s8559_s2 }
   0x4   :  { %8678 = sst [smem:[#allocation93_spill]] %s8560_s3 }
   0x5   :  { %10 = vsyncpa [#allocation4], 0 }
   0x6   :  { %11 = vsyncpa [#allocation7], 0 }
   0x7   :  { %13 = vsyncpa [#allocation7 + $0x1], 0 }
   0x8   :  { %14 = vsyncpa [#allocation10], 0 }
   0x9   :  { %15 = vsyncpa [#allocation5], 0 }
   0xa   :  { %17 = vsyncpa [#allocation5 + $0x1], 0  ;;  %s5621_s18 = smov 0   ;;  %s5623_s19 = smov 0  }
   0xb   :  { %s5625_s20 = smov 0   ;;  %s5627_s21 = smov 0  }
   0xc   :  { %s5629_s22 = smov 0   ;;  %s5631_s23 = smov 0  }
   0xd LB: > { %s5652_s24 = sadd.s32 4294967295, %s5574_s23   ;;  %s4392_s25 = sadd.s32 4294967294, %s5574_s23   ;;  %s5574_s23 = sphi %s5631_s23, %s23_s23   ;;  %s5570_s22 = sphi %s5629_s22, %s8922_s22   ;;  %s5566_s21 = sphi %s5627_s21, %s8921_s21   ;;  %s5562_s20 = sphi %s5625_s20, %s8920_s20   ;;  %s5558_s19 = sphi %s5623_s19, %s8919_s19   ;;  %s5554_s18 = sphi %s5621_s18, %s8918_s18  }
   0xe   : > { %p86_p0 = scmp.ne.s32.totalorder %s5562_s20, %s5558_s19  ;;  %p87_p1 = scmp.eq.s32.totalorder %s5574_s23, 0 }
   0xf   : > { %p92_p2 = scmp.ne.s32.totalorder %s5558_s19, %s5554_s18  ;;  %p8563_p3 = scmp.eq.s32.totalorder %s5652_s24, 0 }
  0x10   : > { %p196_p4 = scmp.eq.s32.totalorder %s5652_s24, 2  ;;  %p5663_p5 = por %p87_p1, %p86_p0 }
  0x11   : > { %p202_p6 = scmp.eq.s32.totalorder %s4392_s25, 2  ;;  %p5669_p7 = por %p8563_p3, %p92_p2 }
  0x12   : > { %p5673_p8 = por %p196_p4, %p86_p0  ;;  %p4393_p10 = scmp.ge.s32.totalorder %s5574_s23, 1 }
  0x13   : > { %s8680_s28 = scalar_select %p5669_p7, 1, 0 }
  0x14   : > { %s8681_s29 = scalar_select %p5673_p8, 1, 0 }
  0x15   : > { %p5677_p9 = por %p202_p6, %p92_p2  ;;  %p209_p11 = scmp.lt.s32.totalorder %s5574_s23, 4 }
  0x16   : > { %s5576_s7 = smov [#allocation3]   ;;  %p4750_p0 = scmp.lt.s32.totalorder %s5574_s23, 3 }
  0x17   : > { %s8682_s30 = scalar_select %p5677_p9, 1, 0 }
  0x18   : > { %p5683_p12 = pnand %p4393_p10, %p209_p11  ;;  %s227_s8 = sshll.u32 %s5576_s7, 4  ;;  %s228_s8 = int_to_ptr.vmem [resolvable:$true] %s227_s8 }
  0x19   : > { %8683 = sst [smem:[#allocation19_spill]] %s8682_s30  ;;  %s5577_s10 = smov [#allocation8]  }
  0x1a   : > { %p4726_p13 = pneg %p5683_p12  ;;  %s244_s11 = sshll.u32 %s5577_s10, 4  ;;  %s245_s11 = int_to_ptr.vmem [resolvable:$true] %s244_s11 }
  0x1b   : > { %p5698_p2 = pnand %p4750_p0, %p5663_p5  ;;  %s5355_s13 = scalar_lea.vmem %s228_s8, 12288 }
  0x1c   : > { %p5692_p1 = pnand %p4726_p13, %p8563_p3  ;;  %p5356_p6 = scmp.ne.s32.totalorder %s228_s8, %s5355_s13 }
  0x1d   : > { %p5363_p13 = scmp.lt.s32.totalorder %s228_s8, %s228_s8  ;;  %p5364_p3 = scmp.lt.s32.totalorder %s5355_s13, %s5355_s13 }
  0x1e   : > { %p5346_p4 = pneg %p5692_p1 }
  0x1f   : > { %p5365_p9 = por %p5364_p3, %p5363_p13 }
  0x20   : > { %p5358_p10 = pnand %p5356_p6, %p5346_p4 }
  0x22   : > { %p5359_p11 = pneg %p5358_p10 }
  0x24   : > { %p5366_p8 = pnand %p5365_p9, %p5359_p11 }
  0x26   : > { %5369 = shalt.err (!%p5366_p8)
}
  0x27   : > { %s5578_s14 = smov 384   ;;  %s5579_s15 = smov 24  }
  0x28   : > { %s8687_s0 = sld [smem:[#allocation90_spill]]  ;;  %s5580_s25 = smov [#allocation9]  }
  0x29   : > { %s258_s27 = sshll.u32 %s5580_s25, 4  ;;  %s5381_s7 = scalar_lea.vmem %s245_s11, 48  ;;  %s259_s27 = int_to_ptr.vmem [resolvable:$true] %s258_s27 }
  0x2a   : > { %p5382_p5 = scmp.ne.s32.totalorder %s245_s11, %s5381_s7  ;;  %s5388_s10 = scalar_lea.vmem %s245_s11, 64 }
  0x2b   : > { %p5389_p3 = scmp.lt.s32.totalorder %s245_s11, %s245_s11  ;;  %p5390_p8 = scmp.lt.s32.totalorder %s5388_s10, %s5381_s7 }
  0x2c   : > { %p5384_p0 = pnand %p5382_p5, %p5346_p4 }
  0x2d   : > { %p5391_p9 = por %p5390_p8, %p5389_p3 }
  0x2e   : > { %4729 = dma.hbm_to_vmem [thread:$0]  (!%p5692_p1), %s8687_s0, 12288, %s228_s8, [#allocation4], %s5578_s14, %s5578_s14, %s5579_s15  }
  0x2f   : > { %p5385_p6 = pneg %p5384_p0 }
  0x31   : > { %p5392_p10 = pnand %p5391_p9, %p5385_p6 }
  0x33   : > { %5395 = shalt.err (!%p5392_p10)
}
  0x34   : > { %s8688_s2 = sld [smem:[#allocation92_spill]]  ;;  %s5407_s8 = scalar_lea.vmem %s259_s27, 48 }
  0x35   : > { %p5408_p11 = scmp.ne.s32.totalorder %s259_s27, %s5407_s8  ;;  %s5414_s14 = scalar_lea.vmem %s259_s27, 64 }
  0x36   : > { %p5415_p0 = scmp.lt.s32.totalorder %s259_s27, %s259_s27  ;;  %p5416_p7 = scmp.lt.s32.totalorder %s5414_s14, %s5407_s8 }
  0x37   : > { %p5410_p13 = pnand %p5408_p11, %p5346_p4 }
  0x38   : > { %p5417_p3 = por %p5416_p7, %p5415_p0 }
  0x39   : > { %p5411_p5 = pneg %p5410_p13 }
  0x3a   : > { %4732 = dma.hbm_to_vmem [thread:$0]  (!%p5692_p1), %s8688_s2, 48, %s245_s11, [#allocation7]  }
  0x3b   : > { %p5418_p6 = pnand %p5417_p3, %p5411_p5 }
  0x3d   : > { %5421 = shalt.err (!%p5418_p6)
}
  0x3e   : > { %s8689_s3 = sld [smem:[#allocation93_spill]]  ;;  %s8567_s26 = sand.u32 1, %s5574_s23  }
  0x3f   : > { %s38_s11 = sadd.s32 1, %s5570_s22  ;;  %s8566_s17 = sand.u32 1, %s5562_s20  }
  0x40   : > { %p40_p7 = scmp.ge.s32.totalorder %s38_s11, 3  ;;  %s4706_s9 = smul.u32 768, %s8566_s17 }
  0x41   : > { %s4623_s25 = sshll.u32 %s5570_s22, 8  ;;  %s8691_s1 = sld [smem:[#allocation91_spill]] }
  0x42   : > { %s8924_s11 = smov (%p40_p7, %s38_s11), 0  ;;  %s273_s14 = scalar_lea.vmem [#allocation6], %s4706_s9 }
  0x43   : > { %8690 = sst [smem:[#allocation20_spill]] %s8924_s11  ;;  %s75_s8 = ssub.s32 %s5570_s22, %s8924_s11 }
  0x44   : > { %4735 = dma.hbm_to_vmem [thread:$0]  (!%p5692_p1), %s8689_s3, 48, %s259_s27, [#allocation10]  }
  0x45   : > { %s283_s27 = sshll.u32 %s273_s14, 4  ;;  %p77_p1 = scmp.eq.s32.totalorder %s75_s8, 0  ;;  %s284_s27 = int_to_ptr.vmem [resolvable:$true] %s283_s27 }
  0x46   : > { %s8692_s15 = sadd.s32 1, %s5562_s20  ;;  %s270_s0 = scalar_lea.sflag [#allocation7], %s8567_s26 }
  0x47   : > { %s5739_s13 = scalar_lea.hbm %s8691_s1, %s4623_s25  ;;  %p5424_p4 = pneg %p5698_p2 }
  0x48   : > { %s5746_s16 = scalar_select %p77_p1, %s5562_s20, %s8692_s15  }
  0x49   : > { %s5435_s17 = scalar_lea.vmem %s284_s27, 12288  ;;  %s5581_s25 = smov [#allocation6]  }
  0x4a   : > { %8693 = sst [smem:[#allocation21_spill]] %s5746_s16  ;;  %p5436_p8 = scmp.ne.s32.totalorder %s284_s27, %s5435_s17 }
  0x4b   : > { %s5440_s7 = sshll.u32 %s5581_s25, 4  ;;  %s5441_s7 = int_to_ptr.vmem [resolvable:$false] %s5440_s7 }
  0x4c   : > { %p5438_p9 = pnand %p5436_p8, %p5424_p4  ;;  %s5442_s9 = scalar_lea.vmem %s5441_s7, 24576 }
  0x4d   : > { %p5443_p11 = scmp.lt.s32.totalorder %s284_s27, %s5441_s7  ;;  %p5444_p13 = scmp.lt.s32.totalorder %s5442_s9, %s5435_s17 }
  0x4e   : > { %p5439_p10 = pneg %p5438_p9 }
  0x4f   : > { %p5445_p5 = por %p5444_p13, %p5443_p11 }
  0x51   : > { %p5446_p0 = pnand %p5445_p5, %p5439_p10 }
  0x53   : > { %5449 = shalt.err (!%p5446_p0)
}
  0x54   : > { %s5582_s10 = smov 768   ;;  %s5583_s8 = smov 256  }
  0x55   : > { %s5584_s14 = smov 16   ;;  %s8694_s15 = sand.u32 1, %s5562_s20  }
  0x56   : > { %4739 = dma.hbm_to_vmem [thread:$0]  (!%p5698_p2), %s5739_s13, 12288, %s284_s27, %s270_s0, %s5582_s10, %s5583_s8, %s5584_s14  }
  0x57   : > { %s4400_s25 = sshll.u32 %s8694_s15, 2  ;;  %s4624_s26 = sshll.u32 %s5570_s22, 6 }
  0x58   : > { %s303_s17 = scalar_lea.hbm %s8561_s4, %s4624_s26  ;;  %s297_s9 = scalar_lea.vmem [#allocation11], %s4400_s25 }
  0x59   : > { %s305_s2 = sshll.u32 %s297_s9, 4  ;;  %s8695_s3 = sand.u32 1, %s5574_s23   ;;  %s306_s2 = int_to_ptr.vmem [resolvable:$true] %s305_s2 }
  0x5a   : > { %s294_s11 = scalar_lea.sflag [#allocation4], %s8695_s3  ;;  %s5463_s16 = scalar_lea.vmem %s306_s2, 64 }
  0x5b   : > { %p5464_p3 = scmp.ne.s32.totalorder %s306_s2, %s5463_s16  ;;  %s5585_s30 = smov [#allocation11]  }
  0x5c   : > { %s5468_s0 = sshll.u32 %s5585_s30, 4  ;;  %s5469_s0 = int_to_ptr.vmem [resolvable:$false] %s5468_s0 }
  0x5d   : > { %p5466_p6 = pnand %p5464_p3, %p5424_p4  ;;  %s5470_s13 = scalar_lea.vmem %s5469_s0, 128 }
  0x5e   : > { %p5471_p1 = scmp.lt.s32.totalorder %s306_s2, %s5469_s0  ;;  %p5472_p8 = scmp.lt.s32.totalorder %s5470_s13, %s5463_s16 }
  0x5f   : > { %p5467_p7 = pneg %p5466_p6 }
  0x60   : > { %p5473_p9 = por %p5472_p8, %p5471_p1 }
  0x62   : > { %p5474_p10 = pnand %p5473_p9, %p5467_p7 }
  0x64   : > { %5477 = shalt.err (!%p5474_p10)
}
  0x65   : > { %4742 = dma.hbm_to_vmem [thread:$0]  (!%p5698_p2), %s303_s17, 64, %s306_s2, %s294_s11  }
  0x66   : > { %314 = sbr.rel (%p5683_p12) target bundleno = 1102 (0x44e), region = 40  ;;  %p8696_p11 = scmp.eq.s32.totalorder (!%p5683_p12), %s5652_s24, 0 }
  0x6b   : > { %5529 = dma.done.wait (%p8696_p11), [#allocation4], 12288   ;;  %p8697_p4 = pmov %p8696_p11 }
  0x6c   : > { %s320_s1 = sand.u32 1, %s5652_s24   ;;  %s5779_s3 = sand.u32 1, %s5558_s19  }
  0x6d   : > { %5531 = vsyncadd (%p8697_p4), [#allocation4], 4294955008  ;;  %s4707_s30 = smul.u32 768, %s5779_s3  ;;  %s321_s26 = scalar_lea.sflag [#allocation7], %s320_s1 }
  0x6e   : > { %p8698_p2 = scmp.ne.s32.totalorder %s8680_s28, 0 }
  0x6f   : > { %s5782_s12 = scalar_lea.vmem [#allocation6], %s4707_s30 }
  0x70   : > { %5533 = dma.done.wait (%p8698_p2), %s321_s26, 12288  }
  0x71   : > { %5535 = vsyncadd (%p8698_p2), %s321_s26, 4294955008  ;;  %p8699_p12 = pmov %p8697_p4 }
  0x72   : > { %p8700_p13 = pmov %p8697_p4 }
  0x73   : > { %5537 = dma.done.wait (%p8699_p12), [#allocation7], 48  }
  0x74   : > { %5539 = vsyncadd (%p8700_p13), [#allocation7], 4294967248  ;;  %p8701_p5 = pmov %p8697_p4 }
  0x75   : > { %p8702_p0 = pmov %p8697_p4 }
  0x76   : > { %5541 = dma.done.wait (%p8701_p5), [#allocation10], 48  }
  0x77   : > { %5543 = vsyncadd (%p8702_p0), [#allocation10], 4294967248  ;;  %s4407_s2 = sshll.u32 %s5779_s3, 2  ;;  %s338_s6 = scalar_lea.sflag [#allocation4], %s320_s1 }
  0x78   : > { %s5797_s11 = scalar_lea.vmem [#allocation11], %s4407_s2 }
  0x79   : > { %5545 = dma.done.wait (%p8698_p2), %s338_s6, 64  }
  0x7a   : > { %5547 = vsyncadd (%p8698_p2), %s338_s6, 4294967232  ;;  %s4408_s27 = sshll.u32 %s5779_s3, 10  ;;  %p4409_p3 = scmp.ne.s32.totalorder %s5566_s21, 0 }
  0x7b   : > { %s5804_s16 = scalar_lea.vmem [#allocation12], %s4408_s27 }
  0x7c   : > { %386 = sbr.rel (%p4409_p3) target bundleno = 564 (0x234), region = 64 }
  0x81   : > { %v5807_v0 = vld [vmem:[#allocation3] sm:$0xff]  ;;  %v5809_v1 = vld [vmem:[#allocation3 + $0x8] sm:$0xff]  ;;  %v5811_v2 = vld [vmem:[#allocation3 + $0x10] sm:$0xff] }
  0x82   : > { %v483_v3 = vadd.f32 %v5809_v1, %v5807_v0  ;;  %v5815_v4 = vld [vmem:[#allocation3 + $0x30] sm:$0xff]  ;;  %v5817_v5 = vld [vmem:[#allocation3 + $0x38] sm:$0xff]  ;;  %v5819_v6 = vld [vmem:[#allocation3 + $0x40] sm:$0xff] }
  0x83   : > { %v491_v7 = vadd.f32 %v5817_v5, %v5815_v4  ;;  %v5823_v8 = vld [vmem:[#allocation3 + $0x18] sm:$0xff]  ;;  %v5825_v9 = vld [vmem:[#allocation3 + $0x20] sm:$0xff]  ;;  %v5827_v10 = vld [vmem:[#allocation3 + $0x28] sm:$0xff] }
  0x84   : > { %v484_v11 = vadd.f32 %v483_v3, %v5811_v2  ;;  %v487_v12 = vadd.f32 %v5825_v9, %v5823_v8  ;;  %v5832_v13 = vld [vmem:[#allocation3 + $0x48] sm:$0xff]  ;;  %v5834_v14 = vld [vmem:[#allocation3 + $0x50] sm:$0xff]  ;;  %v5836_v15 = vld [vmem:[#allocation3 + $0x58] sm:$0xff] }
  0x85   : > { %v492_v16 = vadd.f32 %v491_v7, %v5819_v6  ;;  %v495_v17 = vadd.f32 %v5834_v14, %v5832_v13  ;;  %v5841_v18 = vld [vmem:[#allocation3 + $0x60] sm:$0xff]  ;;  %v5843_v19 = vld [vmem:[#allocation3 + $0x68] sm:$0xff]  ;;  %v5848_v22 = vld [vmem:[#allocation3 + $0x78] sm:$0xff] }
  0x86   : > { %485 = vadd.xlane.f32.xlu0 %v484_v11  ;;  %v488_v20 = vadd.f32 %v487_v12, %v5827_v10  ;;  %v499_v21 = vadd.f32 %v5843_v19, %v5841_v18  ;;  %v5850_v23 = vld [vmem:[#allocation3 + $0x80] sm:$0xff]  ;;  %v5853_v25 = vld [vmem:[#allocation3 + $0x70] sm:$0xff]  ;;  %v5859_v28 = vld [vmem:[#allocation3 + $0x98] sm:$0xff] }
  0x87   : > { %493 = vadd.xlane.f32.xlu1 %v492_v16  ;;  %v496_v24 = vadd.f32 %v495_v17, %v5836_v15  ;;  %v503_v26 = vadd.f32 %v5850_v23, %v5848_v22  ;;  %v5857_v27 = vld [vmem:[#allocation3 + $0x90] sm:$0xff]  ;;  %v5861_v29 = vld [vmem:[#allocation3 + $0x88] sm:$0xff]  ;;  %v5871_v35 = vld [vmem:[#allocation3 + $0xa0] sm:$0xff] }
  0x88   : > { %v5863_v30 = vld [vmem:[#allocation3 + $0xa8] sm:$0xff]  ;;  %v5865_v31 = vld [vmem:[#allocation3 + $0xb0] sm:$0xff]  ;;  %v500_v32 = vadd.f32 %v499_v21, %v5853_v25  ;;  %v507_v33 = vadd.f32 %v5859_v28, %v5857_v27  ;;  %v5875_v37 = vld [vmem:[#allocation3 + $0xc0] sm:$0xff] }
  0x89   : > { %v504_v34 = vadd.f32 %v503_v26, %v5861_v29  ;;  %v511_v36 = vadd.f32 %v5865_v31, %v5863_v30  ;;  %v5877_v38 = vld [vmem:[#allocation3 + $0xc8] sm:$0xff]  ;;  %v5879_v39 = vld [vmem:[#allocation3 + $0xb8] sm:$0xff]  ;;  %v5883_v41 = vld [vmem:[#allocation3 + $0xe0] sm:$0xff] }
  0x8a   : > { %489 = vadd.xlane.f32.xlu0 %v488_v20  ;;  %v5881_v40 = vld [vmem:[#allocation3 + $0xd8] sm:$0xff]  ;;  %v508_v42 = vadd.f32 %v507_v33, %v5871_v35  ;;  %v515_v43 = vadd.f32 %v5877_v38, %v5875_v37  ;;  %v5889_v45 = vld [vmem:[#allocation3 + $0xd0] sm:$0xff]  ;;  %v5897_v49 = vld [vmem:[#allocation3 + $0xe8] sm:$0xff] }
  0x8b   : > { %497 = vadd.xlane.f32.xlu1 %v496_v24  ;;  %v512_v44 = vadd.f32 %v511_v36, %v5879_v39  ;;  %v519_v46 = vadd.f32 %v5883_v41, %v5881_v40  ;;  %v5893_v47 = vld [vmem:[#allocation3 + $0xf0] sm:$0xff]  ;;  %v5895_v48 = vld [vmem:[#allocation3 + $0xf8] sm:$0xff]  ;;  %v5899_v50 = vld [vmem:[#allocation3 + $0x108] sm:$0xff] }
  0x8c   : > { %v5901_v51 = vld [vmem:[#allocation3 + $0x110] sm:$0xff]  ;;  %v516_v52 = vadd.f32 %v515_v43, %v5889_v45  ;;  %v523_v53 = vadd.f32 %v5895_v48, %v5893_v47  ;;  %v5907_v55 = vld [vmem:[#allocation3 + $0x100] sm:$0xff]  ;;  %v5913_v58 = vld [vmem:[#allocation3 + $0x128] sm:$0xff] }
  0x8d   : > { %v520_v54 = vadd.f32 %v519_v46, %v5897_v49  ;;  %v527_v56 = vadd.f32 %v5901_v51, %v5899_v50  ;;  %v5911_v57 = vld [vmem:[#allocation3 + $0x120] sm:$0xff]  ;;  %v5915_v59 = vld [vmem:[#allocation3 + $0x118] sm:$0xff]  ;;  %v5925_v7 = vld [vmem:[#allocation3 + $0x130] sm:$0xff] }
  0x8e   : > { %501 = vadd.xlane.f32.xlu0 %v500_v32  ;;  %v5917_v60 = vld [vmem:[#allocation3 + $0x138] sm:$0xff]  ;;  %v5919_v61 = vld [vmem:[#allocation3 + $0x140] sm:$0xff]  ;;  %v524_v62 = vadd.f32 %v523_v53, %v5907_v55  ;;  %v531_v63 = vadd.f32 %v5913_v58, %v5911_v57  ;;  %v5929_v12 = vld [vmem:[#allocation3 + $0x150] sm:$0xff] }
  0x8f   : > { %505 = vadd.xlane.f32.xlu1 %v504_v34  ;;  %v528_v3 = vadd.f32 %v527_v56, %v5915_v59  ;;  %v535_v11 = vadd.f32 %v5919_v61, %v5917_v60  ;;  %v5931_v16 = vld [vmem:[#allocation3 + $0x158] sm:$0xff]  ;;  %v5933_v17 = vld [vmem:[#allocation3 + $0x148] sm:$0xff]  ;;  %v5937_v21 = vld [vmem:[#allocation3 + $0x170] sm:$0xff] }
  0x90   : > { %v5935_v20 = vld [vmem:[#allocation3 + $0x168] sm:$0xff]  ;;  %8703 = vst [vmem:[#allocation22_spill] sm:$0xff] %v5937_v21  ;;  %v532_v24 = vadd.f32 %v531_v63, %v5925_v7  ;;  %v539_v26 = vadd.f32 %v5931_v16, %v5929_v12  ;;  %v5943_v33 = vld [vmem:[#allocation3 + $0x160] sm:$0xff]  ;;  %v5951_v43 = vld [vmem:[#allocation3 + $0x178] sm:$0xff] }
  0x91   : > { %v536_v32 = vadd.f32 %v535_v11, %v5933_v17  ;;  %v543_v34 = vadd.f32 %v5937_v21, %v5935_v20  ;;  %v5947_v36 = vld [vmem:[#allocation3 + $0x180] sm:$0xff]  ;;  %8706 = vst [vmem:[#allocation25_spill] sm:$0xff] %v5951_v43  ;;  %v5961_v56 = vld [vmem:[#allocation3 + $0x190] sm:$0xff]  ;;  %v5969_v11 = vld [vmem:[#allocation3 + $0x1a8] sm:$0xff] }
  0x92   : > { %509 = vadd.xlane.f32.xlu0 %v508_v42  ;;  %8704 = vst [vmem:[#allocation23_spill] sm:$0xff] %v5947_v36  ;;  %v5949_v42 = vld [vmem:[#allocation3 + $0x188] sm:$0xff]  ;;  %v5955_v46 = vld [vmem:[#allocation3 + $0x1a0] sm:$0xff]  ;;  %8709 = vst [vmem:[#allocation28_spill] sm:$0xff] %v5961_v56 }
  0x93   : > { %513 = vadd.xlane.f32.xlu1 %v512_v44  ;;  %8705 = vst [vmem:[#allocation24_spill] sm:$0xff] %v5949_v42  ;;  %v5953_v44 = vld [vmem:[#allocation3 + $0x198] sm:$0xff]  ;;  %8708 = vst [vmem:[#allocation27_spill] sm:$0xff] %v5955_v46  ;;  %v547_v53 = vadd.f32 %v5949_v42, %v5947_v36  ;;  %v5965_v63 = vld [vmem:[#allocation3 + $0x1b0] sm:$0xff] }
  0x94   : > { %8707 = vst [vmem:[#allocation26_spill] sm:$0xff] %v5953_v44  ;;  %8710 = vst [vmem:[#allocation29_spill] sm:$0xff] %v5965_v63  ;;  %v5983_v36 = vld [vmem:[#allocation3 + $0x1e0] sm:$0xff]  ;;  %v5987_v21 = vld [vmem:[#allocation3 + $0x1d8] sm:$0xff] }
  0x95   : > { %8712 = vst [vmem:[#allocation31_spill] sm:$0xff] %v5969_v11  ;;  %8716 = vst [vmem:[#allocation35_spill] sm:$0xff] %v5983_v36 }
  0x96   : > { %517 = vadd.xlane.f32.xlu0 %v516_v52  ;;  %v540_v52 = vadd.f32 %v539_v26, %v5943_v33  ;;  %v5973_v26 = vld [vmem:[#allocation3 + $0x1d0] sm:$0xff]  ;;  %8718 = vst [vmem:[#allocation37_spill] sm:$0xff] %v5987_v21 }
  0x97   : > { %521 = vadd.xlane.f32.xlu1 %v520_v54  ;;  %v544_v54 = vadd.f32 %v543_v34, %v5951_v43  ;;  %8714 = vst [vmem:[#allocation33_spill] sm:$0xff] %v5973_v26  ;;  %v5985_v43 = vld [vmem:[#allocation3 + $0x1e8] sm:$0xff] }
  0x98   : > { %8717 = vst [vmem:[#allocation36_spill] sm:$0xff] %v5985_v43 }
  0x9a   : > { %525 = vadd.xlane.f32.xlu0 %v524_v62  ;;  %v551_v62 = vadd.f32 %v5955_v46, %v5953_v44  ;;  %v5979_v46 = vld [vmem:[#allocation3 + $0x1c0] sm:$0xff] }
  0x9b   : > { %529 = vadd.xlane.f32.xlu1 %v528_v3  ;;  %v5967_v3 = vld [vmem:[#allocation3 + $0x1b8] sm:$0xff]  ;;  %8715 = vst [vmem:[#allocation34_spill] sm:$0xff] %v5979_v46 }
  0x9c   : > { %8711 = vst [vmem:[#allocation30_spill] sm:$0xff] %v5967_v3  ;;  %v555_v34 = vadd.f32 %v5967_v3, %v5965_v63  ;;  %v552_v42 = vadd.f32 %v551_v62, %v5969_v11  ;;  %v563_v62 = vadd.f32 %v5985_v43, %v5983_v36  ;;  %v6001_v63 = vld [vmem:[#allocation3 + $0x210] sm:$0xff]  ;;  %v6003_v11 = vld [vmem:[#allocation3 + $0x218] sm:$0xff]  ;;  %v6019_v36 = vld [vmem:[#allocation3 + $0x240] sm:$0xff] }
  0x9d   : > { %8722 = vst [vmem:[#allocation41_spill] sm:$0xff] %v6001_v63  ;;  %8723 = vst [vmem:[#allocation42_spill] sm:$0xff] %v6003_v11 }
  0x9e   : > { %533 = vadd.xlane.f32.xlu0 %v532_v24  ;;  %v5971_v24 = vld [vmem:[#allocation3 + $0x1c8] sm:$0xff]  ;;  %8728 = vst [vmem:[#allocation47_spill] sm:$0xff] %v6019_v36 }
  0x9f   : > { %537 = vadd.xlane.f32.xlu1 %v536_v32  ;;  %8713 = vst [vmem:[#allocation32_spill] sm:$0xff] %v5971_v24  ;;  %v548_v32 = vadd.f32 %v547_v53, %v5961_v56  ;;  %v559_v44 = vadd.f32 %v5973_v26, %v5971_v24  ;;  %v5991_v53 = vld [vmem:[#allocation3 + $0x200] sm:$0xff]  ;;  %v5997_v26 = vld [vmem:[#allocation3 + $0x1f0] sm:$0xff]  ;;  %v6005_v56 = vld [vmem:[#allocation3 + $0x208] sm:$0xff] }
  0xa0   : > { %8720 = vst [vmem:[#allocation39_spill] sm:$0xff] %v5991_v53  ;;  %8721 = vst [vmem:[#allocation40_spill] sm:$0xff] %v5997_v26 }
  0xa1   : > { %v560_v3 = vadd.f32 %v559_v44, %v5987_v21  ;;  %8724 = vst [vmem:[#allocation43_spill] sm:$0xff] %v6005_v56  ;;  %v571_v44 = vadd.f32 %v6003_v11, %v6001_v63  ;;  %v6021_v21 = vld [vmem:[#allocation3 + $0x248] sm:$0xff]  ;;  %v6037_v63 = vld [vmem:[#allocation3 + $0x270] sm:$0xff] }
  0xa2   : > { %541 = vadd.xlane.f32.xlu0 %v540_v52  ;;  %v5989_v52 = vld [vmem:[#allocation3 + $0x1f8] sm:$0xff]  ;;  %8729 = vst [vmem:[#allocation48_spill] sm:$0xff] %v6021_v21  ;;  %8734 = vst [vmem:[#allocation53_spill] sm:$0xff] %v6037_v63 }
  0xa3   : > { %545 = vadd.xlane.f32.xlu1 %v544_v54  ;;  %8719 = vst [vmem:[#allocation38_spill] sm:$0xff] %v5989_v52  ;;  %v556_v54 = vadd.f32 %v555_v34, %v5979_v46  ;;  %v567_v24 = vadd.f32 %v5991_v53, %v5989_v52  ;;  %v6009_v34 = vld [vmem:[#allocation3 + $0x230] sm:$0xff]  ;;  %v6015_v53 = vld [vmem:[#allocation3 + $0x220] sm:$0xff]  ;;  %v6023_v46 = vld [vmem:[#allocation3 + $0x238] sm:$0xff] }
  0xa4   : > { %8726 = vst [vmem:[#allocation45_spill] sm:$0xff] %v6009_v34  ;;  %8727 = vst [vmem:[#allocation46_spill] sm:$0xff] %v6015_v53 }
  0xa5   : > { %v568_v43 = vadd.f32 %v567_v24, %v6005_v56  ;;  %8730 = vst [vmem:[#allocation49_spill] sm:$0xff] %v6023_v46  ;;  %v579_v24 = vadd.f32 %v6021_v21, %v6019_v36  ;;  %v6039_v56 = vld [vmem:[#allocation3 + $0x278] sm:$0xff]  ;;  %v6055_v36 = vld [vmem:[#allocation3 + $0x2a0] sm:$0xff] }
  0xa6   : > { %549 = vadd.xlane.f32.xlu0 %v548_v32  ;;  %v6007_v32 = vld [vmem:[#allocation3 + $0x228] sm:$0xff]  ;;  %8735 = vst [vmem:[#allocation54_spill] sm:$0xff] %v6039_v56  ;;  %8739 = vst [vmem:[#allocation58_spill] sm:$0xff] %v6055_v36 }
  0xa7   : > { %553 = vadd.xlane.f32.xlu1 %v552_v42  ;;  %8725 = vst [vmem:[#allocation44_spill] sm:$0xff] %v6007_v32  ;;  %v564_v42 = vadd.f32 %v563_v62, %v5997_v26  ;;  %v575_v52 = vadd.f32 %v6009_v34, %v6007_v32  ;;  %v6027_v62 = vld [vmem:[#allocation3 + $0x260] sm:$0xff]  ;;  %v6033_v34 = vld [vmem:[#allocation3 + $0x250] sm:$0xff]  ;;  %v6041_v26 = vld [vmem:[#allocation3 + $0x268] sm:$0xff] }
  0xa8   : > { %8732 = vst [vmem:[#allocation51_spill] sm:$0xff] %v6027_v62  ;;  %8733 = vst [vmem:[#allocation52_spill] sm:$0xff] %v6033_v34 }
  0xa9   : > { %v576_v11 = vadd.f32 %v575_v52, %v6023_v46  ;;  %8736 = vst [vmem:[#allocation55_spill] sm:$0xff] %v6041_v26  ;;  %v587_v52 = vadd.f32 %v6039_v56, %v6037_v63  ;;  %v6057_v46 = vld [vmem:[#allocation3 + $0x2a8] sm:$0xff]  ;;  %v6073_v63 = vld [vmem:[#allocation3 + $0x2d0] sm:$0xff] }
  0xaa   : > { %557 = vadd.xlane.f32.xlu0 %v556_v54  ;;  %v6025_v54 = vld [vmem:[#allocation3 + $0x258] sm:$0xff]  ;;  %8740 = vst [vmem:[#allocation59_spill] sm:$0xff] %v6057_v46  ;;  %8744 = vst [vmem:[#allocation63_spill] sm:$0xff] %v6073_v63 }
  0xab   : > { %561 = vadd.xlane.f32.xlu1 %v560_v3  ;;  %8731 = vst [vmem:[#allocation50_spill] sm:$0xff] %v6025_v54  ;;  %v572_v3 = vadd.f32 %v571_v44, %v6015_v53  ;;  %v583_v32 = vadd.f32 %v6027_v62, %v6025_v54  ;;  %v6045_v44 = vld [vmem:[#allocation3 + $0x290] sm:$0xff]  ;;  %v6051_v62 = vld [vmem:[#allocation3 + $0x280] sm:$0xff]  ;;  %v6059_v53 = vld [vmem:[#allocation3 + $0x298] sm:$0xff] }
  0xac   : > { %8738 = vst [vmem:[#allocation57_spill] sm:$0xff] %v6045_v44  ;;  %8741 = vst [vmem:[#allocation60_spill] sm:$0xff] %v6059_v53 }
  0xad   : > { %v584_v21 = vadd.f32 %v583_v32, %v6041_v26  ;;  %v595_v32 = vadd.f32 %v6057_v46, %v6055_v36  ;;  %v6075_v26 = vld [vmem:[#allocation3 + $0x2d8] sm:$0xff] }
  0xae   : > { %565 = vadd.xlane.f32.xlu0 %v564_v42  ;;  %v6043_v42 = vld [vmem:[#allocation3 + $0x288] sm:$0xff]  ;;  %8745 = vst [vmem:[#allocation64_spill] sm:$0xff] %v6075_v26  ;;  %v6091_v36 = vld [vmem:[#allocation3 + $0x2f8] sm:$0xff] }
  0xaf   : > { %569 = vadd.xlane.f32.xlu1 %v568_v43  ;;  %8737 = vst [vmem:[#allocation56_spill] sm:$0xff] %v6043_v42  ;;  %v580_v43 = vadd.f32 %v579_v24, %v6033_v34  ;;  %v591_v54 = vadd.f32 %v6045_v44, %v6043_v42  ;;  %v6063_v24 = vld [vmem:[#allocation3 + $0x2c0] sm:$0xff]  ;;  %v6069_v44 = vld [vmem:[#allocation3 + $0x2b0] sm:$0xff]  ;;  %v6077_v34 = vld [vmem:[#allocation3 + $0x2c8] sm:$0xff] }
  0xb0   : > { %8743 = vst [vmem:[#allocation62_spill] sm:$0xff] %v6063_v24  ;;  %8746 = vst [vmem:[#allocation65_spill] sm:$0xff] %v6077_v34 }
  0xb1   : > { %v592_v56 = vadd.f32 %v591_v54, %v6059_v53  ;;  %v603_v54 = vadd.f32 %v6075_v26, %v6073_v63 }
  0xb2   : > { %573 = vadd.xlane.f32.xlu0 %v572_v3  ;;  %v6061_v3 = vld [vmem:[#allocation3 + $0x2b8] sm:$0xff] }
  0xb3   : > { %577 = vadd.xlane.f32.xlu1 %v576_v11  ;;  %8742 = vst [vmem:[#allocation61_spill] sm:$0xff] %v6061_v3  ;;  %v588_v11 = vadd.f32 %v587_v52, %v6051_v62  ;;  %v599_v42 = vadd.f32 %v6063_v24, %v6061_v3  ;;  %v6081_v52 = vld [vmem:[#allocation3 + $0x2f0] sm:$0xff]  ;;  %v6087_v24 = vld [vmem:[#allocation3 + $0x2e0] sm:$0xff] }
  0xb4   : > { %8747 = vst [vmem:[#allocation66_spill] sm:$0xff] %v6081_v52  ;;  %v604_v53 = vadd.f32 %v603_v54, %v6087_v24 }
  0xb5   : > { %v600_v46 = vadd.f32 %v599_v42, %v6077_v34 }
  0xb6   : > { %581 = vadd.xlane.f32.xlu0 %v580_v43  ;;  %v6079_v43 = vld [vmem:[#allocation3 + $0x2e8] sm:$0xff] }
  0xb7   : > { %585 = vadd.xlane.f32.xlu1 %v584_v21  ;;  %v596_v21 = vadd.f32 %v595_v32, %v6069_v44  ;;  %v607_v3 = vadd.f32 %v6081_v52, %v6079_v43 }
  0xba   : > { %589 = vadd.xlane.f32.xlu0 %v588_v11  ;;  %v608_v11 = vadd.f32 %v607_v3, %v6091_v36 }
  0xbb   : > { %593 = vadd.xlane.f32.xlu1 %v592_v56 }
  0xbe   : > { %597 = vadd.xlane.f32.xlu0 %v596_v21 }
  0xbf   : > { %601 = vadd.xlane.f32.xlu1 %v600_v46 }
  0xc2   : > { %605 = vadd.xlane.f32.xlu0 %v604_v53 }
  0xc3   : > { %609 = vadd.xlane.f32.xlu1 %v608_v11 }
 0x10f   : > { %v486_v32 = vpop.xlane.xlu0 %485 }
 0x110   : > { %v612_v26 = vmul.f32 0.0026041667, %v486_v32  ;;  %v494_v56 = vpop.xlane.xlu1 %493 }
 0x111   : > { %v614_v63 = vmul.f32 0.0026041667, %v494_v56 }
 0x112   : > { %v6096_v42 = vsub.f32 %v5807_v0, %v612_v26  ;;  %v6099_v34 = vsub.f32 %v5809_v1, %v612_v26  ;;  %v6102_v52 = vsub.f32 %v5811_v2, %v612_v26 }
 0x113   : > { %v6105_v21 = vsub.f32 %v5815_v4, %v614_v63  ;;  %v6108_v46 = vsub.f32 %v5817_v5, %v614_v63  ;;  %v6111_v53 = vsub.f32 %v5819_v6, %v614_v63  ;;  %v490_v3 = vpop.xlane.xlu0 %489 }
 0x114   : > { %8748 = vst [vmem:[#allocation67_spill] sm:$0xff] %v6096_v42  ;;  %8749 = vst [vmem:[#allocation68_spill] sm:$0xff] %v6099_v34  ;;  %v613_v54 = vmul.f32 0.0026041667, %v490_v3  ;;  %v498_v11 = vpop.xlane.xlu1 %497  ;;  %v740_v0 = vmul.f32 %v6096_v42, %v6096_v42  ;;  %v741_v1 = vmul.f32 %v6099_v34, %v6099_v34  ;;  %v742_v2 = vmul.f32 %v6102_v52, %v6102_v52 }
 0x115   : > { %8750 = vst [vmem:[#allocation69_spill] sm:$0xff] %v6102_v52  ;;  %8751 = vst [vmem:[#allocation70_spill] sm:$0xff] %v6105_v21  ;;  %v615_v4 = vmul.f32 0.0026041667, %v498_v11  ;;  %v746_v5 = vmul.f32 %v6105_v21, %v6105_v21  ;;  %v747_v6 = vmul.f32 %v6108_v46, %v6108_v46  ;;  %v748_v63 = vmul.f32 %v6111_v53, %v6111_v53 }
 0x116   : > { %8752 = vst [vmem:[#allocation71_spill] sm:$0xff] %v6108_v46  ;;  %8753 = vst [vmem:[#allocation72_spill] sm:$0xff] %v6111_v53  ;;  %v6126_v26 = vsub.f32 %v5823_v8, %v613_v54  ;;  %v6129_v32 = vsub.f32 %v5825_v9, %v613_v54  ;;  %v6132_v56 = vsub.f32 %v5827_v10, %v613_v54 }
 0x117   : > { %v836_v3 = vadd.f32 %v741_v1, %v740_v0  ;;  %v6135_v11 = vsub.f32 %v5832_v13, %v615_v4  ;;  %v6138_v21 = vsub.f32 %v5834_v14, %v615_v4  ;;  %v6141_v46 = vsub.f32 %v5836_v15, %v615_v4  ;;  %v502_v53 = vpop.xlane.xlu0 %501 }
 0x118   : > { %v844_v52 = vadd.f32 %v747_v6, %v746_v5  ;;  %v616_v8 = vmul.f32 0.0026041667, %v502_v53  ;;  %v506_v34 = vpop.xlane.xlu1 %505  ;;  %v743_v9 = vmul.f32 %v6126_v26, %v6126_v26  ;;  %v744_v10 = vmul.f32 %v6129_v32, %v6129_v32 }
 0x119   : > { %v837_v42 = vadd.f32 %v836_v3, %v742_v2  ;;  %v617_v54 = vmul.f32 0.0026041667, %v506_v34  ;;  %v745_v14 = vmul.f32 %v6132_v56, %v6132_v56  ;;  %v749_v15 = vmul.f32 %v6135_v11, %v6135_v11 }
 0x11a   : > { %v845_v13 = vadd.f32 %v844_v52, %v748_v63  ;;  %v6152_v0 = vsub.f32 %v5841_v18, %v616_v8  ;;  %v6155_v53 = vsub.f32 %v5843_v19, %v616_v8  ;;  %v6158_v1 = vsub.f32 %v5853_v25, %v616_v8 }
 0x11b   : > { %838 = vadd.xlane.f32.xlu0 %v837_v42  ;;  %v840_v2 = vadd.f32 %v744_v10, %v743_v9  ;;  %v6161_v34 = vsub.f32 %v5848_v22, %v617_v54  ;;  %v6164_v52 = vsub.f32 %v5850_v23, %v617_v54  ;;  %v6167_v4 = vsub.f32 %v5861_v29, %v617_v54  ;;  %v510_v5 = vpop.xlane.xlu0 %509 }
 0x11c   : > { %v750_v18 = vmul.f32 %v6138_v21, %v6138_v21  ;;  %v618_v19 = vmul.f32 0.0026041667, %v510_v5  ;;  %v514_v6 = vpop.xlane.xlu1 %513  ;;  %v751_v25 = vmul.f32 %v6141_v46, %v6141_v46  ;;  %v752_v22 = vmul.f32 %v6152_v0, %v6152_v0 }
 0x11d   : > { %v841_v63 = vadd.f32 %v840_v2, %v745_v14  ;;  %v619_v42 = vmul.f32 0.0026041667, %v514_v6  ;;  %v753_v23 = vmul.f32 %v6155_v53, %v6155_v53  ;;  %v754_v29 = vmul.f32 %v6158_v1, %v6158_v1 }
 0x11e   : > { %v848_v3 = vadd.f32 %v750_v18, %v749_v15  ;;  %v6180_v8 = vsub.f32 %v5857_v27, %v618_v19  ;;  %v6183_v9 = vsub.f32 %v5859_v28, %v618_v19  ;;  %v6186_v10 = vsub.f32 %v5871_v35, %v618_v19 }
 0x11f   : > { %846 = vadd.xlane.f32.xlu0 %v845_v13  ;;  %842 = vadd.xlane.f32.xlu1 %v841_v63  ;;  %v6189_v54 = vsub.f32 %v5863_v30, %v619_v42  ;;  %v6192_v14 = vsub.f32 %v5865_v31, %v619_v42  ;;  %v6195_v15 = vsub.f32 %v5879_v39, %v619_v42  ;;  %v518_v2 = vpop.xlane.xlu0 %517 }
 0x120   : > { %8754 = vst [vmem:[#allocation73_spill] sm:$0xff] %v6183_v9  ;;  %v849_v27 = vadd.f32 %v848_v3, %v751_v25  ;;  %v620_v5 = vmul.f32 0.0026041667, %v518_v2  ;;  %v522_v18 = vpop.xlane.xlu1 %521  ;;  %v852_v28 = vadd.f32 %v753_v23, %v752_v22  ;;  %v755_v35 = vmul.f32 %v6161_v34, %v6161_v34 }
 0x121   : > { %v756_v13 = vmul.f32 %v6164_v52, %v6164_v52  ;;  %v621_v19 = vmul.f32 0.0026041667, %v522_v18  ;;  %v757_v30 = vmul.f32 %v6167_v4, %v6167_v4  ;;  %v758_v31 = vmul.f32 %v6180_v8, %v6180_v8 }
 0x122   : > { %v759_v39 = vmul.f32 %v6183_v9, %v6183_v9  ;;  %v6208_v6 = vsub.f32 %v5875_v37, %v620_v5  ;;  %v6211_v63 = vsub.f32 %v5877_v38, %v620_v5  ;;  %v853_v25 = vadd.f32 %v852_v28, %v754_v29 }
 0x123   : > { %850 = vadd.xlane.f32.xlu1 %v849_v27  ;;  %v6214_v22 = vsub.f32 %v5889_v45, %v620_v5  ;;  %v6217_v42 = vsub.f32 %v5881_v40, %v621_v19  ;;  %v6220_v3 = vsub.f32 %v5883_v41, %v621_v19  ;;  %v526_v23 = vpop.xlane.xlu0 %525  ;;  %v856_v2 = vadd.f32 %v756_v13, %v755_v35 }
 0x124   : > { %854 = vadd.xlane.f32.xlu0 %v853_v25  ;;  %v622_v18 = vmul.f32 0.0026041667, %v526_v23  ;;  %v530_v37 = vpop.xlane.xlu1 %529  ;;  %v760_v38 = vmul.f32 %v6186_v10, %v6186_v10  ;;  %v860_v9 = vadd.f32 %v759_v39, %v758_v31  ;;  %v761_v29 = vmul.f32 %v6189_v54, %v6189_v54 }
 0x125   : > { %v623_v45 = vmul.f32 0.0026041667, %v530_v37  ;;  %v857_v27 = vadd.f32 %v856_v2, %v757_v30  ;;  %v762_v40 = vmul.f32 %v6192_v14, %v6192_v14  ;;  %v763_v41 = vmul.f32 %v6195_v15, %v6195_v15 }
 0x126   : > { %v6231_v5 = vsub.f32 %v5897_v49, %v621_v19  ;;  %v6234_v28 = vsub.f32 %v5893_v47, %v622_v18  ;;  %v6237_v35 = vsub.f32 %v5895_v48, %v622_v18  ;;  %v861_v13 = vadd.f32 %v860_v9, %v760_v38 }
 0x127   : > { %v6240_v31 = vsub.f32 %v5907_v55, %v622_v18  ;;  %v6243_v30 = vsub.f32 %v5899_v50, %v623_v45  ;;  %v6246_v39 = vsub.f32 %v5901_v51, %v623_v45  ;;  %858 = vadd.xlane.f32.xlu1 %v857_v27  ;;  %v534_v25 = vpop.xlane.xlu0 %533  ;;  %v864_v49 = vadd.f32 %v762_v40, %v761_v29 }
 0x128   : > { %8755 = vst [vmem:[#allocation74_spill] sm:$0xff] %v6234_v28  ;;  %8756 = vst [vmem:[#allocation75_spill] sm:$0xff] %v6237_v35  ;;  %862 = vadd.xlane.f32.xlu0 %v861_v13  ;;  %v624_v19 = vmul.f32 0.0026041667, %v534_v25  ;;  %v538_v47 = vpop.xlane.xlu1 %537  ;;  %v764_v48 = vmul.f32 %v6208_v6, %v6208_v6  ;;  %v765_v9 = vmul.f32 %v6211_v63, %v6211_v63 }
 0x129   : > { %8757 = vst [vmem:[#allocation76_spill] sm:$0xff] %v6240_v31  ;;  %8758 = vst [vmem:[#allocation77_spill] sm:$0xff] %v6243_v30  ;;  %v766_v55 = vmul.f32 %v6214_v22, %v6214_v22  ;;  %v625_v50 = vmul.f32 0.0026041667, %v538_v47  ;;  %v865_v23 = vadd.f32 %v864_v49, %v763_v41  ;;  %v767_v51 = vmul.f32 %v6217_v42, %v6217_v42 }
 0x12a   : > { %8759 = vst [vmem:[#allocation78_spill] sm:$0xff] %v6246_v39  ;;  %v768_v2 = vmul.f32 %v6220_v3, %v6220_v3  ;;  %v6259_v18 = vsub.f32 %v5915_v59, %v623_v45  ;;  %v6262_v37 = vsub.f32 %v5911_v57, %v624_v19  ;;  %v6265_v38 = vsub.f32 %v5913_v58, %v624_v19 }
 0x12b   : > { %v868_v29 = vadd.f32 %v765_v9, %v764_v48  ;;  %v6268_v27 = vsub.f32 %v5925_v7, %v624_v19  ;;  %v6271_v40 = vsub.f32 %v5917_v60, %v625_v50  ;;  %v6274_v41 = vsub.f32 %v5919_v61, %v625_v50  ;;  %866 = vadd.xlane.f32.xlu1 %v865_v23  ;;  %v542_v13 = vpop.xlane.xlu0 %541  ;;  %v8771_v23 = vld [vmem:[#allocation22_spill] sm:$0xff] }
 0x12c   : > { %8760 = vst [vmem:[#allocation79_spill] sm:$0xff] %v6259_v18  ;;  %8761 = vst [vmem:[#allocation80_spill] sm:$0xff] %v6262_v37  ;;  %v769_v59 = vmul.f32 %v6231_v5, %v6231_v5  ;;  %v626_v45 = vmul.f32 0.0026041667, %v542_v13  ;;  %v546_v25 = vpop.xlane.xlu1 %545  ;;  %v872_v58 = vadd.f32 %v768_v2, %v767_v51  ;;  %v770_v49 = vmul.f32 %v6234_v28, %v6234_v28 }
 0x12d   : > { %8762 = vst [vmem:[#allocation81_spill] sm:$0xff] %v6265_v38  ;;  %8763 = vst [vmem:[#allocation82_spill] sm:$0xff] %v6268_v27  ;;  %v869_v57 = vadd.f32 %v868_v29, %v766_v55  ;;  %v6281_v7 = vsub.f32 %v5933_v17, %v625_v50  ;;  %v627_v60 = vmul.f32 0.0026041667, %v546_v25  ;;  %v771_v61 = vmul.f32 %v6237_v35, %v6237_v35 }
 0x12e   : > { %8764 = vst [vmem:[#allocation83_spill] sm:$0xff] %v6271_v40  ;;  %8765 = vst [vmem:[#allocation84_spill] sm:$0xff] %v6274_v41  ;;  %v772_v19 = vmul.f32 %v6240_v31, %v6240_v31  ;;  %v6288_v47 = vsub.f32 %v5929_v12, %v626_v45  ;;  %v6291_v48 = vsub.f32 %v5931_v16, %v626_v45 }
 0x12f   : > { %8766 = vst [vmem:[#allocation85_spill] sm:$0xff] %v6281_v7  ;;  %870 = vadd.xlane.f32.xlu0 %v869_v57  ;;  %v873_v9 = vadd.f32 %v872_v58, %v769_v59  ;;  %v773_v55 = vmul.f32 %v6243_v30, %v6243_v30  ;;  %v6296_v17 = vsub.f32 %v5943_v33, %v626_v45  ;;  %v550_v29 = vpop.xlane.xlu0 %549  ;;  %v8773_v58 = vld [vmem:[#allocation25_spill] sm:$0xff] }
 0x130   : > { %8767 = vst [vmem:[#allocation86_spill] sm:$0xff] %v6288_v47  ;;  %8768 = vst [vmem:[#allocation87_spill] sm:$0xff] %v6291_v48  ;;  %v6299_v50 = vsub.f32 %v5935_v20, %v627_v60  ;;  %v6302_v51 = vsub.f32 %v8771_v23, %v627_v60  ;;  %v876_v2 = vadd.f32 %v771_v61, %v770_v49  ;;  %v628_v12 = vmul.f32 0.0026041667, %v550_v29  ;;  %v554_v13 = vpop.xlane.xlu1 %553  ;;  %v8775_v61 = vld [vmem:[#allocation23_spill] sm:$0xff]  ;;  %v8777_v23 = vld [vmem:[#allocation24_spill] sm:$0xff] }
 0x131   : > { %8769 = vst [vmem:[#allocation88_spill] sm:$0xff] %v6296_v17  ;;  %874 = vadd.xlane.f32.xlu1 %v873_v9  ;;  %v774_v16 = vmul.f32 %v6246_v39, %v6246_v39  ;;  %v775_v59 = vmul.f32 %v6259_v18, %v6259_v18  ;;  %v776_v33 = vmul.f32 %v6262_v37, %v6262_v37  ;;  %v629_v20 = vmul.f32 0.0026041667, %v554_v13  ;;  %v8779_v37 = vld [vmem:[#allocation28_spill] sm:$0xff] }
 0x132   : > { %8770 = vst [vmem:[#allocation89_spill] sm:$0xff] %v6299_v50  ;;  %8772 = vst [vmem:[#allocation22_spill] sm:$0xff] %v6302_v51  ;;  %v877_v57 = vadd.f32 %v876_v2, %v772_v19  ;;  %v777_v45 = vmul.f32 %v6265_v38, %v6265_v38  ;;  %v778_v25 = vmul.f32 %v6268_v27, %v6268_v27  ;;  %v8781_v2 = vld [vmem:[#allocation26_spill] sm:$0xff]  ;;  %v8783_v38 = vld [vmem:[#allocation27_spill] sm:$0xff] }
 0x133   : > { %v6315_v49 = vsub.f32 %v8773_v58, %v627_v60  ;;  %v6318_v9 = vsub.f32 %v8775_v61, %v628_v12  ;;  %v6321_v29 = vsub.f32 %v8777_v23, %v628_v12  ;;  %v880_v18 = vadd.f32 %v774_v16, %v773_v55  ;;  %v558_v60 = vpop.xlane.xlu0 %557 }
 0x134   : > { %878 = vadd.xlane.f32.xlu0 %v877_v57  ;;  %v6324_v19 = vsub.f32 %v8779_v37, %v628_v12  ;;  %v6327_v13 = vsub.f32 %v8781_v2, %v629_v20  ;;  %v6330_v39 = vsub.f32 %v8783_v38, %v629_v20  ;;  %v884_v27 = vadd.f32 %v777_v45, %v776_v33  ;;  %v562_v61 = vpop.xlane.xlu1 %561  ;;  %v8785_v57 = vld [vmem:[#allocation31_spill] sm:$0xff]  ;;  %v8789_v45 = vld [vmem:[#allocation30_spill] sm:$0xff] }
 0x135   : > { %8774 = vst [vmem:[#allocation25_spill] sm:$0xff] %v6315_v49  ;;  %8776 = vst [vmem:[#allocation23_spill] sm:$0xff] %v6318_v9  ;;  %v881_v58 = vadd.f32 %v880_v18, %v775_v59  ;;  %v630_v30 = vmul.f32 0.0026041667, %v558_v60  ;;  %v779_v23 = vmul.f32 %v6271_v40, %v6271_v40  ;;  %v780_v55 = vmul.f32 %v6274_v41, %v6274_v41  ;;  %v8787_v18 = vld [vmem:[#allocation29_spill] sm:$0xff] }
 0x136   : > { %8778 = vst [vmem:[#allocation24_spill] sm:$0xff] %v6321_v29  ;;  %8780 = vst [vmem:[#allocation28_spill] sm:$0xff] %v6324_v19  ;;  %v885_v16 = vadd.f32 %v884_v27, %v778_v25  ;;  %v631_v37 = vmul.f32 0.0026041667, %v562_v61  ;;  %v781_v12 = vmul.f32 %v6281_v7, %v6281_v7  ;;  %v782_v38 = vmul.f32 %v6288_v47, %v6288_v47  ;;  %v8791_v27 = vld [vmem:[#allocation34_spill] sm:$0xff]  ;;  %v8793_v61 = vld [vmem:[#allocation32_spill] sm:$0xff] }
 0x137   : > { %8782 = vst [vmem:[#allocation26_spill] sm:$0xff] %v6327_v13  ;;  %8784 = vst [vmem:[#allocation27_spill] sm:$0xff] %v6330_v39  ;;  %v6341_v33 = vsub.f32 %v8785_v57, %v629_v20  ;;  %882 = vadd.xlane.f32.xlu1 %v881_v58  ;;  %v6344_v59 = vsub.f32 %v8787_v18, %v630_v30  ;;  %v6347_v2 = vsub.f32 %v8789_v45, %v630_v30  ;;  %v8795_v41 = vld [vmem:[#allocation33_spill] sm:$0xff]  ;;  %v566_v58 = vpop.xlane.xlu0 %565 }
 0x138   : > { %v888_v60 = vadd.f32 %v780_v55, %v779_v23  ;;  %886 = vadd.xlane.f32.xlu0 %v885_v16  ;;  %v6350_v25 = vsub.f32 %v8791_v27, %v630_v30  ;;  %v6353_v7 = vsub.f32 %v8793_v61, %v631_v37  ;;  %v6356_v47 = vsub.f32 %v8795_v41, %v631_v37  ;;  %v570_v23 = vpop.xlane.xlu1 %569  ;;  %v8797_v55 = vld [vmem:[#allocation37_spill] sm:$0xff] }
 0x139   : > { %8786 = vst [vmem:[#allocation31_spill] sm:$0xff] %v6341_v33  ;;  %8788 = vst [vmem:[#allocation29_spill] sm:$0xff] %v6344_v59  ;;  %v783_v20 = vmul.f32 %v6291_v48, %v6291_v48  ;;  %v784_v18 = vmul.f32 %v6296_v17, %v6296_v17  ;;  %v632_v45 = vmul.f32 0.0026041667, %v566_v58  ;;  %v785_v30 = vmul.f32 %v6299_v50, %v6299_v50  ;;  %v8799_v48 = vld [vmem:[#allocation35_spill] sm:$0xff] }
 0x13a   : > { %8790 = vst [vmem:[#allocation30_spill] sm:$0xff] %v6347_v2  ;;  %8792 = vst [vmem:[#allocation34_spill] sm:$0xff] %v6350_v25  ;;  %v889_v57 = vadd.f32 %v888_v60, %v781_v12  ;;  %v6365_v16 = vsub.f32 %v8797_v55, %v631_v37  ;;  %v633_v61 = vmul.f32 0.0026041667, %v570_v23  ;;  %v786_v41 = vmul.f32 %v6302_v51, %v6302_v51  ;;  %v8801_v12 = vld [vmem:[#allocation36_spill] sm:$0xff] }
 0x13b   : > { %8794 = vst [vmem:[#allocation32_spill] sm:$0xff] %v6353_v7  ;;  %8796 = vst [vmem:[#allocation33_spill] sm:$0xff] %v6356_v47  ;;  %v892_v27 = vadd.f32 %v783_v20, %v782_v38  ;;  %v6370_v40 = vsub.f32 %v8799_v48, %v632_v45  ;;  %v6373_v60 = vsub.f32 %v8801_v12, %v632_v45  ;;  %v8803_v55 = vld [vmem:[#allocation40_spill] sm:$0xff]  ;;  %v8804_v20 = vld [vmem:[#allocation38_spill] sm:$0xff]  ;;  %v574_v48 = vpop.xlane.xlu0 %573 }
 0x13c   : > { %8798 = vst [vmem:[#allocation37_spill] sm:$0xff] %v6365_v16  ;;  %890 = vadd.xlane.f32.xlu1 %v889_v57  ;;  %v787_v58 = vmul.f32 %v6315_v49, %v6315_v49  ;;  %v788_v50 = vmul.f32 %v6318_v9, %v6318_v9  ;;  %v6380_v38 = vsub.f32 %v8803_v55, %v632_v45  ;;  %v8805_v57 = vld [vmem:[#allocation39_spill] sm:$0xff]  ;;  %v634_v31 = vmul.f32 0.0026041667, %v574_v48  ;;  %v578_v9 = vpop.xlane.xlu1 %577 }
 0x13d   : > { %8800 = vst [vmem:[#allocation35_spill] sm:$0xff] %v6370_v40  ;;  %8802 = vst [vmem:[#allocation36_spill] sm:$0xff] %v6373_v60  ;;  %v893_v37 = vadd.f32 %v892_v27, %v784_v18  ;;  %v6383_v23 = vsub.f32 %v8804_v20, %v633_v61  ;;  %v6386_v51 = vsub.f32 %v8805_v57, %v633_v61  ;;  %v8807_v18 = vld [vmem:[#allocation43_spill] sm:$0xff]  ;;  %v635_v27 = vmul.f32 0.0026041667, %v578_v9  ;;  %v8809_v57 = vld [vmem:[#allocation41_spill] sm:$0xff] }
 0x13e   : > { %v896_v17 = vadd.f32 %v786_v41, %v785_v30  ;;  %v789_v12 = vmul.f32 %v6321_v29, %v6321_v29  ;;  %v790_v49 = vmul.f32 %v6324_v19, %v6324_v19  ;;  %v6393_v45 = vsub.f32 %v8807_v18, %v633_v61  ;;  %v8811_v19 = vld [vmem:[#allocation42_spill] sm:$0xff]  ;;  %v8815_v9 = vld [vmem:[#allocation44_spill] sm:$0xff] }
 0x13f   : > { %8806 = vst [vmem:[#allocation40_spill] sm:$0xff] %v6386_v51  ;;  %894 = vadd.xlane.f32.xlu0 %v893_v37  ;;  %v791_v55 = vmul.f32 %v6327_v13, %v6327_v13  ;;  %v792_v20 = vmul.f32 %v6330_v39, %v6330_v39  ;;  %v6400_v29 = vsub.f32 %v8809_v57, %v634_v31  ;;  %v8813_v61 = vld [vmem:[#allocation46_spill] sm:$0xff]  ;;  %v8817_v13 = vld [vmem:[#allocation45_spill] sm:$0xff] }
 0x140   : > { %8808 = vst [vmem:[#allocation38_spill] sm:$0xff] %v6393_v45  ;;  %v897_v30 = vadd.f32 %v896_v17, %v787_v58  ;;  %v900_v41 = vadd.f32 %v789_v12, %v788_v50  ;;  %v793_v48 = vmul.f32 %v6341_v33, %v6341_v33  ;;  %v6405_v37 = vsub.f32 %v8811_v19, %v634_v31  ;;  %v582_v17 = vpop.xlane.xlu0 %581  ;;  %v586_v57 = vpop.xlane.xlu1 %585 }
 0x141   : > { %8810 = vst [vmem:[#allocation39_spill] sm:$0xff] %v6400_v29  ;;  %v6408_v18 = vsub.f32 %v8813_v61, %v634_v31  ;;  %v6411_v35 = vsub.f32 %v8815_v9, %v635_v27  ;;  %v6414_v28 = vsub.f32 %v8817_v13, %v635_v27  ;;  %v904_v58 = vadd.f32 %v792_v20, %v791_v55  ;;  %v8819_v20 = vld [vmem:[#allocation49_spill] sm:$0xff] }
 0x142   : > { %8812 = vst [vmem:[#allocation43_spill] sm:$0xff] %v6405_v37  ;;  %898 = vadd.xlane.f32.xlu1 %v897_v30  ;;  %v901_v50 = vadd.f32 %v900_v41, %v790_v49  ;;  %v794_v12 = vmul.f32 %v6344_v59, %v6344_v59  ;;  %v795_v19 = vmul.f32 %v6347_v2, %v6347_v2  ;;  %v636_v61 = vmul.f32 0.0026041667, %v582_v17  ;;  %v8821_v2 = vld [vmem:[#allocation47_spill] sm:$0xff]  ;;  %v8823_v17 = vld [vmem:[#allocation48_spill] sm:$0xff] }
 0x143   : > { %8814 = vst [vmem:[#allocation41_spill] sm:$0xff] %v6408_v18  ;;  %8816 = vst [vmem:[#allocation42_spill] sm:$0xff] %v6411_v35  ;;  %v796_v31 = vmul.f32 %v6350_v25, %v6350_v25  ;;  %v637_v9 = vmul.f32 0.0026041667, %v586_v57  ;;  %v797_v13 = vmul.f32 %v6353_v7, %v6353_v7  ;;  %v905_v33 = vadd.f32 %v904_v58, %v793_v48  ;;  %v8825_v25 = vld [vmem:[#allocation52_spill] sm:$0xff]  ;;  %v8826_v58 = vld [vmem:[#allocation50_spill] sm:$0xff] }
 0x144   : > { %8818 = vst [vmem:[#allocation46_spill] sm:$0xff] %v6414_v28  ;;  %902 = vadd.xlane.f32.xlu0 %v901_v50  ;;  %v908_v30 = vadd.f32 %v795_v19, %v794_v12  ;;  %v798_v49 = vmul.f32 %v6356_v47, %v6356_v47  ;;  %v799_v55 = vmul.f32 %v6365_v16, %v6365_v16  ;;  %v590_v48 = vpop.xlane.xlu0 %589  ;;  %v8827_v19 = vld [vmem:[#allocation51_spill] sm:$0xff] }
 0x145   : > { %v6429_v41 = vsub.f32 %v8819_v20, %v635_v27  ;;  %v6432_v59 = vsub.f32 %v8821_v2, %v636_v61  ;;  %v6435_v57 = vsub.f32 %v8823_v17, %v636_v61  ;;  %v6438_v7 = vsub.f32 %v8825_v25, %v636_v61  ;;  %v594_v20 = vpop.xlane.xlu1 %593 }
 0x146   : > { %906 = vadd.xlane.f32.xlu1 %v905_v33  ;;  %v909_v50 = vadd.f32 %v908_v30, %v796_v31  ;;  %v6441_v12 = vsub.f32 %v8826_v58, %v637_v9  ;;  %v6444_v16 = vsub.f32 %v8827_v19, %v637_v9  ;;  %v912_v27 = vadd.f32 %v798_v49, %v797_v13  ;;  %v8828_v49 = vld [vmem:[#allocation55_spill] sm:$0xff] }
 0x147   : > { %8820 = vst [vmem:[#allocation44_spill] sm:$0xff] %v6429_v41  ;;  %8822 = vst [vmem:[#allocation45_spill] sm:$0xff] %v6432_v59  ;;  %v800_v2 = vmul.f32 %v6370_v40, %v6370_v40  ;;  %v801_v17 = vmul.f32 %v6373_v60, %v6373_v60  ;;  %v802_v25 = vmul.f32 %v6380_v38, %v6380_v38  ;;  %v638_v61 = vmul.f32 0.0026041667, %v590_v48  ;;  %v8829_v40 = vld [vmem:[#allocation53_spill] sm:$0xff]  ;;  %v8830_v60 = vld [vmem:[#allocation54_spill] sm:$0xff] }
 0x148   : > { %8824 = vst [vmem:[#allocation49_spill] sm:$0xff] %v6435_v57  ;;  %910 = vadd.xlane.f32.xlu0 %v909_v50  ;;  %v913_v33 = vadd.f32 %v912_v27, %v799_v55  ;;  %v639_v31 = vmul.f32 0.0026041667, %v594_v20  ;;  %v803_v30 = vmul.f32 %v6383_v23, %v6383_v23  ;;  %v804_v13 = vmul.f32 %v6386_v51, %v6386_v51  ;;  %v598_v48 = vpop.xlane.xlu0 %597  ;;  %v8831_v50 = vld [vmem:[#allocation56_spill] sm:$0xff]  ;;  %v8832_v20 = vld [vmem:[#allocation57_spill] sm:$0xff] }
 0x149   : > { %v6457_v58 = vsub.f32 %v8828_v49, %v637_v9  ;;  %v916_v19 = vadd.f32 %v801_v17, %v800_v2  ;;  %v6460_v47 = vsub.f32 %v8829_v40, %v638_v61  ;;  %v6463_v39 = vsub.f32 %v8830_v60, %v638_v61  ;;  %v602_v2 = vpop.xlane.xlu1 %601 }
 0x14a   : > { %914 = vadd.xlane.f32.xlu1 %v913_v33  ;;  %v6466_v55 = vsub.f32 %v6051_v62, %v638_v61  ;;  %v6469_v27 = vsub.f32 %v8831_v50, %v639_v31  ;;  %v6472_v51 = vsub.f32 %v8832_v20, %v639_v31  ;;  %v805_v9 = vmul.f32 %v6393_v45, %v6393_v45 }
 0x14b   : > { %v917_v40 = vadd.f32 %v916_v19, %v802_v25  ;;  %v920_v17 = vadd.f32 %v804_v13, %v803_v30  ;;  %v806_v60 = vmul.f32 %v6400_v29, %v6400_v29  ;;  %v807_v33 = vmul.f32 %v6405_v37, %v6405_v37  ;;  %v8834_v19 = vld [vmem:[#allocation60_spill] sm:$0xff]  ;;  %v8835_v29 = vld [vmem:[#allocation58_spill] sm:$0xff] }
 0x14c   : > { %8833 = vst [vmem:[#allocation47_spill] sm:$0xff] %v6472_v51  ;;  %v808_v62 = vmul.f32 %v6408_v18, %v6408_v18  ;;  %v640_v61 = vmul.f32 0.0026041667, %v598_v48  ;;  %v641_v49 = vmul.f32 0.0026041667, %v602_v2  ;;  %v809_v50 = vmul.f32 %v6411_v35, %v6411_v35  ;;  %v606_v13 = vpop.xlane.xlu0 %605  ;;  %v8836_v48 = vld [vmem:[#allocation59_spill] sm:$0xff] }
 0x14d   : > { %918 = vadd.xlane.f32.xlu0 %v917_v40  ;;  %v921_v20 = vadd.f32 %v920_v17, %v805_v9  ;;  %v924_v45 = vadd.f32 %v807_v33, %v806_v60  ;;  %v810_v25 = vmul.f32 %v6414_v28, %v6414_v28  ;;  %v811_v30 = vmul.f32 %v6429_v41, %v6429_v41  ;;  %v610_v9 = vpop.xlane.xlu1 %609  ;;  %v8838_v60 = vld [vmem:[#allocation61_spill] sm:$0xff]  ;;  %v8840_v41 = vld [vmem:[#allocation62_spill] sm:$0xff] }
 0x14e   : > { %v6489_v37 = vsub.f32 %v8834_v19, %v639_v31  ;;  %v6492_v18 = vsub.f32 %v8835_v29, %v640_v61  ;;  %v6495_v2 = vsub.f32 %v8836_v48, %v640_v61  ;;  %v6498_v40 = vsub.f32 %v6069_v44, %v640_v61 }
 0x14f   : > { %922 = vadd.xlane.f32.xlu1 %v921_v20  ;;  %v925_v17 = vadd.f32 %v924_v45, %v808_v62  ;;  %v6501_v33 = vsub.f32 %v8838_v60, %v641_v49  ;;  %v6504_v28 = vsub.f32 %v8840_v41, %v641_v49  ;;  %v928_v31 = vadd.f32 %v810_v25, %v809_v50  ;;  %v8842_v50 = vld [vmem:[#allocation65_spill] sm:$0xff]  ;;  %v8844_v60 = vld [vmem:[#allocation63_spill] sm:$0xff] }
 0x150   : > { %8837 = vst [vmem:[#allocation48_spill] sm:$0xff] %v6498_v40  ;;  %v812_v29 = vmul.f32 %v6432_v59, %v6432_v59  ;;  %v813_v19 = vmul.f32 %v6435_v57, %v6435_v57  ;;  %v814_v44 = vmul.f32 %v6438_v7, %v6438_v7  ;;  %v642_v61 = vmul.f32 0.0026041667, %v606_v13  ;;  %v8846_v57 = vld [vmem:[#allocation64_spill] sm:$0xff] }
 0x151   : > { %8839 = vst [vmem:[#allocation52_spill] sm:$0xff] %v6501_v33  ;;  %8841 = vst [vmem:[#allocation50_spill] sm:$0xff] %v6504_v28  ;;  %926 = vadd.xlane.f32.xlu0 %v925_v17  ;;  %v929_v20 = vadd.f32 %v928_v31, %v811_v30  ;;  %v643_v45 = vmul.f32 0.0026041667, %v610_v9  ;;  %v815_v62 = vmul.f32 %v6441_v12, %v6441_v12  ;;  %v8850_v9 = vld [vmem:[#allocation66_spill] sm:$0xff] }
 0x152   : > { %v816_v41 = vmul.f32 %v6444_v16, %v6444_v16  ;;  %v6517_v25 = vsub.f32 %v8842_v50, %v641_v49  ;;  %v932_v48 = vadd.f32 %v813_v19, %v812_v29  ;;  %v6520_v59 = vsub.f32 %v8844_v60, %v642_v61 }
 0x153   : > { %v6523_v35 = vsub.f32 %v8846_v57, %v642_v61  ;;  %930 = vadd.xlane.f32.xlu1 %v929_v20  ;;  %v6526_v30 = vsub.f32 %v6087_v24, %v642_v61  ;;  %v6529_v13 = vsub.f32 %v6079_v43, %v643_v45  ;;  %v6532_v17 = vsub.f32 %v8850_v9, %v643_v45 }
 0x154   : > { %8843 = vst [vmem:[#allocation51_spill] sm:$0xff] %v6517_v25  ;;  %8845 = vst [vmem:[#allocation55_spill] sm:$0xff] %v6520_v59  ;;  %v817_v49 = vmul.f32 %v6457_v58, %v6457_v58  ;;  %v933_v31 = vadd.f32 %v932_v48, %v814_v44  ;;  %v936_v29 = vadd.f32 %v816_v41, %v815_v62 }
 0x155   : > { %8847 = vst [vmem:[#allocation53_spill] sm:$0xff] %v6523_v35  ;;  %8848 = vst [vmem:[#allocation54_spill] sm:$0xff] %v6526_v30  ;;  %v818_v19 = vmul.f32 %v6460_v47, %v6460_v47  ;;  %v819_v57 = vmul.f32 %v6463_v39, %v6463_v39  ;;  %v820_v24 = vmul.f32 %v6466_v55, %v6466_v55 }
 0x156   : > { %8849 = vst [vmem:[#allocation56_spill] sm:$0xff] %v6529_v13  ;;  %8851 = vst [vmem:[#allocation57_spill] sm:$0xff] %v6532_v17  ;;  %v821_v43 = vmul.f32 %v6469_v27, %v6469_v27  ;;  %v822_v61 = vmul.f32 %v6472_v51, %v6472_v51  ;;  %v823_v20 = vmul.f32 %v6489_v37, %v6489_v37  ;;  %934 = vadd.xlane.f32.xlu0 %v933_v31 }
 0x157   : > { %v937_v44 = vadd.f32 %v936_v29, %v817_v49  ;;  %v940_v62 = vadd.f32 %v819_v57, %v818_v19  ;;  %v824_v41 = vmul.f32 %v6492_v18, %v6492_v18  ;;  %v825_v50 = vmul.f32 %v6495_v2, %v6495_v2 }
 0x158   : > { %v944_v48 = vadd.f32 %v822_v61, %v821_v43  ;;  %v826_v60 = vmul.f32 %v6498_v40, %v6498_v40  ;;  %v827_v9 = vmul.f32 %v6501_v33, %v6501_v33  ;;  %v828_v51 = vmul.f32 %v6504_v28, %v6504_v28 }
 0x159   : > { %v6559_v31 = vsub.f32 %v6091_v36, %v643_v45  ;;  %938 = vadd.xlane.f32.xlu1 %v937_v44  ;;  %v941_v49 = vadd.f32 %v940_v62, %v820_v24  ;;  %v948_v29 = vadd.f32 %v825_v50, %v824_v41  ;;  %v830_v19 = vmul.f32 %v6520_v59, %v6520_v59 }
 0x15a   : > { %v945_v57 = vadd.f32 %v944_v48, %v823_v20  ;;  %v829_v43 = vmul.f32 %v6517_v25, %v6517_v25  ;;  %v952_v61 = vadd.f32 %v828_v51, %v827_v9  ;;  %v831_v33 = vmul.f32 %v6523_v35, %v6523_v35  ;;  %v8858_v25 = vld [vmem:[#allocation72_spill] sm:$0xff] }
 0x15b   : > { %8852 = vst [vmem:[#allocation60_spill] sm:$0xff] %v6559_v31  ;;  %942 = vadd.xlane.f32.xlu0 %v941_v49  ;;  %v949_v40 = vadd.f32 %v948_v29, %v826_v60  ;;  %v832_v36 = vmul.f32 %v6526_v30, %v6526_v30  ;;  %v833_v45 = vmul.f32 %v6529_v13, %v6529_v13  ;;  %v1158_v49 = vlaneseq }
 0x15c   : > { %v834_v24 = vmul.f32 %v6532_v17, %v6532_v17  ;;  %v956_v44 = vadd.f32 %v831_v33, %v830_v19  ;;  %v953_v20 = vadd.f32 %v952_v61, %v829_v43  ;;  %v835_v51 = vmul.f32 %v6559_v31, %v6559_v31 }
 0x15d   : > { %946 = vadd.xlane.f32.xlu1 %v945_v57  ;;  %v1159_v43 = vshrl.u32 %v1158_v49, 7 }
 0x15e   : > { %v957_v62 = vadd.f32 %v956_v44, %v832_v36  ;;  %v960_v41 = vadd.f32 %v834_v24, %v833_v45 }
 0x15f   : > { %950 = vadd.xlane.f32.xlu0 %v949_v40 }
 0x160   : > { %v961_v50 = vadd.f32 %v960_v41, %v835_v51  ;;  %v1164_v51 = vsub.s32 1, %v1159_v43  ;;  %v1168_v41 = vsub.s32 2, %v1159_v43 }
 0x161   : > { %954 = vadd.xlane.f32.xlu1 %v953_v20  ;;  %v1160_v20 = vsub.s32 0, %v1159_v43 }
 0x163   : > { %958 = vadd.xlane.f32.xlu0 %v957_v62  ;;  %v1156_v62 = vld [vmem:[#allocation8] sm:$0x7] }
 0x164   : > { %v6575_v49 = vrot.slane %v1156_v62, %v1160_v20 }
 0x165   : > { %962 = vadd.xlane.f32.xlu1 %v961_v50 }
 0x1a4   : > { %v839_v48 = vpop.xlane.xlu0 %838 }
 0x1a5   : > { %v964_v60 = vmul.f32 0.0026041667, %v839_v48 }
 0x1a7   : > { %v996_v9 = vadd.f32 1e-05, %v964_v60  ;;  %v1269_v60 = vld [vmem:[#allocation9] sm:$0x7] }
 0x1a8   : > { %v843_v29 = vpop.xlane.xlu1 %842  ;;  %v847_v13 = vpop.xlane.xlu0 %846 }
 0x1a9   : > { %4815 = vrsqrt.f32 %v996_v9  ;;  %v965_v33 = vmul.f32 0.0026041667, %v843_v29  ;;  %v966_v19 = vmul.f32 0.0026041667, %v847_v13 }
 0x1ab   : > { %v997_v40 = vadd.f32 1e-05, %v965_v33  ;;  %v998_v57 = vadd.f32 1e-05, %v966_v19  ;;  %v6577_v19 = vrot.slane %v1156_v62, %v1164_v51 }
 0x1ac   : > { %v851_v61 = vpop.xlane.xlu1 %850 }
 0x1ad   : > { %4817 = vrsqrt.f32 %v997_v40  ;;  %v967_v36 = vmul.f32 0.0026041667, %v851_v61  ;;  %v855_v45 = vpop.xlane.xlu0 %854  ;;  %v6579_v40 = vrot.slane %v1156_v62, %v1168_v41 }
 0x1ae   : > { %4819 = vrsqrt.f32 %v998_v57  ;;  %v968_v44 = vmul.f32 0.0026041667, %v855_v45  ;;  %v6581_v57 = vrot.slane %v1269_v60, %v1160_v20  ;;  %v6583_v45 = vrot.slane %v1269_v60, %v1164_v51 }
 0x1af   : > { %v999_v24 = vadd.f32 1e-05, %v967_v36 }
 0x1b0   : > { %v1000_v50 = vadd.f32 1e-05, %v968_v44  ;;  %v859_v48 = vpop.xlane.xlu1 %858 }
 0x1b1   : > { %4821 = vrsqrt.f32 %v999_v24  ;;  %v969_v9 = vmul.f32 0.0026041667, %v859_v48  ;;  %v863_v13 = vpop.xlane.xlu0 %862  ;;  %v6585_v24 = vrot.slane %v1269_v60, %v1168_v41 }
 0x1b2   : > { %4823 = vrsqrt.f32 %v1000_v50  ;;  %v970_v29 = vmul.f32 0.0026041667, %v863_v13  ;;  %v8853_v50 = vld [vmem:[#allocation67_spill] sm:$0xff]  ;;  %v8854_v13 = vld [vmem:[#allocation68_spill] sm:$0xff] }
 0x1b3   : > { %v1001_v33 = vadd.f32 1e-05, %v969_v9  ;;  %v8855_v9 = vld [vmem:[#allocation69_spill] sm:$0xff] }
 0x1b4   : > { %v1002_v61 = vadd.f32 1e-05, %v970_v29  ;;  %v867_v36 = vpop.xlane.xlu1 %866 }
 0x1b5   : > { %4825 = vrsqrt.f32 %v1001_v33  ;;  %v971_v44 = vmul.f32 0.0026041667, %v867_v36 }
 0x1b6   : > { %v4816_v43 = vpop.eup %4815  ;;  %4827 = vrsqrt.f32 %v1002_v61 }
 0x1b7   : > { %v1060_v48 = vmul.f32 %v4816_v43, %v8853_v50  ;;  %v1061_v31 = vmul.f32 %v4816_v43, %v8854_v13  ;;  %v1062_v17 = vmul.f32 %v4816_v43, %v8855_v9  ;;  %v1003_v62 = vadd.f32 1e-05, %v971_v44  ;;  %v8857_v13 = vld [vmem:[#allocation71_spill] sm:$0xff] }
 0x1b8   : > { %v871_v30 = vpop.xlane.xlu0 %870 }
 0x1b9   : > { %v1173_v20 = vmul.f32 %v6575_v49, %v1060_v48  ;;  %v1174_v29 = vmul.f32 %v6577_v19, %v1061_v31  ;;  %v1175_v51 = vmul.f32 %v6579_v40, %v1062_v17  ;;  %4829 = vrsqrt.f32 %v1003_v62  ;;  %v8856_v17 = vld [vmem:[#allocation70_spill] sm:$0xff] }
 0x1ba   : > { %v4818_v35 = vpop.eup %4817  ;;  %v6593_v41 = vmul.f32 0.0026041667, %v871_v30  ;;  %v6595_v60 = vpop.xlane.xlu1 %874 }
 0x1bb   : > { %v4820_v33 = vpop.eup %4819  ;;  %v1286_v36 = vadd.f32 %v6581_v57, %v1173_v20  ;;  %v1287_v43 = vadd.f32 %v6583_v45, %v1174_v29  ;;  %v1288_v61 = vadd.f32 %v6585_v24, %v1175_v51  ;;  %v1063_v44 = vmul.f32 %v4818_v35, %v6126_v26 }
 0x1bc   : > { %v1064_v50 = vmul.f32 %v4818_v35, %v6129_v32  ;;  %v1065_v31 = vmul.f32 %v4818_v35, %v6132_v56  ;;  %v1066_v48 = vmul.f32 %v4820_v33, %v8856_v17  ;;  %v1067_v30 = vmul.f32 %v4820_v33, %v8857_v13 }
 0x1bd   : > { %v4625_v9 = vpack.c.bf16 %v1287_v43, %v1286_v36  ;;  %v4626_v62 = vpack.c.bf16 %v1288_v61, %v1288_v61  ;;  %v1176_v59 = vmul.f32 %v6575_v49, %v1063_v44  ;;  %v1068_v20 = vmul.f32 %v4820_v33, %v8858_v25  ;;  %v6607_v28 = vpop.xlane.xlu0 %878 }
 0x1be   : > { %v4822_v29 = vpop.eup %4821  ;;  %v1177_v51 = vmul.f32 %v6577_v19, %v1064_v50  ;;  %v1178_v26 = vmul.f32 %v6579_v40, %v1065_v31  ;;  %v1179_v32 = vmul.f32 %v6575_v49, %v1066_v48  ;;  %v1180_v56 = vmul.f32 %v6577_v19, %v1067_v30 }
 0x1bf   : > { %1702 = vst [vmem:[#allocation2] sm:$0xff] %v4625_v9  ;;  %1703 = vst [vmem:[#allocation2 + $0x8] sm:$0xf] %v4626_v62  ;;  %v1289_v35 = vadd.f32 %v6581_v57, %v1176_v59  ;;  %v1181_v36 = vmul.f32 %v6579_v40, %v1068_v20  ;;  %v1069_v43 = vmul.f32 %v4822_v29, %v6135_v11  ;;  %v4824_v33 = vpop.eup %4823 }
 0x1c0   : > { %v1070_v25 = vmul.f32 %v4822_v29, %v6138_v21  ;;  %v1290_v61 = vadd.f32 %v6583_v45, %v1177_v51  ;;  %v1291_v44 = vadd.f32 %v6585_v24, %v1178_v26  ;;  %v1292_v50 = vadd.f32 %v6581_v57, %v1179_v32  ;;  %v6621_v17 = vpop.xlane.xlu1 %882 }
 0x1c1   : > { %v1293_v31 = vadd.f32 %v6583_v45, %v1180_v56  ;;  %v1294_v48 = vadd.f32 %v6585_v24, %v1181_v36  ;;  %v1071_v59 = vmul.f32 %v4822_v29, %v6141_v46  ;;  %v1182_v13 = vmul.f32 %v6575_v49, %v1069_v43  ;;  %v6627_v21 = vpop.xlane.xlu0 %886 }
 0x1c2   : > { %v1183_v11 = vmul.f32 %v6577_v19, %v1070_v25  ;;  %v4627_v30 = vpack.c.bf16 %v1290_v61, %v1289_v35  ;;  %v4628_v9 = vpack.c.bf16 %v1291_v44, %v1291_v44  ;;  %v1072_v20 = vmul.f32 %v4824_v33, %v6152_v0  ;;  %v4826_v51 = vpop.eup %4825 }
 0x1c3   : > { %v4629_v62 = vpack.c.bf16 %v1293_v31, %v1292_v50  ;;  %v4630_v26 = vpack.c.bf16 %v1294_v48, %v1294_v48  ;;  %v1184_v32 = vmul.f32 %v6579_v40, %v1071_v59  ;;  %v1295_v56 = vadd.f32 %v6581_v57, %v1182_v13  ;;  %v4828_v46 = vpop.eup %4827 }
 0x1c4   : > { %v1296_v36 = vadd.f32 %v6583_v45, %v1183_v11  ;;  %1704 = vst [vmem:[#allocation2 + $0xc] sm:$0xff] %v4627_v30  ;;  %1705 = vst [vmem:[#allocation2 + $0x14] sm:$0xf] %v4628_v9  ;;  %v1073_v29 = vmul.f32 %v4824_v33, %v6155_v53  ;;  %v1074_v35 = vmul.f32 %v4824_v33, %v6158_v1 }
 0x1c5   : > { %1706 = vst [vmem:[#allocation2 + $0x18] sm:$0xff] %v4629_v62  ;;  %v1185_v43 = vmul.f32 %v6575_v49, %v1072_v20  ;;  %v1075_v0 = vmul.f32 %v4826_v51, %v6161_v34  ;;  %v6637_v25 = vpop.xlane.xlu1 %890  ;;  %1707 = vst [vmem:[#allocation2 + $0x20] sm:$0xf] %v4630_v26  ;;  %v1297_v61 = vadd.f32 %v6585_v24, %v1184_v32  ;;  %v8859_v20 = vld [vmem:[#allocation73_spill] sm:$0xff] }
 0x1c6   : > { %v4631_v44 = vpack.c.bf16 %v1296_v36, %v1295_v56  ;;  %v1076_v50 = vmul.f32 %v4826_v51, %v6164_v52  ;;  %v1077_v31 = vmul.f32 %v4826_v51, %v6167_v4  ;;  %v1186_v48 = vmul.f32 %v6577_v19, %v1073_v29  ;;  %v4830_v59 = vpop.eup %4829 }
 0x1c7   : > { %v1187_v53 = vmul.f32 %v6579_v40, %v1074_v35  ;;  %v1298_v1 = vadd.f32 %v6581_v57, %v1185_v43  ;;  %v1188_v33 = vmul.f32 %v6575_v49, %v1075_v0  ;;  %v4632_v34 = vpack.c.bf16 %v1297_v61, %v1297_v61 }
 0x1c8   : > { %1708 = vst [vmem:[#allocation2 + $0x24] sm:$0xff] %v4631_v44  ;;  %v1189_v13 = vmul.f32 %v6577_v19, %v1076_v50  ;;  %v1190_v11 = vmul.f32 %v6579_v40, %v1077_v31  ;;  %v1078_v30 = vmul.f32 %v4828_v46, %v6180_v8  ;;  %v895_v52 = vpop.xlane.xlu0 %894  ;;  %v1299_v4 = vadd.f32 %v6583_v45, %v1186_v48 }
 0x1c9   : > { %v1300_v9 = vadd.f32 %v6585_v24, %v1187_v53  ;;  %v1301_v62 = vadd.f32 %v6581_v57, %v1188_v33  ;;  %v1079_v51 = vmul.f32 %v4828_v46, %v8859_v20  ;;  %1709 = vst [vmem:[#allocation2 + $0x2c] sm:$0xf] %v4632_v34  ;;  %v1080_v56 = vmul.f32 %v4828_v46, %v6186_v10 }
 0x1ca   : > { %v1302_v26 = vadd.f32 %v6583_v45, %v1189_v13  ;;  %v1303_v32 = vadd.f32 %v6585_v24, %v1190_v11  ;;  %v1191_v36 = vmul.f32 %v6575_v49, %v1078_v30  ;;  %v4633_v29 = vpack.c.bf16 %v1299_v4, %v1298_v1 }
 0x1cb   : > { %v4634_v8 = vpack.c.bf16 %v1300_v9, %v1300_v9  ;;  %v1192_v35 = vmul.f32 %v6577_v19, %v1079_v51  ;;  %v1081_v43 = vmul.f32 %v4830_v59, %v6189_v54  ;;  %v899_v0 = vpop.xlane.xlu1 %898  ;;  %v1193_v50 = vmul.f32 %v6579_v40, %v1080_v56 }
 0x1cc   : > { %v4635_v61 = vpack.c.bf16 %v1302_v26, %v1301_v62  ;;  %v4636_v44 = vpack.c.bf16 %v1303_v32, %v1303_v32  ;;  %v1304_v31 = vadd.f32 %v6581_v57, %v1191_v36  ;;  %1710 = vst [vmem:[#allocation2 + $0x30] sm:$0xff] %v4633_v29  ;;  %v1082_v10 = vmul.f32 %v4830_v59, %v6192_v14 }
 0x1cd   : > { %1711 = vst [vmem:[#allocation2 + $0x38] sm:$0xf] %v4634_v8  ;;  %v1305_v48 = vadd.f32 %v6583_v45, %v1192_v35  ;;  %v1083_v46 = vmul.f32 %v4830_v59, %v6195_v15  ;;  %v1194_v53 = vmul.f32 %v6575_v49, %v1081_v43  ;;  %v903_v1 = vpop.xlane.xlu0 %902  ;;  %v1306_v54 = vadd.f32 %v6585_v24, %v1193_v50 }
 0x1ce   : > { %1712 = vst [vmem:[#allocation2 + $0x3c] sm:$0xff] %v4635_v61  ;;  %1713 = vst [vmem:[#allocation2 + $0x44] sm:$0xf] %v4636_v44  ;;  %v1004_v33 = vadd.f32 1e-05, %v6593_v41  ;;  %v1195_v30 = vmul.f32 %v6577_v19, %v1082_v10 }
 0x1cf   : > { %v973_v34 = vmul.f32 0.0026041667, %v6595_v60  ;;  %v974_v13 = vmul.f32 0.0026041667, %v6607_v28  ;;  %v4637_v11 = vpack.c.bf16 %v1305_v48, %v1304_v31  ;;  %v1196_v14 = vmul.f32 %v6579_v40, %v1083_v46  ;;  %v907_v59 = vpop.xlane.xlu1 %906 }
 0x1d0   : > { %v1307_v15 = vadd.f32 %v6581_v57, %v1194_v53  ;;  %v4638_v4 = vpack.c.bf16 %v1306_v54, %v1306_v54  ;;  %4831 = vrsqrt.f32 %v1004_v33  ;;  %v1308_v20 = vadd.f32 %v6583_v45, %v1195_v30 }
 0x1d1   : > { %v1005_v9 = vadd.f32 1e-05, %v973_v34  ;;  %v1006_v62 = vadd.f32 1e-05, %v974_v13  ;;  %1714 = vst [vmem:[#allocation2 + $0x48] sm:$0xff] %v4637_v11  ;;  %v1309_v41 = vadd.f32 %v6585_v24, %v1196_v14  ;;  %v911_v51 = vpop.xlane.xlu0 %910 }
 0x1d2   : > { %v975_v60 = vmul.f32 0.0026041667, %v6621_v17  ;;  %v976_v28 = vmul.f32 0.0026041667, %v6627_v21  ;;  %1715 = vst [vmem:[#allocation2 + $0x50] sm:$0xf] %v4638_v4  ;;  %v4639_v36 = vpack.c.bf16 %v1308_v20, %v1307_v15 }
 0x1d3   : > { %4833 = vrsqrt.f32 %v1005_v9  ;;  %v977_v26 = vmul.f32 0.0026041667, %v6637_v25  ;;  %v978_v32 = vmul.f32 0.0026041667, %v895_v52  ;;  %v979_v56 = vmul.f32 0.0026041667, %v899_v0  ;;  %v915_v35 = vpop.xlane.xlu1 %914 }
 0x1d4   : > { %v4640_v29 = vpack.c.bf16 %v1309_v41, %v1309_v41  ;;  %4835 = vrsqrt.f32 %v1006_v62  ;;  %v1007_v8 = vadd.f32 1e-05, %v975_v60  ;;  %v1008_v43 = vadd.f32 1e-05, %v976_v28  ;;  %1716 = vst [vmem:[#allocation2 + $0x54] sm:$0xff] %v4639_v36  ;;  %v8861_v36 = vld [vmem:[#allocation75_spill] sm:$0xff] }
 0x1d5   : > { %v1009_v61 = vadd.f32 1e-05, %v977_v26  ;;  %v1010_v44 = vadd.f32 1e-05, %v978_v32  ;;  %v1011_v17 = vadd.f32 1e-05, %v979_v56 }
 0x1d6   : > { %1717 = vst [vmem:[#allocation2 + $0x5c] sm:$0xf] %v4640_v29  ;;  %4837 = vrsqrt.f32 %v1007_v8  ;;  %v980_v21 = vmul.f32 0.0026041667, %v903_v1  ;;  %v981_v50 = vmul.f32 0.0026041667, %v907_v59  ;;  %v919_v25 = vpop.xlane.xlu0 %918 }
 0x1d7   : > { %4839 = vrsqrt.f32 %v1008_v43  ;;  %v982_v31 = vmul.f32 0.0026041667, %v911_v51  ;;  %v983_v48 = vmul.f32 0.0026041667, %v915_v35  ;;  %v984_v10 = vmul.f32 0.0026041667, %v919_v25 }
 0x1d8   : > { %4841 = vrsqrt.f32 %v1009_v61  ;;  %v1012_v52 = vadd.f32 1e-05, %v980_v21  ;;  %v1013_v0 = vadd.f32 1e-05, %v981_v50  ;;  %v923_v53 = vpop.xlane.xlu1 %922  ;;  %v8860_v32 = vld [vmem:[#allocation74_spill] sm:$0xff]  ;;  %v8862_v21 = vld [vmem:[#allocation76_spill] sm:$0xff] }
 0x1d9   : > { %4843 = vrsqrt.f32 %v1010_v44  ;;  %v1014_v46 = vadd.f32 1e-05, %v982_v31  ;;  %v1015_v54 = vadd.f32 1e-05, %v983_v48  ;;  %v985_v33 = vmul.f32 0.0026041667, %v923_v53 }
 0x1da   : > { %4845 = vrsqrt.f32 %v1011_v17  ;;  %v1016_v34 = vadd.f32 1e-05, %v984_v10  ;;  %v927_v13 = vpop.xlane.xlu0 %926 }
 0x1db   : > { %4847 = vrsqrt.f32 %v1012_v52  ;;  %v1017_v1 = vadd.f32 1e-05, %v985_v33  ;;  %v986_v11 = vmul.f32 0.0026041667, %v927_v13 }
 0x1dc   : > { %4849 = vrsqrt.f32 %v1013_v0  ;;  %v931_v30 = vpop.xlane.xlu1 %930 }
 0x1dd   : > { %4851 = vrsqrt.f32 %v1014_v46  ;;  %v4832_v14 = vpop.eup %4831  ;;  %v987_v15 = vmul.f32 0.0026041667, %v931_v30  ;;  %v6680_v20 = vadd.f32 1e-05, %v986_v11  ;;  %v8864_v30 = vld [vmem:[#allocation78_spill] sm:$0xff] }
 0x1de   : > { %4853 = vrsqrt.f32 %v1015_v54  ;;  %v1084_v59 = vmul.f32 %v4832_v14, %v6208_v6  ;;  %v1085_v4 = vmul.f32 %v4832_v14, %v6211_v63  ;;  %v1086_v9 = vmul.f32 %v4832_v14, %v6214_v22 }
 0x1df   : > { %4855 = vrsqrt.f32 %v1016_v34  ;;  %v6682_v41 = vadd.f32 1e-05, %v987_v15  ;;  %v8865_v15 = vld [vmem:[#allocation79_spill] sm:$0xff] }
 0x1e0   : > { %v4834_v62 = vpop.eup %4833  ;;  %4857 = vrsqrt.f32 %v1017_v1  ;;  %v1197_v28 = vmul.f32 %v6575_v49, %v1084_v59  ;;  %v1198_v51 = vmul.f32 %v6577_v19, %v1085_v4  ;;  %v1199_v26 = vmul.f32 %v6579_v40, %v1086_v9  ;;  %v8863_v1 = vld [vmem:[#allocation77_spill] sm:$0xff] }
 0x1e1   : > { %v4836_v60 = vpop.eup %4835  ;;  %v1087_v6 = vmul.f32 %v4834_v62, %v6217_v42  ;;  %v1088_v63 = vmul.f32 %v4834_v62, %v6220_v3  ;;  %v1089_v22 = vmul.f32 %v4834_v62, %v6231_v5  ;;  %4859 = vrsqrt.f32 %v6680_v20 }
 0x1e2   : > { %v1090_v56 = vmul.f32 %v4836_v60, %v8860_v32  ;;  %v1091_v29 = vmul.f32 %v4836_v60, %v8861_v36  ;;  %v1310_v35 = vadd.f32 %v6581_v57, %v1197_v28  ;;  %v1311_v43 = vadd.f32 %v6583_v45, %v1198_v51  ;;  %v8866_v28 = vld [vmem:[#allocation80_spill] sm:$0xff] }
 0x1e3   : > { %v4838_v8 = vpop.eup %4837  ;;  %v1312_v61 = vadd.f32 %v6585_v24, %v1199_v26  ;;  %v1200_v44 = vmul.f32 %v6575_v49, %v1087_v6  ;;  %v1201_v42 = vmul.f32 %v6577_v19, %v1088_v63  ;;  %v1202_v3 = vmul.f32 %v6579_v40, %v1089_v22 }
 0x1e4   : > { %v4840_v17 = vpop.eup %4839  ;;  %v1092_v5 = vmul.f32 %v4836_v60, %v8862_v21  ;;  %v1203_v50 = vmul.f32 %v6575_v49, %v1090_v56  ;;  %v4641_v48 = vpack.c.bf16 %v1311_v43, %v1310_v35  ;;  %v1204_v0 = vmul.f32 %v6577_v19, %v1091_v29  ;;  %v8867_v29 = vld [vmem:[#allocation81_spill] sm:$0xff]  ;;  %v8868_v35 = vld [vmem:[#allocation82_spill] sm:$0xff] }
 0x1e5   : > { %v4842_v31 = vpop.eup %4841  ;;  %v4642_v25 = vpack.c.bf16 %v1312_v61, %v1312_v61  ;;  %v1313_v52 = vadd.f32 %v6581_v57, %v1200_v44  ;;  %v1314_v46 = vadd.f32 %v6583_v45, %v1201_v42  ;;  %v1315_v53 = vadd.f32 %v6585_v24, %v1202_v3 }
 0x1e6   : > { %v4844_v10 = vpop.eup %4843  ;;  %v1205_v54 = vmul.f32 %v6579_v40, %v1092_v5  ;;  %v1316_v33 = vadd.f32 %v6581_v57, %v1203_v50  ;;  %1718 = vst [vmem:[#allocation2 + $0x60] sm:$0xff] %v4641_v48  ;;  %v1317_v13 = vadd.f32 %v6583_v45, %v1204_v0  ;;  %v1093_v11 = vmul.f32 %v4838_v8, %v8863_v1  ;;  %v8869_v5 = vld [vmem:[#allocation83_spill] sm:$0xff]  ;;  %v8870_v0 = vld [vmem:[#allocation84_spill] sm:$0xff] }
 0x1e7   : > { %v6706_v34 = vpop.eup %4845  ;;  %1719 = vst [vmem:[#allocation2 + $0x68] sm:$0xf] %v4642_v25  ;;  %v1094_v14 = vmul.f32 %v4838_v8, %v8864_v30  ;;  %v1095_v59 = vmul.f32 %v4838_v8, %v8865_v15  ;;  %v4643_v9 = vpack.c.bf16 %v1314_v46, %v1313_v52  ;;  %v4644_v62 = vpack.c.bf16 %v1315_v53, %v1315_v53 }
 0x1e8   : > { %v6712_v4 = vpop.eup %4847  ;;  %v1318_v60 = vadd.f32 %v6585_v24, %v1205_v54  ;;  %v1096_v51 = vmul.f32 %v4840_v17, %v8866_v28  ;;  %v4645_v6 = vpack.c.bf16 %v1317_v13, %v1316_v33  ;;  %v1206_v63 = vmul.f32 %v6575_v49, %v1093_v11  ;;  %v8871_v13 = vld [vmem:[#allocation85_spill] sm:$0xff]  ;;  %v8873_v28 = vld [vmem:[#allocation87_spill] sm:$0xff] }
 0x1e9   : > { %v6716_v26 = vpop.eup %4849  ;;  %v1207_v22 = vmul.f32 %v6577_v19, %v1094_v14  ;;  %v1208_v32 = vmul.f32 %v6579_v40, %v1095_v59  ;;  %1720 = vst [vmem:[#allocation2 + $0x6c] sm:$0xff] %v4643_v9  ;;  %1721 = vst [vmem:[#allocation2 + $0x74] sm:$0xf] %v4644_v62  ;;  %v1097_v8 = vmul.f32 %v4840_v17, %v8867_v29  ;;  %v8872_v59 = vld [vmem:[#allocation86_spill] sm:$0xff]  ;;  %4861 = vrsqrt.f32 %v6682_v41 }
 0x1ea   : > { %v6721_v56 = vpop.eup %4851  ;;  %v4646_v36 = vpack.c.bf16 %v1318_v60, %v1318_v60  ;;  %v1098_v43 = vmul.f32 %v4840_v17, %v8868_v35  ;;  %v1209_v61 = vmul.f32 %v6575_v49, %v1096_v51  ;;  %1722 = vst [vmem:[#allocation2 + $0x78] sm:$0xff] %v4645_v6  ;;  %v1319_v42 = vadd.f32 %v6581_v57, %v1206_v63  ;;  %v8874_v6 = vld [vmem:[#allocation88_spill] sm:$0xff] }
 0x1eb   : > { %v6726_v44 = vpop.eup %4853  ;;  %v1320_v3 = vadd.f32 %v6583_v45, %v1207_v22  ;;  %v1321_v21 = vadd.f32 %v6585_v24, %v1208_v32  ;;  %v1099_v50 = vmul.f32 %v4842_v31, %v8869_v5  ;;  %v1210_v25 = vmul.f32 %v6577_v19, %v1097_v8  ;;  %v8877_v5 = vld [vmem:[#allocation25_spill] sm:$0xff] }
 0x1ec   : > { %v6732_v48 = vpop.eup %4855  ;;  %1723 = vst [vmem:[#allocation2 + $0x80] sm:$0xf] %v4646_v36  ;;  %v1211_v17 = vmul.f32 %v6579_v40, %v1098_v43  ;;  %v1322_v52 = vadd.f32 %v6581_v57, %v1209_v61  ;;  %v1100_v46 = vmul.f32 %v4842_v31, %v8870_v0  ;;  %v1101_v1 = vmul.f32 %v4842_v31, %v8871_v13  ;;  %v8875_v43 = vld [vmem:[#allocation89_spill] sm:$0xff] }
 0x1ed   : > { %v6738_v53 = vpop.eup %4857  ;;  %v4647_v54 = vpack.c.bf16 %v1320_v3, %v1319_v42  ;;  %v4648_v33 = vpack.c.bf16 %v1321_v21, %v1321_v21  ;;  %v1212_v11 = vmul.f32 %v6575_v49, %v1099_v50  ;;  %v1323_v30 = vadd.f32 %v6583_v45, %v1210_v25  ;;  %v8876_v3 = vld [vmem:[#allocation22_spill] sm:$0xff] }
 0x1ee   : > { %v1324_v14 = vadd.f32 %v6585_v24, %v1211_v17  ;;  %v1213_v15 = vmul.f32 %v6577_v19, %v1100_v46  ;;  %v1102_v9 = vmul.f32 %v4844_v10, %v8872_v59  ;;  %v1214_v62 = vmul.f32 %v6579_v40, %v1101_v1  ;;  %v8879_v1 = vld [vmem:[#allocation24_spill] sm:$0xff] }
 0x1ef   : > { %1724 = vst [vmem:[#allocation2 + $0x84] sm:$0xff] %v4647_v54  ;;  %1725 = vst [vmem:[#allocation2 + $0x8c] sm:$0xf] %v4648_v33  ;;  %v1325_v60 = vadd.f32 %v6581_v57, %v1212_v11  ;;  %v1103_v51 = vmul.f32 %v4844_v10, %v8873_v28  ;;  %v1104_v31 = vmul.f32 %v4844_v10, %v8874_v6  ;;  %v8878_v33 = vld [vmem:[#allocation23_spill] sm:$0xff]  ;;  %v8881_v6 = vld [vmem:[#allocation26_spill] sm:$0xff] }
 0x1f0   : > { %v4649_v63 = vpack.c.bf16 %v1323_v30, %v1322_v52  ;;  %v4650_v22 = vpack.c.bf16 %v1324_v14, %v1324_v14  ;;  %v1326_v32 = vadd.f32 %v6583_v45, %v1213_v15  ;;  %v1215_v36 = vmul.f32 %v6575_v49, %v1102_v9  ;;  %v8880_v15 = vld [vmem:[#allocation28_spill] sm:$0xff] }
 0x1f1   : > { %v1327_v29 = vadd.f32 %v6585_v24, %v1214_v62  ;;  %v1216_v8 = vmul.f32 %v6577_v19, %v1103_v51  ;;  %v1217_v35 = vmul.f32 %v6579_v40, %v1104_v31  ;;  %v1105_v61 = vmul.f32 %v6706_v34, %v8875_v43 }
 0x1f2   : > { %1726 = vst [vmem:[#allocation2 + $0x90] sm:$0xff] %v4649_v63  ;;  %1727 = vst [vmem:[#allocation2 + $0x98] sm:$0xf] %v4650_v22  ;;  %v4651_v42 = vpack.c.bf16 %v1326_v32, %v1325_v60  ;;  %v1328_v10 = vadd.f32 %v6581_v57, %v1215_v36  ;;  %v1106_v21 = vmul.f32 %v6706_v34, %v8876_v3  ;;  %v8882_v63 = vld [vmem:[#allocation27_spill] sm:$0xff]  ;;  %v6785_v36 = vpop.xlane.xlu0 %934 }
 0x1f3   : > { %v1107_v50 = vmul.f32 %v6706_v34, %v8877_v5  ;;  %v4652_v25 = vpack.c.bf16 %v1327_v29, %v1327_v29  ;;  %v1329_v17 = vadd.f32 %v6583_v45, %v1216_v8  ;;  %v1330_v52 = vadd.f32 %v6585_v24, %v1217_v35  ;;  %v8883_v32 = vld [vmem:[#allocation31_spill] sm:$0xff]  ;;  %v8884_v5 = vld [vmem:[#allocation29_spill] sm:$0xff] }
 0x1f4   : > { %v1218_v0 = vmul.f32 %v6575_v49, %v1105_v61  ;;  %1728 = vst [vmem:[#allocation2 + $0x9c] sm:$0xff] %v4651_v42  ;;  %v1219_v46 = vmul.f32 %v6577_v19, %v1106_v21  ;;  %v1108_v13 = vmul.f32 %v6712_v4, %v8878_v33  ;;  %v1109_v11 = vmul.f32 %v6712_v4, %v8879_v1  ;;  %v939_v21 = vpop.xlane.xlu1 %938 }
 0x1f5   : > { %v1220_v54 = vmul.f32 %v6579_v40, %v1107_v50  ;;  %1729 = vst [vmem:[#allocation2 + $0xa4] sm:$0xf] %v4652_v25  ;;  %v4653_v34 = vpack.c.bf16 %v1329_v17, %v1328_v10  ;;  %v4654_v30 = vpack.c.bf16 %v1330_v52, %v1330_v52  ;;  %v1110_v59 = vmul.f32 %v6712_v4, %v8880_v15  ;;  %v8885_v25 = vld [vmem:[#allocation30_spill] sm:$0xff] }
 0x1f6   : > { %v1331_v14 = vadd.f32 %v6581_v57, %v1218_v0  ;;  %v1332_v9 = vadd.f32 %v6583_v45, %v1219_v46  ;;  %v1221_v60 = vmul.f32 %v6575_v49, %v1108_v13  ;;  %v1222_v28 = vmul.f32 %v6577_v19, %v1109_v11  ;;  %v8886_v52 = vld [vmem:[#allocation34_spill] sm:$0xff] }
 0x1f7   : > { %v1333_v62 = vadd.f32 %v6585_v24, %v1220_v54  ;;  %1730 = vst [vmem:[#allocation2 + $0xa8] sm:$0xff] %v4653_v34  ;;  %1731 = vst [vmem:[#allocation2 + $0xb0] sm:$0xf] %v4654_v30  ;;  %v1223_v51 = vmul.f32 %v6579_v40, %v1110_v59  ;;  %v1111_v31 = vmul.f32 %v6716_v26, %v8881_v6  ;;  %v8887_v30 = vld [vmem:[#allocation32_spill] sm:$0xff]  ;;  %v8888_v59 = vld [vmem:[#allocation33_spill] sm:$0xff] }
 0x1f8   : > { %v1112_v22 = vmul.f32 %v6716_v26, %v8882_v63  ;;  %v1113_v4 = vmul.f32 %v6716_v26, %v8883_v32  ;;  %v4655_v29 = vpack.c.bf16 %v1332_v9, %v1331_v14  ;;  %v1334_v35 = vadd.f32 %v6581_v57, %v1221_v60 }
 0x1f9   : > { %v4656_v8 = vpack.c.bf16 %v1333_v62, %v1333_v62  ;;  %v1335_v43 = vadd.f32 %v6583_v45, %v1222_v28  ;;  %v1336_v61 = vadd.f32 %v6585_v24, %v1223_v51  ;;  %v1224_v42 = vmul.f32 %v6575_v49, %v1111_v31  ;;  %v8889_v62 = vld [vmem:[#allocation37_spill] sm:$0xff]  ;;  %v943_v28 = vpop.xlane.xlu0 %942 }
 0x1fa   : > { %v1225_v10 = vmul.f32 %v6577_v19, %v1112_v22  ;;  %v1226_v3 = vmul.f32 %v6579_v40, %v1113_v4  ;;  %1732 = vst [vmem:[#allocation2 + $0xb4] sm:$0xff] %v4655_v29  ;;  %v1114_v50 = vmul.f32 %v6721_v56, %v8884_v5  ;;  %v1115_v17 = vmul.f32 %v6721_v56, %v8885_v25  ;;  %v8890_v4 = vld [vmem:[#allocation35_spill] sm:$0xff] }
 0x1fb   : > { %1733 = vst [vmem:[#allocation2 + $0xbc] sm:$0xf] %v4656_v8  ;;  %v4657_v26 = vpack.c.bf16 %v1335_v43, %v1334_v35  ;;  %v1116_v0 = vmul.f32 %v6721_v56, %v8886_v52  ;;  %v4658_v46 = vpack.c.bf16 %v1336_v61, %v1336_v61  ;;  %v1337_v54 = vadd.f32 %v6581_v57, %v1224_v42  ;;  %v8891_v8 = vld [vmem:[#allocation36_spill] sm:$0xff]  ;;  %v947_v35 = vpop.xlane.xlu1 %946 }
 0x1fc   : > { %v1338_v33 = vadd.f32 %v6583_v45, %v1225_v10  ;;  %v1339_v13 = vadd.f32 %v6585_v24, %v1226_v3  ;;  %v1227_v1 = vmul.f32 %v6575_v49, %v1114_v50  ;;  %v1228_v11 = vmul.f32 %v6577_v19, %v1115_v17  ;;  %v8892_v52 = vld [vmem:[#allocation40_spill] sm:$0xff] }
 0x1fd   : > { %1734 = vst [vmem:[#allocation2 + $0xc0] sm:$0xff] %v4657_v26  ;;  %v1229_v34 = vmul.f32 %v6579_v40, %v1116_v0  ;;  %v1117_v14 = vmul.f32 %v6726_v44, %v8887_v30  ;;  %1735 = vst [vmem:[#allocation2 + $0xc8] sm:$0xf] %v4658_v46  ;;  %v1118_v9 = vmul.f32 %v6726_v44, %v8888_v59  ;;  %v8893_v46 = vld [vmem:[#allocation38_spill] sm:$0xff] }
 0x1fe   : > { %v4659_v15 = vpack.c.bf16 %v1338_v33, %v1337_v54  ;;  %v4660_v56 = vpack.c.bf16 %v1339_v13, %v1339_v13  ;;  %v1119_v60 = vmul.f32 %v6726_v44, %v8889_v62  ;;  %v1340_v51 = vadd.f32 %v6581_v57, %v1227_v1  ;;  %v951_v1 = vpop.xlane.xlu0 %950 }
 0x1ff   : > { %v1341_v6 = vadd.f32 %v6583_v45, %v1228_v11  ;;  %v1342_v31 = vadd.f32 %v6585_v24, %v1229_v34  ;;  %v1230_v63 = vmul.f32 %v6575_v49, %v1117_v14  ;;  %v1231_v22 = vmul.f32 %v6577_v19, %v1118_v9 }
 0x200   : > { %1736 = vst [vmem:[#allocation2 + $0xcc] sm:$0xff] %v4659_v15  ;;  %1737 = vst [vmem:[#allocation2 + $0xd4] sm:$0xf] %v4660_v56  ;;  %v1232_v32 = vmul.f32 %v6579_v40, %v1119_v60  ;;  %v1120_v29 = vmul.f32 %v6732_v48, %v8890_v4  ;;  %v1121_v44 = vmul.f32 %v6732_v48, %v8891_v8  ;;  %v989_v15 = vmul.f32 0.0026041667, %v939_v21  ;;  %v955_v56 = vpop.xlane.xlu1 %954 }
 0x201   : > { %v4661_v43 = vpack.c.bf16 %v1341_v6, %v1340_v51  ;;  %v4662_v61 = vpack.c.bf16 %v1342_v31, %v1342_v31  ;;  %v1343_v42 = vadd.f32 %v6581_v57, %v1230_v63  ;;  %v1122_v10 = vmul.f32 %v6732_v48, %v6380_v38 }
 0x202   : > { %v1344_v3 = vadd.f32 %v6583_v45, %v1231_v22  ;;  %v1345_v26 = vadd.f32 %v6585_v24, %v1232_v32  ;;  %v1233_v5 = vmul.f32 %v6575_v49, %v1120_v29  ;;  %v1234_v50 = vmul.f32 %v6577_v19, %v1121_v44 }
 0x203   : > { %1738 = vst [vmem:[#allocation2 + $0xd8] sm:$0xff] %v4661_v43  ;;  %1739 = vst [vmem:[#allocation2 + $0xe0] sm:$0xf] %v4662_v61  ;;  %v1235_v25 = vmul.f32 %v6579_v40, %v1122_v10  ;;  %v1123_v17 = vmul.f32 %v6738_v53, %v6383_v23  ;;  %v1124_v0 = vmul.f32 %v6738_v53, %v8892_v52  ;;  %v1021_v6 = vadd.f32 1e-05, %v989_v15  ;;  %v8894_v10 = vld [vmem:[#allocation39_spill] sm:$0xff] }
 0x204   : > { %v1125_v38 = vmul.f32 %v6738_v53, %v8893_v46  ;;  %v4663_v48 = vpack.c.bf16 %v1344_v3, %v1343_v42  ;;  %v4664_v54 = vpack.c.bf16 %v1345_v26, %v1345_v26  ;;  %v1346_v33 = vadd.f32 %v6581_v57, %v1233_v5  ;;  %v963_v29 = vpop.xlane.xlu1 %962  ;;  %v4860_v42 = vpop.eup %4859  ;;  %v8895_v26 = vld [vmem:[#allocation43_spill] sm:$0xff] }
 0x205   : > { %v1347_v13 = vadd.f32 %v6583_v45, %v1234_v50  ;;  %v1348_v11 = vadd.f32 %v6585_v24, %v1235_v25  ;;  %v1236_v34 = vmul.f32 %v6575_v49, %v1123_v17  ;;  %v1237_v30 = vmul.f32 %v6577_v19, %v1124_v0  ;;  %v8896_v50 = vld [vmem:[#allocation41_spill] sm:$0xff]  ;;  %v4862_v17 = vpop.eup %4861 }
 0x206   : > { %v1238_v23 = vmul.f32 %v6579_v40, %v1125_v38  ;;  %1740 = vst [vmem:[#allocation2 + $0xe4] sm:$0xff] %v4663_v48  ;;  %1741 = vst [vmem:[#allocation2 + $0xec] sm:$0xf] %v4664_v54  ;;  %v988_v53 = vmul.f32 0.0026041667, %v6785_v36  ;;  %v959_v36 = vpop.xlane.xlu0 %958  ;;  %v1126_v3 = vmul.f32 %v4860_v42, %v8894_v10  ;;  %v1127_v5 = vmul.f32 %v4860_v42, %v8895_v26  ;;  %v8897_v38 = vld [vmem:[#allocation42_spill] sm:$0xff] }
 0x207   : > { %v4665_v14 = vpack.c.bf16 %v1347_v13, %v1346_v33  ;;  %v4666_v59 = vpack.c.bf16 %v1348_v11, %v1348_v11  ;;  %v1349_v9 = vadd.f32 %v6581_v57, %v1236_v34  ;;  %v1350_v62 = vadd.f32 %v6583_v45, %v1237_v30  ;;  %v8898_v33 = vld [vmem:[#allocation46_spill] sm:$0xff] }
 0x208   : > { %v1351_v60 = vadd.f32 %v6585_v24, %v1238_v23  ;;  %v1020_v51 = vadd.f32 1e-05, %v988_v53  ;;  %v990_v31 = vmul.f32 0.0026041667, %v943_v28  ;;  %v991_v22 = vmul.f32 0.0026041667, %v947_v35 }
 0x209   : > { %1742 = vst [vmem:[#allocation2 + $0xf0] sm:$0xff] %v4665_v14  ;;  %1743 = vst [vmem:[#allocation2 + $0xf8] sm:$0xf] %v4666_v59  ;;  %v4667_v63 = vpack.c.bf16 %v1350_v62, %v1349_v9  ;;  %v992_v32 = vmul.f32 0.0026041667, %v951_v1  ;;  %v1128_v25 = vmul.f32 %v4860_v42, %v8896_v50  ;;  %v1239_v52 = vmul.f32 %v6575_v49, %v1126_v3  ;;  %v8899_v1 = vld [vmem:[#allocation44_spill] sm:$0xff] }
 0x20a   : > { %v4668_v20 = vpack.c.bf16 %v1351_v60, %v1351_v60  ;;  %4863 = vrsqrt.f32 %v1020_v51  ;;  %v1022_v21 = vadd.f32 1e-05, %v990_v31  ;;  %v993_v4 = vmul.f32 0.0026041667, %v955_v56  ;;  %v8900_v59 = vld [vmem:[#allocation45_spill] sm:$0xff] }
 0x20b   : > { %1744 = vst [vmem:[#allocation2 + $0xfc] sm:$0xff] %v4667_v63  ;;  %4865 = vrsqrt.f32 %v1021_v6  ;;  %v1023_v8 = vadd.f32 1e-05, %v991_v22  ;;  %v994_v44 = vmul.f32 0.0026041667, %v959_v36  ;;  %v1240_v0 = vmul.f32 %v6577_v19, %v1127_v5  ;;  %v8901_v62 = vld [vmem:[#allocation49_spill] sm:$0xff] }
 0x20c   : > { %1745 = vst [vmem:[#allocation2 + $0x104] sm:$0xf] %v4668_v20  ;;  %4867 = vrsqrt.f32 %v1022_v21  ;;  %v1024_v41 = vadd.f32 1e-05, %v992_v32  ;;  %v995_v43 = vmul.f32 0.0026041667, %v963_v29  ;;  %v1241_v46 = vmul.f32 %v6579_v40, %v1128_v25 }
 0x20d   : > { %v1025_v61 = vadd.f32 1e-05, %v993_v4  ;;  %4869 = vrsqrt.f32 %v1023_v8  ;;  %v1026_v28 = vadd.f32 1e-05, %v994_v44  ;;  %v1129_v48 = vmul.f32 %v4862_v17, %v8897_v38 }
 0x20e   : > { %4871 = vrsqrt.f32 %v1024_v41  ;;  %v1027_v35 = vadd.f32 1e-05, %v995_v43  ;;  %v1130_v13 = vmul.f32 %v4862_v17, %v8898_v33  ;;  %v1131_v11 = vmul.f32 %v4862_v17, %v8899_v1  ;;  %v8902_v33 = vld [vmem:[#allocation47_spill] sm:$0xff] }
 0x20f   : > { %4873 = vrsqrt.f32 %v1025_v61  ;;  %v1352_v34 = vadd.f32 %v6581_v57, %v1239_v52  ;;  %v1353_v30 = vadd.f32 %v6583_v45, %v1240_v0  ;;  %v1354_v23 = vadd.f32 %v6585_v24, %v1241_v46 }
 0x210   : > { %4875 = vrsqrt.f32 %v1026_v28  ;;  %v1242_v14 = vmul.f32 %v6575_v49, %v1129_v48  ;;  %v1243_v15 = vmul.f32 %v6577_v19, %v1130_v13  ;;  %v1244_v56 = vmul.f32 %v6579_v40, %v1131_v11 }
 0x211   : > { %4877 = vrsqrt.f32 %v1027_v35  ;;  %v4669_v51 = vpack.c.bf16 %v1353_v30, %v1352_v34  ;;  %v4670_v6 = vpack.c.bf16 %v1354_v23, %v1354_v23 }
 0x212   : > { %v1355_v31 = vadd.f32 %v6581_v57, %v1242_v14  ;;  %v1356_v20 = vadd.f32 %v6583_v45, %v1243_v15  ;;  %v1357_v22 = vadd.f32 %v6585_v24, %v1244_v56 }
 0x213   : > { %1746 = vst [vmem:[#allocation2 + $0x108] sm:$0xff] %v4669_v51  ;;  %1747 = vst [vmem:[#allocation2 + $0x110] sm:$0xf] %v4670_v6 }
 0x214   : > { %v4672_v41 = vpack.c.bf16 %v1357_v22, %v1357_v22  ;;  %v8905_v22 = vld [vmem:[#allocation50_spill] sm:$0xff] }
 0x216   : > { %1749 = vst [vmem:[#allocation2 + $0x11c] sm:$0xf] %v4672_v41 }
 0x217   : > { %v4864_v54 = vpop.eup %4863 }
 0x218   : > { %v4866_v53 = vpop.eup %4865  ;;  %v1132_v9 = vmul.f32 %v4864_v54, %v8900_v59  ;;  %v1133_v60 = vmul.f32 %v4864_v54, %v8901_v62  ;;  %v1134_v63 = vmul.f32 %v4864_v54, %v6438_v7  ;;  %v4671_v7 = vpack.c.bf16 %v1356_v20, %v1355_v31  ;;  %v8903_v62 = vld [vmem:[#allocation48_spill] sm:$0xff] }
 0x219   : > { %v4868_v32 = vpop.eup %4867  ;;  %v1135_v29 = vmul.f32 %v4866_v53, %v6441_v12  ;;  %v1136_v8 = vmul.f32 %v4866_v53, %v6444_v16  ;;  %v1137_v44 = vmul.f32 %v4866_v53, %v6457_v58  ;;  %v8904_v20 = vld [vmem:[#allocation52_spill] sm:$0xff] }
 0x21a   : > { %v1245_v36 = vmul.f32 %v6575_v49, %v1132_v9  ;;  %v1246_v21 = vmul.f32 %v6577_v19, %v1133_v60  ;;  %v1247_v4 = vmul.f32 %v6579_v40, %v1134_v63  ;;  %v4870_v28 = vpop.eup %4869  ;;  %1748 = vst [vmem:[#allocation2 + $0x114] sm:$0xff] %v4671_v7  ;;  %v1138_v12 = vmul.f32 %v4868_v32, %v6460_v47 }
 0x21b   : > { %v1248_v35 = vmul.f32 %v6575_v49, %v1135_v29  ;;  %v1249_v10 = vmul.f32 %v6577_v19, %v1136_v8  ;;  %v1250_v3 = vmul.f32 %v6579_v40, %v1137_v44  ;;  %v1139_v58 = vmul.f32 %v4868_v32, %v6463_v39  ;;  %v4872_v5 = vpop.eup %4871 }
 0x21c   : > { %v1358_v43 = vadd.f32 %v6581_v57, %v1245_v36  ;;  %v1359_v61 = vadd.f32 %v6583_v45, %v1246_v21  ;;  %v1360_v42 = vadd.f32 %v6585_v24, %v1247_v4  ;;  %v1140_v26 = vmul.f32 %v4868_v32, %v6466_v55  ;;  %v4874_v0 = vpop.eup %4873  ;;  %v8906_v21 = vld [vmem:[#allocation51_spill] sm:$0xff] }
 0x21d   : > { %v1361_v25 = vadd.f32 %v6581_v57, %v1248_v35  ;;  %v1362_v17 = vadd.f32 %v6583_v45, %v1249_v10  ;;  %v1363_v52 = vadd.f32 %v6585_v24, %v1250_v3  ;;  %v1251_v46 = vmul.f32 %v6575_v49, %v1138_v12  ;;  %v4876_v48 = vpop.eup %4875  ;;  %v8908_v10 = vld [vmem:[#allocation53_spill] sm:$0xff] }
 0x21e   : > { %v4673_v16 = vpack.c.bf16 %v1359_v61, %v1358_v43  ;;  %v4674_v50 = vpack.c.bf16 %v1360_v42, %v1360_v42  ;;  %v1252_v38 = vmul.f32 %v6577_v19, %v1139_v58  ;;  %v1253_v47 = vmul.f32 %v6579_v40, %v1140_v26  ;;  %v4878_v14 = vpop.eup %4877  ;;  %v8907_v42 = vld [vmem:[#allocation55_spill] sm:$0xff] }
 0x21f   : > { %v1141_v39 = vmul.f32 %v4870_v28, %v6469_v27  ;;  %v4675_v55 = vpack.c.bf16 %v1362_v17, %v1361_v25  ;;  %v4676_v54 = vpack.c.bf16 %v1363_v52, %v1363_v52  ;;  %v1142_v13 = vmul.f32 %v4870_v28, %v8902_v33 }
 0x220   : > { %1750 = vst [vmem:[#allocation2 + $0x120] sm:$0xff] %v4673_v16  ;;  %1751 = vst [vmem:[#allocation2 + $0x128] sm:$0xf] %v4674_v50  ;;  %v1143_v1 = vmul.f32 %v4870_v28, %v6489_v37  ;;  %v1364_v11 = vadd.f32 %v6581_v57, %v1251_v46  ;;  %v1365_v34 = vadd.f32 %v6583_v45, %v1252_v38  ;;  %v8909_v16 = vld [vmem:[#allocation54_spill] sm:$0xff] }
 0x221   : > { %v1366_v30 = vadd.f32 %v6585_v24, %v1253_v47  ;;  %v1254_v23 = vmul.f32 %v6575_v49, %v1141_v39  ;;  %1752 = vst [vmem:[#allocation2 + $0x12c] sm:$0xff] %v4675_v55  ;;  %1753 = vst [vmem:[#allocation2 + $0x134] sm:$0xf] %v4676_v54  ;;  %v1255_v27 = vmul.f32 %v6577_v19, %v1142_v13  ;;  %v8911_v39 = vld [vmem:[#allocation57_spill] sm:$0xff]  ;;  %v8912_v55 = vld [vmem:[#allocation60_spill] sm:$0xff] }
 0x222   : > { %v1256_v53 = vmul.f32 %v6579_v40, %v1143_v1  ;;  %v1144_v15 = vmul.f32 %v4872_v5, %v6492_v18  ;;  %v1145_v56 = vmul.f32 %v4872_v5, %v6495_v2  ;;  %v4677_v37 = vpack.c.bf16 %v1365_v34, %v1364_v11 }
 0x223   : > { %v4678_v59 = vpack.c.bf16 %v1366_v30, %v1366_v30  ;;  %v1367_v9 = vadd.f32 %v6581_v57, %v1254_v23  ;;  %v1146_v60 = vmul.f32 %v4872_v5, %v8903_v62  ;;  %v1368_v51 = vadd.f32 %v6583_v45, %v1255_v27 }
 0x224   : > { %v1369_v6 = vadd.f32 %v6585_v24, %v1256_v53  ;;  %v1257_v31 = vmul.f32 %v6575_v49, %v1144_v15  ;;  %v1258_v63 = vmul.f32 %v6577_v19, %v1145_v56  ;;  %1754 = vst [vmem:[#allocation2 + $0x138] sm:$0xff] %v4677_v37  ;;  %v1147_v2 = vmul.f32 %v4874_v0, %v8904_v20 }
 0x225   : > { %1755 = vst [vmem:[#allocation2 + $0x140] sm:$0xf] %v4678_v59  ;;  %v1259_v18 = vmul.f32 %v6579_v40, %v1146_v60  ;;  %v1148_v36 = vmul.f32 %v4874_v0, %v8905_v22  ;;  %v1149_v32 = vmul.f32 %v4874_v0, %v8906_v21  ;;  %v4679_v4 = vpack.c.bf16 %v1368_v51, %v1367_v9  ;;  %v8910_v0 = vld [vmem:[#allocation56_spill] sm:$0xff] }
 0x226   : > { %v4680_v29 = vpack.c.bf16 %v1369_v6, %v1369_v6  ;;  %v1370_v8 = vadd.f32 %v6581_v57, %v1257_v31  ;;  %v1371_v44 = vadd.f32 %v6583_v45, %v1258_v63  ;;  %v1260_v41 = vmul.f32 %v6575_v49, %v1147_v2 }
 0x227   : > { %v1372_v7 = vadd.f32 %v6585_v24, %v1259_v18  ;;  %v1261_v43 = vmul.f32 %v6577_v19, %v1148_v36  ;;  %v1262_v61 = vmul.f32 %v6579_v40, %v1149_v32  ;;  %1756 = vst [vmem:[#allocation2 + $0x144] sm:$0xff] %v4679_v4  ;;  %v1150_v35 = vmul.f32 %v4876_v48, %v8907_v42 }
 0x228   : > { %1757 = vst [vmem:[#allocation2 + $0x14c] sm:$0xf] %v4680_v29  ;;  %v4681_v28 = vpack.c.bf16 %v1371_v44, %v1370_v8  ;;  %v1151_v3 = vmul.f32 %v4876_v48, %v8908_v10  ;;  %v1152_v12 = vmul.f32 %v4876_v48, %v8909_v16  ;;  %v1373_v26 = vadd.f32 %v6581_v57, %v1260_v41 }
 0x229   : > { %v4682_v58 = vpack.c.bf16 %v1372_v7, %v1372_v7  ;;  %v1374_v5 = vadd.f32 %v6583_v45, %v1261_v43  ;;  %v1375_v50 = vadd.f32 %v6585_v24, %v1262_v61  ;;  %v1263_v25 = vmul.f32 %v6575_v49, %v1150_v35 }
 0x22a   : > { %1758 = vst [vmem:[#allocation2 + $0x150] sm:$0xff] %v4681_v28  ;;  %v1264_v17 = vmul.f32 %v6577_v19, %v1151_v3  ;;  %v1265_v52 = vmul.f32 %v6579_v40, %v1152_v12  ;;  %v1153_v46 = vmul.f32 %v4878_v14, %v8910_v0  ;;  %v1154_v48 = vmul.f32 %v4878_v14, %v8911_v39 }
 0x22b   : > { %1759 = vst [vmem:[#allocation2 + $0x158] sm:$0xf] %v4682_v58  ;;  %v4683_v38 = vpack.c.bf16 %v1374_v5, %v1373_v26  ;;  %v4684_v47 = vpack.c.bf16 %v1375_v50, %v1375_v50  ;;  %v1155_v54 = vmul.f32 %v4878_v14, %v8912_v55  ;;  %v1376_v33 = vadd.f32 %v6581_v57, %v1263_v25 }
 0x22c   : > { %v1377_v13 = vadd.f32 %v6583_v45, %v1264_v17  ;;  %v1378_v1 = vadd.f32 %v6585_v24, %v1265_v52  ;;  %v1266_v11 = vmul.f32 %v6575_v49, %v1153_v46  ;;  %v1267_v34 = vmul.f32 %v6577_v19, %v1154_v48 }
 0x22d   : > { %1760 = vst [vmem:[#allocation2 + $0x15c] sm:$0xff] %v4683_v38  ;;  %1761 = vst [vmem:[#allocation2 + $0x164] sm:$0xf] %v4684_v47  ;;  %v1268_v30 = vmul.f32 %v6579_v40, %v1155_v54 }
 0x22e   : > { %v4685_v23 = vpack.c.bf16 %v1377_v13, %v1376_v33  ;;  %v4686_v27 = vpack.c.bf16 %v1378_v1, %v1378_v1  ;;  %v1379_v53 = vadd.f32 %v6581_v57, %v1266_v11  ;;  %v1380_v14 = vadd.f32 %v6583_v45, %v1267_v34 }
 0x22f   : > { %v1381_v15 = vadd.f32 %v6585_v24, %v1268_v30 }
 0x230   : > { %1762 = vst [vmem:[#allocation2 + $0x168] sm:$0xff] %v4685_v23  ;;  %1763 = vst [vmem:[#allocation2 + $0x170] sm:$0xf] %v4686_v27  ;;  %v4687_v56 = vpack.c.bf16 %v1380_v14, %v1379_v53 }
 0x231   : > { %v4688_v37 = vpack.c.bf16 %v1381_v15, %v1381_v15 }
 0x232   : > { %1764 = vst [vmem:[#allocation2 + $0x174] sm:$0xff] %v4687_v56 }
 0x233   : > { %1765 = vst [vmem:[#allocation2 + $0x17c] sm:$0xf] %v4688_v37 }
 0x234 PF: > { %v4879_v49 = vld [vmem:[%s5782_s12 + $0xe4] ss:$16 sps:$4 sm:$0xff]   ;;  %v5586_v40 = vmov 0   ;;  %v4883_v57 = vld [vmem:[%s5782_s12 + $0xe0] ss:$16 sps:$4 sm:$0xff]   ;;  %s4689_s24 = sshll.u32 %s5566_s21, 9 }
 0x235   : > { %v4881_v19 = vld [vmem:[%s5782_s12 + $0x2e4] ss:$16 sps:$4 sm:$0xff]   ;;  %2909 = vmatprep.mubr.bf16.mxu1 %v5586_v40  ;;  %2684 = vmatprep.subr.bf16.mxu0 %v4879_v49  ;;  %v4884_v45 = vld [vmem:[%s5782_s12 + $0x2e0] ss:$16 sps:$4 sm:$0xff]   ;;  %v4932_v16 = vld [vmem:[%s5782_s12 + $0xec] ss:$16 sps:$4 sm:$0xff]   ;;  %s8506_s21 = scalar_lea.hbm %s8562_s5, %s4689_s24 }
 0x236   : > { %2877 = vmatprep.subr.bf16.mxu1 %v4881_v19  ;;  %v4885_v24 = vld [vmem:[%s5782_s12 + $0xc4] ss:$16 sps:$4 sm:$0xff]   ;;  %2685 = vmatpush1.bf16.msra.mxu0 %v4883_v57  ;;  %v4889_v9 = vld [vmem:[%s5782_s12 + $0xc0] ss:$16 sps:$4 sm:$0xff]   ;;  %v4930_v58 = vld [vmem:[%s5782_s12 + $0xe8] ss:$16 sps:$4 sm:$0xff]  }
 0x237   : > { %2878 = vmatpush1.bf16.msra.mxu1 %v4884_v45  ;;  %v4887_v59 = vld [vmem:[%s5782_s12 + $0x2c4] ss:$16 sps:$4 sm:$0xff]   ;;  %2686 = vmatprep.subr.bf16.mxu0 %v4885_v24  ;;  %v4890_v62 = vld [vmem:[%s5782_s12 + $0x2c0] ss:$16 sps:$4 sm:$0xff]   ;;  %v4942_v25 = vld [vmem:[%s5782_s12 + $0xcc] ss:$16 sps:$4 sm:$0xff]  }
 0x238   : > { %2879 = vmatprep.subr.bf16.mxu1 %v4887_v59  ;;  %v4891_v60 = vld [vmem:[%s5782_s12 + $0xa4] ss:$16 sps:$4 sm:$0xff]   ;;  %v4895_v6 = vld [vmem:[%s5782_s12 + $0xa0] ss:$16 sps:$4 sm:$0xff]   ;;  %v4940_v52 = vld [vmem:[%s5782_s12 + $0xc8] ss:$16 sps:$4 sm:$0xff]  }
 0x239   : > { %v4893_v51 = vld [vmem:[%s5782_s12 + $0x2a4] ss:$16 sps:$4 sm:$0xff]   ;;  %v4896_v31 = vld [vmem:[%s5782_s12 + $0x2a0] ss:$16 sps:$4 sm:$0xff]   ;;  %v4952_v0 = vld [vmem:[%s5782_s12 + $0xac] ss:$16 sps:$4 sm:$0xff]  }
 0x23a   : > { %2687 = vmatpush1.bf16.msra.mxu0 %v4889_v9  ;;  %v4897_v63 = vld [vmem:[%s5782_s12 + $0x84] ss:$16 sps:$4 sm:$0xff]   ;;  %v4901_v20 = vld [vmem:[%s5782_s12 + $0x80] ss:$16 sps:$4 sm:$0xff]   ;;  %v4950_v39 = vld [vmem:[%s5782_s12 + $0xa8] ss:$16 sps:$4 sm:$0xff]  }
 0x23b   : > { %2880 = vmatpush1.bf16.msra.mxu1 %v4890_v62  ;;  %2688 = vmatprep.subr.bf16.mxu0 %v4891_v60  ;;  %v4899_v18 = vld [vmem:[%s5782_s12 + $0x284] ss:$16 sps:$4 sm:$0xff]   ;;  %v4902_v2 = vld [vmem:[%s5782_s12 + $0x280] ss:$16 sps:$4 sm:$0xff]   ;;  %v4962_v48 = vld [vmem:[%s5782_s12 + $0x8c] ss:$16 sps:$4 sm:$0xff]  }
 0x23c   : > { %2881 = vmatprep.subr.bf16.mxu1 %v4893_v51  ;;  %v4903_v22 = vld [vmem:[%s5782_s12 + $0x64] ss:$16 sps:$4 sm:$0xff]   ;;  %v4907_v21 = vld [vmem:[%s5782_s12 + $0x60] ss:$16 sps:$4 sm:$0xff]   ;;  %v4960_v13 = vld [vmem:[%s5782_s12 + $0x88] ss:$16 sps:$4 sm:$0xff]  }
 0x23d   : > { %v4905_v36 = vld [vmem:[%s5782_s12 + $0x264] ss:$16 sps:$4 sm:$0xff]   ;;  %v4908_v32 = vld [vmem:[%s5782_s12 + $0x260] ss:$16 sps:$4 sm:$0xff]   ;;  %v4973_v1 = vld [vmem:[%s5782_s12 + $0x6c] ss:$16 sps:$4 sm:$0xff]  }
 0x23e   : > { %2689 = vmatpush1.bf16.msra.mxu0 %v4895_v6  ;;  %v4909_v4 = vld [vmem:[%s5782_s12 + $0x44] ss:$16 sps:$4 sm:$0xff]   ;;  %v4913_v8 = vld [vmem:[%s5782_s12 + $0x40] ss:$16 sps:$4 sm:$0xff]   ;;  %v4971_v23 = vld [vmem:[%s5782_s12 + $0x68] ss:$16 sps:$4 sm:$0xff]  }
 0x23f   : > { %2882 = vmatpush1.bf16.msra.mxu1 %v4896_v31  ;;  %2690 = vmatprep.subr.bf16.mxu0 %v4897_v63  ;;  %v4911_v29 = vld [vmem:[%s5782_s12 + $0x244] ss:$16 sps:$4 sm:$0xff]   ;;  %v4914_v44 = vld [vmem:[%s5782_s12 + $0x240] ss:$16 sps:$4 sm:$0xff]   ;;  %v4983_v27 = vld [vmem:[%s5782_s12 + $0x4c] ss:$16 sps:$4 sm:$0xff]  }
 0x240   : > { %2883 = vmatprep.subr.bf16.mxu1 %v4899_v18  ;;  %v4915_v7 = vld [vmem:[%s5782_s12 + $0x24] ss:$16 sps:$4 sm:$0xff]   ;;  %v4919_v43 = vld [vmem:[%s5782_s12 + $0x20] ss:$16 sps:$4 sm:$0xff]   ;;  %v4981_v15 = vld [vmem:[%s5782_s12 + $0x48] ss:$16 sps:$4 sm:$0xff]  }
 0x241   : > { %v4917_v41 = vld [vmem:[%s5782_s12 + $0x224] ss:$16 sps:$4 sm:$0xff]   ;;  %v4920_v61 = vld [vmem:[%s5782_s12 + $0x220] ss:$16 sps:$4 sm:$0xff]   ;;  %v4990_v37 = vld [vmem:[%s5782_s12 + $0x2c] ss:$16 sps:$4 sm:$0xff]  }
 0x242   : > { %2691 = vmatpush1.bf16.msra.mxu0 %v4901_v20  ;;  %v4921_v28 = vld [vmem:[%s5782_s12 + $0x4] ss:$16 sps:$4 sm:$0xff]   ;;  %v4925_v35 = vld [vmem:[%s5782_s12] ss:$16 sps:$4 sm:$0xff]   ;;  %v4988_v57 = vld [vmem:[%s5782_s12 + $0x28] ss:$16 sps:$4 sm:$0xff]  }
 0x243   : > { %2884 = vmatpush1.bf16.msra.mxu1 %v4902_v2  ;;  %2692 = vmatprep.subr.bf16.mxu0 %v4903_v22  ;;  %v4923_v42 = vld [vmem:[%s5782_s12 + $0x204] ss:$16 sps:$4 sm:$0xff]   ;;  %v4926_v10 = vld [vmem:[%s5782_s12 + $0x200] ss:$16 sps:$4 sm:$0xff]   ;;  %v5000_v45 = vld [vmem:[%s5782_s12 + $0xc] ss:$16 sps:$4 sm:$0xff]  }
 0x244   : > { %2885 = vmatprep.subr.bf16.mxu1 %v4905_v36  ;;  %v4927_v3 = vld [vmem:[%s5782_s12 + $0x1e4] ss:$16 sps:$4 sm:$0xff]   ;;  %v4933_v26 = vld [vmem:[%s5782_s12 + $0x1e0] ss:$16 sps:$4 sm:$0xff]   ;;  %v7021_v59 = vld [vmem:[%s5782_s12 + $0x2ec] ss:$16 sps:$4 sm:$0xff]  }
 0x245   : > { %v6972_v12 = vld [vmem:[#allocation2 + $0x8] ss:$12 sps:$4 sm:$0xff]   ;;  %v4936_v50 = vld [vmem:[%s5782_s12 + $0x1c0] ss:$16 sps:$4 sm:$0xff]   ;;  %v6999_v11 = vld [vmem:[#allocation2 + $0x38] ss:$12 sps:$4 sm:$0xff]  }
 0x246   : > { %2693 = vmatpush1.bf16.msra.mxu0 %v4907_v21  ;;  %v4934_v5 = vld [vmem:[%s5782_s12 + $0x1c4] ss:$16 sps:$4 sm:$0xff]   ;;  %v6984_v46 = vld [vmem:[#allocation2 + $0x20] ss:$12 sps:$4 sm:$0xff]   ;;  %v7010_v56 = vld [vmem:[#allocation2 + $0x50] ss:$12 sps:$4 sm:$0xff]  }
 0x247   : > { %2886 = vmatpush1.bf16.msra.mxu1 %v4908_v32  ;;  %2694 = vmatprep.subr.bf16.mxu0 %v4909_v4  ;;  %v4937_v17 = vld [vmem:[%s5782_s12 + $0x1a4] ss:$16 sps:$4 sm:$0xff]   ;;  %v4943_v38 = vld [vmem:[%s5782_s12 + $0x1a0] ss:$16 sps:$4 sm:$0xff]   ;;  %v4998_v9 = vld [vmem:[%s5782_s12 + $0x8] ss:$16 sps:$4 sm:$0xff]  }
 0x248   : > { %2887 = vmatprep.subr.bf16.mxu1 %v4911_v29  ;;  %v4944_v47 = vld [vmem:[%s5782_s12 + $0x184] ss:$16 sps:$4 sm:$0xff]   ;;  %v4946_v54 = vld [vmem:[%s5782_s12 + $0x180] ss:$16 sps:$4 sm:$0xff]   ;;  %v5007_v62 = vld [vmem:[%s5782_s12 + $0x1ec] ss:$16 sps:$4 sm:$0xff]  }
 0x249   : > { %v6990_v55 = vld [vmem:[#allocation2 + $0x4] ss:$12 sps:$4 sm:$0xff]   ;;  %v7025_v60 = vld [vmem:[#allocation2] ss:$12 sps:$4 sm:$0xff]   ;;  %v7027_v51 = vld [vmem:[#allocation2 + $0x68] ss:$12 sps:$4 sm:$0xff]  }
 0x24a   : > { %2695 = vmatpush1.bf16.msra.mxu0 %v4913_v8  ;;  %v4947_v33 = vld [vmem:[%s5782_s12 + $0x164] ss:$16 sps:$4 sm:$0xff]   ;;  %2716 = vmatprep.mubr.bf16.mxu0 %v6990_v55  ;;  %v4953_v34 = vld [vmem:[%s5782_s12 + $0x160] ss:$16 sps:$4 sm:$0xff]   ;;  %v7030_v6 = vld [vmem:[%s5782_s12 + $0x2e8] ss:$16 sps:$4 sm:$0xff]  }
 0x24b   : > { %2888 = vmatpush1.bf16.msra.mxu1 %v4914_v44  ;;  %2696 = vmatprep.subr.bf16.mxu0 %v4915_v7  ;;  %v4954_v30 = vld [vmem:[%s5782_s12 + $0x144] ss:$16 sps:$4 sm:$0xff]   ;;  %v4956_v53 = vld [vmem:[%s5782_s12 + $0x140] ss:$16 sps:$4 sm:$0xff]   ;;  %v7032_v31 = vld [vmem:[#allocation2 + $0x1c] ss:$12 sps:$4 sm:$0xff]  }
 0x24c   : > { %2889 = vmatprep.subr.bf16.mxu1 %v4917_v41  ;;  %v4957_v14 = vld [vmem:[%s5782_s12 + $0x124] ss:$16 sps:$4 sm:$0xff]   ;;  %v4963_v49 = vld [vmem:[%s5782_s12 + $0x120] ss:$16 sps:$4 sm:$0xff]   ;;  %v7036_v63 = vld [vmem:[%s5782_s12 + $0x2cc] ss:$16 sps:$4 sm:$0xff]  }
 0x24d   : > { %v4964_v19 = vld [vmem:[%s5782_s12 + $0x104] ss:$16 sps:$4 sm:$0xff]   ;;  %v4966_v24 = vld [vmem:[%s5782_s12 + $0x100] ss:$16 sps:$4 sm:$0xff]   ;;  %v5005_v18 = vld [vmem:[%s5782_s12 + $0x1e8] ss:$16 sps:$4 sm:$0xff]  }
 0x24e   : > { %2697 = vmatpush1.bf16.msra.mxu0 %v4919_v43  ;;  %v5017_v20 = vld [vmem:[%s5782_s12 + $0x1cc] ss:$16 sps:$4 sm:$0xff]   ;;  %v7045_v2 = vld [vmem:[%s5782_s12 + $0x2c8] ss:$16 sps:$4 sm:$0xff]   ;;  %v7057_v4 = vld [vmem:[#allocation2 + $0x34] ss:$12 sps:$4 sm:$0xff]  }
 0x24f   : > { %2890 = vmatpush1.bf16.msra.mxu1 %v4920_v61  ;;  %2698 = vmatprep.subr.bf16.mxu0 %v4921_v28  ;;  %v7048_v22 = vld [vmem:[#allocation2 + $0x18] ss:$12 sps:$4 sm:$0xff]   ;;  %v7052_v36 = vld [vmem:[%s5782_s12 + $0x2ac] ss:$16 sps:$4 sm:$0xff]   ;;  %s4241_s28 = sshll.u32 %s5804_s16, 4  ;;  %s4225_s14 = scalar_lea.sflag [#allocation5], %s5779_s3  ;;  %s8508_s28 = int_to_ptr.vmem [resolvable:$true] %s4241_s28 }
 0x250   : > { %2891 = vmatprep.subr.bf16.mxu1 %v4923_v42  ;;  %v7054_v21 = vld [vmem:[#allocation2 + $0x80] ss:$12 sps:$4 sm:$0xff]   ;;  %v5015_v32 = vld [vmem:[%s5782_s12 + $0x1c8] ss:$16 sps:$4 sm:$0xff]   ;;  %v7074_v43 = vld [vmem:[#allocation2 + $0x30] ss:$12 sps:$4 sm:$0xff]  }
 0x251   : > { %v7061_v29 = vld [vmem:[%s5782_s12 + $0x2a8] ss:$16 sps:$4 sm:$0xff]   ;;  %v5024_v44 = vld [vmem:[%s5782_s12 + $0x1ac] ss:$16 sps:$4 sm:$0xff]   ;;  %s5478_s15 = scalar_lea.vmem %s8508_s28, 16384  ;;  %p8913_p7 = scmp.ne.s32.totalorder %s8681_s29, 0 }
 0x252   : > { %2699 = vmatpush1.bf16.msra.mxu0 %v4925_v35  ;;  %v5022_v8 = vld [vmem:[%s5782_s12 + $0x1a8] ss:$16 sps:$4 sm:$0xff]   ;;  %v7067_v7 = vld [vmem:[%s5782_s12 + $0x28c] ss:$16 sps:$4 sm:$0xff]   ;;  %p5479_p6 = scmp.ne.s32.totalorder %s8508_s28, %s5478_s15  ;;  %s5587_s25 = smov [#allocation12]  }
 0x253   : > { %2892 = vmatpush1.bf16.msra.mxu1 %v4926_v10  ;;  %2700 = vmatprep.subr.bf16.mxu0 %v4927_v3  ;;  %v5034_v41 = vld [vmem:[%s5782_s12 + $0x18c] ss:$16 sps:$4 sm:$0xff]   ;;  %v7078_v61 = vld [vmem:[%s5782_s12 + $0x288] ss:$16 sps:$4 sm:$0xff]   ;;  %s5482_s7 = sshll.u32 %s5587_s25, 4  ;;  %s5483_s7 = int_to_ptr.vmem [resolvable:$false] %s5482_s7 }
 0x254   : > { %3070 = vmatprep.subr.bf16.mxu1 %v4932_v16  ;;  %v5032_v28 = vld [vmem:[%s5782_s12 + $0x188] ss:$16 sps:$4 sm:$0xff]   ;;  %v5041_v10 = vld [vmem:[%s5782_s12 + $0x16c] ss:$16 sps:$4 sm:$0xff]   ;;  %p5480_p1 = pnand %p5479_p6, %p8913_p7  ;;  %s5484_s17 = scalar_lea.vmem %s5483_s7, 32768 }
 0x255   : > { %v7082_v42 = vld [vmem:[#allocation2 + $0x98] ss:$12 sps:$4 sm:$0xff]   ;;  %v7088_v3 = vld [vmem:[%s5782_s12 + $0x26c] ss:$16 sps:$4 sm:$0xff]   ;;  %p5485_p9 = scmp.lt.s32.totalorder %s8508_s28, %s5483_s7  ;;  %p5486_p10 = scmp.lt.s32.totalorder %s5484_s17, %s5478_s15 }
 0x256   : > { %2910 = vmatmul.mubr.bf16.vlgmr.msra.gmra.mxu1 %v6972_v12  ;;  %2701 = vmatpush2.bf16.msra.mxu0 %v4933_v26  ;;  %v7084_v35 = vld [vmem:[#allocation2 + $0x4c] ss:$12 sps:$4 sm:$0xff]   ;;  %p5481_p8 = pneg %p5480_p1 }
 0x257   : > { %3071 = vmatpush1.bf16.msra.mxu1 %v4930_v58  ;;  %2702 = vmatprep.subr.bf16.mxu0 %v4934_v5  ;;  %v7092_v16 = vld [vmem:[%s5782_s12 + $0x268] ss:$16 sps:$4 sm:$0xff]   ;;  %v5051_v26 = vld [vmem:[%s5782_s12 + $0x14c] ss:$16 sps:$4 sm:$0xff]   ;;  %p5487_p11 = por %p5486_p10, %p5485_p9 }
 0x258   : > { %2919 = vmatprep.mubr.bf16.mxu1 %v5586_v40  ;;  %3072 = vmatprep.subr.bf16.mxu1 %v4942_v25  ;;  %v5039_v58 = vld [vmem:[%s5782_s12 + $0x168] ss:$16 sps:$4 sm:$0xff]   ;;  %v7105_v25 = vld [vmem:[#allocation2 + $0xb0] ss:$12 sps:$4 sm:$0xff]  }
 0x259   : > { %v7101_v5 = vld [vmem:[#allocation2 + $0x48] ss:$12 sps:$4 sm:$0xff]   ;;  %p5488_p4 = pnand %p5487_p11, %p5481_p8 }
 0x25a   : > { %2703 = vmatpush2.bf16.msra.mxu0 %v4936_v50  ;;  %v5049_v50 = vld [vmem:[%s5782_s12 + $0x148] ss:$16 sps:$4 sm:$0xff]  }
 0x25b   : > { %3073 = vmatpush1.bf16.msra.mxu1 %v4940_v52  ;;  %2704 = vmatprep.subr.bf16.mxu0 %v4937_v17  ;;  %v7107_v17 = vld [vmem:[#allocation2 + $0x64] ss:$12 sps:$4 sm:$0xff]   ;;  %v5058_v52 = vld [vmem:[%s5782_s12 + $0x12c] ss:$16 sps:$4 sm:$0xff]  }
 0x25c   : > { %3074 = vmatprep.subr.bf16.mxu1 %v4952_v0  ;;  %v7111_v0 = vld [vmem:[%s5782_s12 + $0x24c] ss:$16 sps:$4 sm:$0xff]  }
 0x25e   : > { %2920 = vmatmul.mubr.bf16.gmra.mxu1 %v6984_v46  ;;  %2705 = vmatpush2.bf16.msra.mxu0 %v4943_v38  ;;  %v5056_v38 = vld [vmem:[%s5782_s12 + $0x128] ss:$16 sps:$4 sm:$0xff]  }
 0x25f   : > { %2929 = vmatprep.mubr.bf16.mxu1 %v5586_v40  ;;  %2706 = vmatprep.subr.bf16.mxu0 %v4944_v47  ;;  %v7115_v47 = vld [vmem:[%s5782_s12 + $0x248] ss:$16 sps:$4 sm:$0xff]  }
 0x260   : > { %3075 = vmatpush1.bf16.msra.mxu1 %v4950_v39  ;;  %v7121_v39 = vld [vmem:[#allocation2 + $0x60] ss:$12 sps:$4 sm:$0xff]  }
 0x261   : > { %3076 = vmatprep.subr.bf16.mxu1 %v4962_v48  ;;  %v5068_v48 = vld [vmem:[%s5782_s12 + $0x10c] ss:$16 sps:$4 sm:$0xff]  }
 0x262   : > { %2707 = vmatpush2.bf16.msra.mxu0 %v4946_v54  ;;  %v7125_v54 = vld [vmem:[#allocation2 + $0xc8] ss:$12 sps:$4 sm:$0xff]  }
 0x263   : > { %2708 = vmatprep.subr.bf16.mxu0 %v4947_v33  ;;  %v5066_v33 = vld [vmem:[%s5782_s12 + $0x108] ss:$16 sps:$4 sm:$0xff]  }
 0x264   : > { %3077 = vmatpush1.bf16.msra.mxu1 %v4960_v13  ;;  %v7130_v13 = vld [vmem:[%s5782_s12 + $0x228] ss:$16 sps:$4 sm:$0xff]  }
 0x265   : > { %3078 = vmatprep.subr.bf16.mxu1 %v4973_v1  ;;  %v7133_v1 = vld [vmem:[%s5782_s12 + $0x22c] ss:$16 sps:$4 sm:$0xff]  }
 0x266   : > { %2930 = vmatmul.mubr.bf16.gmra.mxu1 %v6999_v11  ;;  %2709 = vmatpush2.bf16.msra.mxu0 %v4953_v34  ;;  %v7135_v34 = vld [vmem:[#allocation2 + $0x7c] ss:$12 sps:$4 sm:$0xff]  }
 0x267   : > { %2939 = vmatprep.mubr.bf16.mxu1 %v5586_v40  ;;  %2710 = vmatprep.subr.bf16.mxu0 %v4954_v30  ;;  %v7142_v30 = vld [vmem:[%s5782_s12 + $0x208] ss:$16 sps:$4 sm:$0xff]  }
 0x268   : > { %3079 = vmatpush1.bf16.msra.mxu1 %v4971_v23  ;;  %v7145_v23 = vld [vmem:[%s5782_s12 + $0x20c] ss:$16 sps:$4 sm:$0xff]  }
 0x269   : > { %3080 = vmatprep.subr.bf16.mxu1 %v4983_v27  ;;  %v7152_v27 = vld [vmem:[#allocation2 + $0x78] ss:$12 sps:$4 sm:$0xff]  }
 0x26a   : > { %2711 = vmatpush2.bf16.msra.mxu0 %v4956_v53  ;;  %v7154_v53 = vld [vmem:[#allocation2 + $0xe0] ss:$12 sps:$4 sm:$0xff]  }
 0x26b   : > { %2712 = vmatprep.subr.bf16.mxu0 %v4957_v14  ;;  %v7156_v14 = vld [vmem:[#allocation2 + $0x94] ss:$12 sps:$4 sm:$0xff]  }
 0x26c   : > { %3081 = vmatpush1.bf16.msra.mxu1 %v4981_v15  ;;  %v7162_v15 = vld [vmem:[#allocation2 + $0x90] ss:$12 sps:$4 sm:$0xff]  }
 0x26d   : > { %3082 = vmatprep.subr.bf16.mxu1 %v4990_v37  ;;  %v7164_v37 = vld [vmem:[#allocation2 + $0xf8] ss:$12 sps:$4 sm:$0xff]  }
 0x26e   : > { %2940 = vmatmul.mubr.bf16.gmra.mxu1 %v7010_v56  ;;  %2713 = vmatpush2.bf16.msra.mxu0 %v4963_v49  ;;  %v7166_v49 = vld [vmem:[#allocation2 + $0xac] ss:$12 sps:$4 sm:$0xff]  }
 0x26f   : > { %2949 = vmatprep.mubr.bf16.mxu1 %v5586_v40  ;;  %2714 = vmatprep.subr.bf16.mxu0 %v4964_v19  ;;  %v7172_v19 = vld [vmem:[#allocation2 + $0xa8] ss:$12 sps:$4 sm:$0xff]  }
 0x270   : > { %3083 = vmatpush1.bf16.msra.mxu1 %v4988_v57  ;;  %v7174_v57 = vld [vmem:[#allocation2 + $0x110] ss:$12 sps:$4 sm:$0xff]  }
 0x271   : > { %3084 = vmatprep.subr.bf16.mxu1 %v5000_v45  ;;  %v7176_v45 = vld [vmem:[#allocation2 + $0xc4] ss:$12 sps:$4 sm:$0xff]  }
 0x272   : > { %2715 = vmatpush2.bf16.msra.mxu0 %v4966_v24  ;;  %v7182_v24 = vld [vmem:[#allocation2 + $0xc0] ss:$12 sps:$4 sm:$0xff]  }
 0x273   : > { %3263 = vmatprep.subr.bf16.mxu0 %v7021_v59 }
 0x274   : > { %3085 = vmatpush1.bf16.msra.mxu1 %v4998_v9  ;;  %v7186_v9 = vld [vmem:[#allocation2 + $0xdc] ss:$12 sps:$4 sm:$0xff]  }
 0x275   : > { %3086 = vmatprep.subr.bf16.mxu1 %v5007_v62  ;;  %2717 = vmatmul.mubr.bf16.vlgmr.msra.gmra.mxu0 %v7025_v60  ;;  %v7192_v62 = vld [vmem:[#allocation2 + $0xd8] ss:$12 sps:$4 sm:$0xff]  }
 0x276   : > { %2950 = vmatmul.mubr.bf16.gmra.mxu1 %v7027_v51  ;;  %3264 = vmatpush1.bf16.msra.mxu0 %v7030_v6 }
 0x277   : > { %2726 = vmatprep.mubr.bf16.mxu0 %v7032_v31  ;;  %2959 = vmatprep.mubr.bf16.mxu1 %v5586_v40 }
 0x278   : > { %3265 = vmatprep.subr.bf16.mxu0 %v7036_v63  ;;  %3087 = vmatpush2.bf16.msra.mxu1 %v5005_v18  ;;  %v7194_v18 = vld [vmem:[#allocation2 + $0x140] ss:$12 sps:$4 sm:$0xff]  }
 0x279   : > { %3088 = vmatprep.subr.bf16.mxu1 %v5017_v20  ;;  %v7196_v20 = vld [vmem:[#allocation2 + $0xf4] ss:$12 sps:$4 sm:$0xff]  }
 0x27a   : > { %3266 = vmatpush1.bf16.msra.mxu0 %v7045_v2 }
 0x27b   : > { %3267 = vmatprep.subr.bf16.mxu0 %v7052_v36 }
 0x27c   : > { %3089 = vmatpush2.bf16.msra.mxu1 %v5015_v32  ;;  %v7202_v32 = vld [vmem:[#allocation2 + $0xf0] ss:$12 sps:$4 sm:$0xff]  }
 0x27d   : > { %2727 = vmatmul.mubr.bf16.gmra.mxu0 %v7048_v22  ;;  %3090 = vmatprep.subr.bf16.mxu1 %v5024_v44  ;;  %v7206_v44 = vld [vmem:[#allocation2 + $0x10c] ss:$12 sps:$4 sm:$0xff]  }
 0x27e   : > { %2960 = vmatmul.mubr.bf16.gmra.mxu1 %v7054_v21  ;;  %2736 = vmatprep.mubr.bf16.mxu0 %v7057_v4 }
 0x27f   : > { %2969 = vmatprep.mubr.bf16.mxu1 %v5586_v40  ;;  %3268 = vmatpush1.bf16.msra.mxu0 %v7061_v29 }
 0x280   : > { %3269 = vmatprep.subr.bf16.mxu0 %v7067_v7  ;;  %3091 = vmatpush2.bf16.msra.mxu1 %v5022_v8  ;;  %v7204_v8 = vld [vmem:[#allocation2 + $0x158] ss:$12 sps:$4 sm:$0xff]  }
 0x281   : > { %3092 = vmatprep.subr.bf16.mxu1 %v5034_v41  ;;  %v7212_v41 = vld [vmem:[#allocation2 + $0x108] ss:$12 sps:$4 sm:$0xff]  }
 0x283   : > { %3270 = vmatpush1.bf16.msra.mxu0 %v7078_v61 }
 0x284   : > { %3093 = vmatpush2.bf16.msra.mxu1 %v5032_v28  ;;  %3271 = vmatprep.subr.bf16.mxu0 %v7088_v3  ;;  %v7214_v28 = vld [vmem:[#allocation2 + $0x170] ss:$12 sps:$4 sm:$0xff]  }
 0x285   : > { %2737 = vmatmul.mubr.bf16.gmra.mxu0 %v7074_v43  ;;  %3094 = vmatprep.subr.bf16.mxu1 %v5041_v10  ;;  %v7216_v10 = vld [vmem:[#allocation2 + $0x124] ss:$12 sps:$4 sm:$0xff]  }
 0x286   : > { %2970 = vmatmul.mubr.bf16.gmra.mxu1 %v7082_v42  ;;  %2746 = vmatprep.mubr.bf16.mxu0 %v7084_v35 }
 0x287   : > { %2979 = vmatprep.mubr.bf16.mxu1 %v5586_v40  ;;  %3272 = vmatpush1.bf16.msra.mxu0 %v7092_v16 }
 0x288   : > { %3095 = vmatpush2.bf16.msra.mxu1 %v5039_v58  ;;  %3273 = vmatprep.subr.bf16.mxu0 %v7111_v0  ;;  %v7222_v58 = vld [vmem:[#allocation2 + $0x120] ss:$12 sps:$4 sm:$0xff]  }
 0x289   : > { %3096 = vmatprep.subr.bf16.mxu1 %v5051_v26  ;;  %v7224_v26 = vld [vmem:[#allocation2 + $0x13c] ss:$12 sps:$4 sm:$0xff]  }
 0x28b   : > { %3274 = vmatpush1.bf16.msra.mxu0 %v7115_v47 }
 0x28c   : > { %3097 = vmatpush2.bf16.msra.mxu1 %v5049_v50  ;;  %3275 = vmatprep.subr.bf16.mxu0 %v7133_v1  ;;  %v7232_v50 = vld [vmem:[#allocation2 + $0x138] ss:$12 sps:$4 sm:$0xff]  }
 0x28d   : > { %2747 = vmatmul.mubr.bf16.gmra.mxu0 %v7101_v5  ;;  %3098 = vmatprep.subr.bf16.mxu1 %v5058_v52  ;;  %v7234_v52 = vld [vmem:[#allocation2 + $0x154] ss:$12 sps:$4 sm:$0xff]  }
 0x28e   : > { %2980 = vmatmul.mubr.bf16.gmra.mxu1 %v7105_v25  ;;  %2756 = vmatprep.mubr.bf16.mxu0 %v7107_v17 }
 0x28f   : > { %2989 = vmatprep.mubr.bf16.mxu1 %v5586_v40  ;;  %3276 = vmatpush1.bf16.msra.mxu0 %v7130_v13 }
 0x290   : > { %3099 = vmatpush2.bf16.msra.mxu1 %v5056_v38  ;;  %3277 = vmatprep.subr.bf16.mxu0 %v7145_v23 }
 0x291   : > { %3100 = vmatprep.subr.bf16.mxu1 %v5068_v48 }
 0x293   : > { %3278 = vmatpush1.bf16.msra.mxu0 %v7142_v30 }
 0x294   : > { %3101 = vmatpush2.bf16.msra.mxu1 %v5066_v33 }
 0x295   : > { %2757 = vmatmul.mubr.bf16.gmra.mxu0 %v7121_v39  ;;  %4690 = vmatprep.subr.bf16.mxu1 %v7021_v59  ;;  %v7184_v59 = vld [vmem:[#allocation2 + $0x128] ss:$12 sps:$4 sm:$0xff]  }
 0x296   : > { %2990 = vmatmul.mubr.bf16.gmra.mxu1 %v7125_v54  ;;  %2766 = vmatprep.mubr.bf16.mxu0 %v7135_v34 }
 0x297   : > { %2999 = vmatprep.mubr.bf16.mxu1 %v5586_v40 }
 0x29d   : > { %2767 = vmatmul.mubr.bf16.gmra.mxu0 %v7152_v27 }
 0x29e   : > { %3000 = vmatmul.mubr.bf16.gmra.mxu1 %v7154_v53  ;;  %2776 = vmatprep.mubr.bf16.mxu0 %v7156_v14 }
 0x29f   : > { %3009 = vmatprep.mubr.bf16.mxu1 %v5586_v40 }
 0x2a5   : > { %2777 = vmatmul.mubr.bf16.gmra.mxu0 %v7162_v15 }
 0x2a6   : > { %3010 = vmatmul.mubr.bf16.gmra.mxu1 %v7164_v37  ;;  %2786 = vmatprep.mubr.bf16.mxu0 %v7166_v49 }
 0x2a7   : > { %3019 = vmatprep.mubr.bf16.mxu1 %v5586_v40 }
 0x2ad   : > { %2787 = vmatmul.mubr.bf16.gmra.mxu0 %v7172_v19 }
 0x2ae   : > { %3020 = vmatmul.mubr.bf16.gmra.mxu1 %v7174_v57  ;;  %2796 = vmatprep.mubr.bf16.mxu0 %v7176_v45 }
 0x2af   : > { %3029 = vmatprep.mubr.bf16.mxu1 %v5586_v40 }
 0x2b5   : > { %2797 = vmatmul.mubr.bf16.gmra.mxu0 %v7182_v24 }
 0x2b6   : > { %3030 = vmatmul.mubr.bf16.gmra.mxu1 %v7184_v59  ;;  %2806 = vmatprep.mubr.bf16.mxu0 %v7186_v9 }
 0x2b7   : > { %3039 = vmatprep.mubr.bf16.mxu1 %v5586_v40 }
 0x2bd   : > { %2807 = vmatmul.mubr.bf16.gmra.mxu0 %v7192_v62 }
 0x2be   : > { %3040 = vmatmul.mubr.bf16.gmra.mxu1 %v7194_v18  ;;  %2816 = vmatprep.mubr.bf16.mxu0 %v7196_v20 }
 0x2bf   : > { %3049 = vmatprep.mubr.bf16.mxu1 %v5586_v40 }
 0x2c5   : > { %2817 = vmatmul.mubr.bf16.gmra.mxu0 %v7202_v32 }
 0x2c6   : > { %3050 = vmatmul.mubr.bf16.gmra.mxu1 %v7204_v8  ;;  %2826 = vmatprep.mubr.bf16.mxu0 %v7206_v44 }
 0x2c7   : > { %3059 = vmatprep.mubr.bf16.mxu1 %v5586_v40 }
 0x2cd   : > { %2827 = vmatmul.mubr.bf16.gmra.mxu0 %v7212_v41 }
 0x2ce   : > { %3060 = vmatmul.mubr.bf16.gmra.mxu1 %v7214_v28  ;;  %2836 = vmatprep.mubr.bf16.mxu0 %v7216_v10 }
 0x2cf   : > { %3102 = vmatprep.mubr.bf16.mxu1 %v6990_v55  ;;  %v7244_v55 = vld [vmem:[#allocation2 + $0x150] ss:$12 sps:$4 sm:$0xff]  }
 0x2d5   : > { %2837 = vmatmul.mubr.bf16.gmra.mxu0 %v7222_v58 }
 0x2d6   : > { %3103 = vmatmul.mubr.bf16.vlgmr.msra.gmra.mxu1 %v7025_v60  ;;  %2846 = vmatprep.mubr.bf16.mxu0 %v7224_v26  ;;  %v7246_v60 = vld [vmem:[#allocation2 + $0x16c] ss:$12 sps:$4 sm:$0xff]  }
 0x2d7   : > { %4698 = vmatpush1.bf16.msra.mxu1 %v7030_v6  ;;  %3112 = vmatprep.mubr.bf16.mxu1 %v7032_v31  ;;  %v7256_v6 = vld [vmem:[#allocation2 + $0x168] ss:$12 sps:$4 sm:$0xff]  }
 0x2d8   : > { %4691 = vmatprep.subr.bf16.mxu1 %v7036_v63 }
 0x2db   : > { %4699 = vmatpush1.bf16.msra.mxu1 %v7045_v2 }
 0x2dc   : > { %4692 = vmatprep.subr.bf16.mxu1 %v7052_v36  ;;  %v1928_v36 = vlaneseq }
 0x2dd   : > { %2847 = vmatmul.mubr.bf16.gmra.mxu0 %v7232_v50 }
 0x2de   : > { %3113 = vmatmul.mubr.bf16.gmra.mxu1 %v7048_v22  ;;  %2856 = vmatprep.mubr.bf16.mxu0 %v7234_v52 }
 0x2df   : > { %3122 = vmatprep.mubr.bf16.mxu1 %v7057_v4  ;;  %4700 = vmatpush1.bf16.msra.mxu1 %v7061_v29  ;;  %v7311_v29 = vshrl.u32 %v1928_v36, 7 }
 0x2e0   : > { %4693 = vmatprep.subr.bf16.mxu1 %v7067_v7 }
 0x2e3   : > { %4701 = vmatpush1.bf16.msra.mxu1 %v7078_v61  ;;  %v1930_v61 = vsub.s32 0, %v7311_v29 }
 0x2e4   : > { %4694 = vmatprep.subr.bf16.mxu1 %v7088_v3  ;;  %v1934_v3 = vsub.s32 1, %v7311_v29 }
 0x2e5   : > { %2857 = vmatmul.mubr.bf16.gmra.mxu0 %v7244_v55 }
 0x2e6   : > { %3123 = vmatmul.mubr.bf16.gmra.mxu1 %v7074_v43  ;;  %2866 = vmatprep.mubr.bf16.mxu0 %v7246_v60 }
 0x2e7   : > { %3132 = vmatprep.mubr.bf16.mxu1 %v7084_v35  ;;  %4702 = vmatpush1.bf16.msra.mxu1 %v7092_v16  ;;  %v1926_v35 = vld [vmem:[%s5797_s11] sm:$0xf] }
 0x2e8   : > { %4695 = vmatprep.subr.bf16.mxu1 %v7111_v0  ;;  %v7332_v0 = vrot.slane %v1926_v35, %v1934_v3 }
 0x2eb   : > { %4703 = vmatpush1.bf16.msra.mxu1 %v7115_v47 }
 0x2ec   : > { %4696 = vmatprep.subr.bf16.mxu1 %v7133_v1 }
 0x2ed   : > { %2867 = vmatmul.mubr.bf16.gmra.mxu0 %v7256_v6 }
 0x2ee   : > { %3133 = vmatmul.mubr.bf16.gmra.mxu1 %v7101_v5  ;;  %3295 = vmatprep.mubr.bf16.mxu0 %v5586_v40  ;;  %v7328_v5 = vrot.slane %v1926_v35, %v1930_v61 }
 0x2ef   : > { %3142 = vmatprep.mubr.bf16.mxu1 %v7107_v17  ;;  %4704 = vmatpush1.bf16.msra.mxu1 %v7130_v13 }
 0x2f0   : > { %4697 = vmatprep.subr.bf16.mxu1 %v7145_v23 }
 0x2f3   : > { %4705 = vmatpush1.bf16.msra.mxu1 %v7142_v30 }
 0x2f5   : > { %3296 = vmatmul.mubr.bf16.vlgmr.msra.gmra.mxu0 %v6972_v12 }
 0x2f6   : > { %3143 = vmatmul.mubr.bf16.gmra.mxu1 %v7121_v39  ;;  %3305 = vmatprep.mubr.bf16.mxu0 %v5586_v40 }
 0x2f7   : > { %3152 = vmatprep.mubr.bf16.mxu1 %v7135_v34 }
 0x2fd   : > { %3306 = vmatmul.mubr.bf16.gmra.mxu0 %v6984_v46 }
 0x2fe   : > { %3153 = vmatmul.mubr.bf16.gmra.mxu1 %v7152_v27  ;;  %3315 = vmatprep.mubr.bf16.mxu0 %v5586_v40 }
 0x2ff   : > { %3162 = vmatprep.mubr.bf16.mxu1 %v7156_v14 }
 0x305   : > { %3316 = vmatmul.mubr.bf16.gmra.mxu0 %v6999_v11 }
 0x306   : > { %3163 = vmatmul.mubr.bf16.gmra.mxu1 %v7162_v15  ;;  %3325 = vmatprep.mubr.bf16.mxu0 %v5586_v40 }
 0x307   : > { %3172 = vmatprep.mubr.bf16.mxu1 %v7166_v49 }
 0x30d   : > { %3326 = vmatmul.mubr.bf16.gmra.mxu0 %v7010_v56 }
 0x30e   : > { %3173 = vmatmul.mubr.bf16.gmra.mxu1 %v7172_v19  ;;  %3335 = vmatprep.mubr.bf16.mxu0 %v5586_v40 }
 0x30f   : > { %3182 = vmatprep.mubr.bf16.mxu1 %v7176_v45 }
 0x315   : > { %3336 = vmatmul.mubr.bf16.gmra.mxu0 %v7027_v51 }
 0x316   : > { %v2911_v12 = vpop.f32.mrf.mxu1  ;;  %3183 = vmatmul.mubr.bf16.gmra.mxu1 %v7182_v24  ;;  %3345 = vmatprep.mubr.bf16.mxu0 %v5586_v40 }
 0x317   : > { %3192 = vmatprep.mubr.bf16.mxu1 %v7186_v9 }
 0x318   : > { %v2913_v46 = vpop.f32.mrf.mxu1 }
 0x31a   : > { %v2915_v11 = vpop.f32.mrf.mxu1 }
 0x31c   : > { %v7287_v31 = vpop.f32.mrf.mxu1 }
 0x31d   : > { %3346 = vmatmul.mubr.bf16.gmra.mxu0 %v7054_v21 }
 0x31e   : > { %v7289_v63 = vpop.f32.mrf.mxu1  ;;  %3193 = vmatmul.mubr.bf16.gmra.mxu1 %v7192_v62  ;;  %3355 = vmatprep.mubr.bf16.mxu0 %v5586_v40 }
 0x31f   : > { %3202 = vmatprep.mubr.bf16.mxu1 %v7196_v20 }
 0x320   : > { %v7295_v56 = vpop.f32.mrf.mxu1 }
 0x322   : > { %v7297_v51 = vpop.f32.mrf.mxu1 }
 0x324   : > { %v7299_v2 = vpop.f32.mrf.mxu1 }
 0x325   : > { %3356 = vmatmul.mubr.bf16.gmra.mxu0 %v7082_v42 }
 0x326   : > { %v7301_v22 = vpop.f32.mrf.mxu1  ;;  %3203 = vmatmul.mubr.bf16.gmra.mxu1 %v7202_v32  ;;  %3365 = vmatprep.mubr.bf16.mxu0 %v5586_v40 }
 0x327   : > { %3212 = vmatprep.mubr.bf16.mxu1 %v7206_v44 }
 0x328   : > { %v7307_v21 = vpop.f32.mrf.mxu1 }
 0x32a   : > { %v7309_v4 = vpop.f32.mrf.mxu1 }
 0x32c   : > { %v7313_v7 = vpop.f32.mrf.mxu1 }
 0x32d   : > { %3366 = vmatmul.mubr.bf16.gmra.mxu0 %v7105_v25 }
 0x32e   : > { %v7315_v43 = vpop.f32.mrf.mxu1  ;;  %3213 = vmatmul.mubr.bf16.gmra.mxu1 %v7212_v41  ;;  %3375 = vmatprep.mubr.bf16.mxu0 %v5586_v40 }
 0x32f   : > { %3222 = vmatprep.mubr.bf16.mxu1 %v7216_v10 }
 0x330   : > { %v7322_v42 = vpop.f32.mrf.mxu1 }
 0x332   : > { %v7326_v16 = vpop.f32.mrf.mxu1 }
 0x334   : > { %v7330_v17 = vpop.f32.mrf.mxu1 }
 0x335   : > { %v2718_v25 = vpop.f32.mrf.mxu0  ;;  %3376 = vmatmul.mubr.bf16.gmra.mxu0 %v7125_v54 }
 0x336   : > { %v7334_v38 = vpop.f32.mrf.mxu1  ;;  %3223 = vmatmul.mubr.bf16.gmra.mxu1 %v7222_v58  ;;  %v2719_v47 = vadd.f32 %v2718_v25, %v7328_v5  ;;  %3385 = vmatprep.mubr.bf16.mxu0 %v5586_v40 }
 0x337   : > { %3232 = vmatprep.mubr.bf16.mxu1 %v7224_v26  ;;  %v2720_v39 = vpop.f32.mrf.mxu0 }
 0x338   : > { %v7341_v48 = vpop.f32.mrf.mxu1  ;;  %v2912_v33 = vadd.f32 %v2911_v12, %v2719_v47  ;;  %v2721_v13 = vadd.f32 %v2720_v39, %v7332_v0 }
 0x339   : > { %v2722_v1 = vpop.f32.mrf.mxu0 }
 0x33a   : > { %v7344_v34 = vpop.f32.mrf.mxu1  ;;  %v3584_v30 = vmul.f32 0.70710677, %v2912_v33  ;;  %v7346_v23 = vadd.f32 %v2913_v46, %v2721_v13  ;;  %v2723_v54 = vadd.f32 %v2722_v1, %v7328_v5 }
 0x33b   : > { %v2724_v27 = vpop.f32.mrf.mxu0 }
 0x33c   : > { %v7349_v14 = vpop.f32.mrf.mxu1  ;;  %5087 = verf.f32 %v3584_v30  ;;  %v3585_v15 = vmul.f32 0.70710677, %v7346_v23  ;;  %v7352_v49 = vadd.f32 %v2915_v11, %v2723_v54  ;;  %v2725_v19 = vadd.f32 %v2724_v27, %v7332_v0 }
 0x33d   : > { %v2728_v45 = vpop.f32.mrf.mxu0  ;;  %3386 = vmatmul.mubr.bf16.gmra.mxu0 %v7154_v53 }
 0x33e   : > { %v7355_v24 = vpop.f32.mrf.mxu1  ;;  %3233 = vmatmul.mubr.bf16.gmra.mxu1 %v7232_v50  ;;  %5089 = verf.f32 %v3585_v15  ;;  %v3588_v9 = vmul.f32 0.70710677, %v7352_v49  ;;  %v2729_v62 = vadd.f32 %v2728_v45, %v7328_v5  ;;  %3395 = vmatprep.mubr.bf16.mxu0 %v5586_v40  ;;  %v7364_v20 = vadd.f32 %v7287_v31, %v2725_v19 }
 0x33f   : > { %3242 = vmatprep.mubr.bf16.mxu1 %v7234_v52  ;;  %v2730_v32 = vpop.f32.mrf.mxu0 }
 0x340   : > { %v7366_v44 = vpop.f32.mrf.mxu1  ;;  %5091 = verf.f32 %v3588_v9  ;;  %v7369_v41 = vadd.f32 %v7289_v63, %v2729_v62  ;;  %v2731_v53 = vadd.f32 %v2730_v32, %v7332_v0  ;;  %v3589_v10 = vmul.f32 0.70710677, %v7364_v20 }
 0x341   : > { %v2732_v58 = vpop.f32.mrf.mxu0  ;;  %v3457_v62 = vmul.f32 0.5, %v7346_v23 }
 0x342   : > { %v7373_v26 = vpop.f32.mrf.mxu1  ;;  %v3592_v50 = vmul.f32 0.70710677, %v7369_v41  ;;  %v7377_v52 = vadd.f32 %v7295_v56, %v2731_v53  ;;  %v2733_v12 = vadd.f32 %v2732_v58, %v7328_v5  ;;  %5093 = verf.f32 %v3589_v10 }
 0x343   : > { %v2734_v46 = vpop.f32.mrf.mxu0 }
 0x344   : > { %v7380_v11 = vpop.f32.mrf.mxu1  ;;  %5095 = verf.f32 %v3592_v50  ;;  %v3593_v31 = vmul.f32 0.70710677, %v7377_v52  ;;  %v7384_v63 = vadd.f32 %v7297_v51, %v2733_v12  ;;  %v2735_v36 = vadd.f32 %v2734_v46, %v7332_v0 }
 0x345   : > { %v2738_v61 = vpop.f32.mrf.mxu0  ;;  %3396 = vmatmul.mubr.bf16.gmra.mxu0 %v7164_v37  ;;  %v3460_v12 = vmul.f32 0.5, %v7352_v49 }
 0x346   : > { %v7387_v35 = vpop.f32.mrf.mxu1  ;;  %3243 = vmatmul.mubr.bf16.gmra.mxu1 %v7244_v55  ;;  %5097 = verf.f32 %v3593_v31  ;;  %v3596_v56 = vmul.f32 0.70710677, %v7384_v63  ;;  %v2739_v3 = vadd.f32 %v2738_v61, %v7328_v5  ;;  %3405 = vmatprep.mubr.bf16.mxu0 %v5586_v40  ;;  %v7396_v51 = vadd.f32 %v7299_v2, %v2735_v36 }
 0x347   : > { %3252 = vmatprep.mubr.bf16.mxu1 %v7246_v60  ;;  %v2740_v25 = vpop.f32.mrf.mxu0  ;;  %v3456_v60 = vmul.f32 0.5, %v2912_v33 }
 0x348   : > { %v7398_v47 = vpop.f32.mrf.mxu1  ;;  %5099 = verf.f32 %v3596_v56  ;;  %v7401_v55 = vadd.f32 %v7301_v22, %v2739_v3  ;;  %v2741_v37 = vadd.f32 %v2740_v25, %v7332_v0  ;;  %v3597_v13 = vmul.f32 0.70710677, %v7396_v51 }
 0x349   : > { %v5088_v39 = vpop.eup %5087  ;;  %v2742_v1 = vpop.f32.mrf.mxu0 }
 0x34a   : > { %v7405_v30 = vpop.f32.mrf.mxu1  ;;  %v3840_v54 = vadd.f32 1.0, %v5088_v39  ;;  %v3600_v2 = vmul.f32 0.70710677, %v7401_v55  ;;  %v7409_v27 = vadd.f32 %v7307_v21, %v2741_v37  ;;  %5101 = verf.f32 %v3597_v13 }
 0x34b   : > { %v5090_v15 = vpop.eup %5089  ;;  %v2743_v22 = vadd.f32 %v2742_v1, %v7328_v5  ;;  %v2744_v19 = vpop.f32.mrf.mxu0  ;;  %v3461_v37 = vmul.f32 0.5, %v7364_v20 }
 0x34c   : > { %v7412_v45 = vpop.f32.mrf.mxu1  ;;  %v3968_v9 = vmul.f32 %v3840_v54, %v3456_v60  ;;  %v3841_v32 = vadd.f32 1.0, %v5090_v15  ;;  %5103 = verf.f32 %v3600_v2  ;;  %v3601_v53 = vmul.f32 0.70710677, %v7409_v27 }
 0x34d   : > { %v5092_v33 = vpop.eup %5091  ;;  %v7417_v10 = vadd.f32 %v7309_v4, %v2743_v22  ;;  %v2745_v21 = vadd.f32 %v2744_v19, %v7332_v0  ;;  %v2748_v58 = vpop.f32.mrf.mxu0  ;;  %3406 = vmatmul.mubr.bf16.gmra.mxu0 %v7174_v57  ;;  %v3464_v60 = vmul.f32 0.5, %v7369_v41 }
 0x34e   : > { %v7420_v50 = vpop.f32.mrf.mxu1  ;;  %3253 = vmatmul.mubr.bf16.gmra.mxu1 %v7256_v6  ;;  %4096 = vst [vmem:[%s5804_s16] sm:$0xff] %v3968_v9  ;;  %v3969_v23 = vmul.f32 %v3841_v32, %v3457_v62  ;;  %v3844_v46 = vadd.f32 1.0, %v5092_v33  ;;  %v2749_v31 = vadd.f32 %v2748_v58, %v7328_v5  ;;  %3415 = vmatprep.mubr.bf16.mxu0 %v5586_v40  ;;  %5105 = verf.f32 %v3601_v53 }
 0x34f   : > { %3435 = vmatprep.mubr.bf16.mxu1 %v5586_v40  ;;  %v3604_v4 = vmul.f32 0.70710677, %v7417_v10  ;;  %v7431_v36 = vadd.f32 %v7313_v7, %v2745_v21  ;;  %v2750_v6 = vpop.f32.mrf.mxu0  ;;  %v5094_v61 = vpop.eup %5093  ;;  %v3465_v32 = vmul.f32 0.5, %v7377_v52 }
 0x350   : > { %v7433_v57 = vpop.f32.mrf.mxu1  ;;  %4097 = vst [vmem:[%s5804_s16 + $0x8] sm:$0xff] %v3969_v23  ;;  %v3972_v49 = vmul.f32 %v3844_v46, %v3460_v12  ;;  %v7437_v56 = vadd.f32 %v7315_v43, %v2749_v31  ;;  %v2751_v3 = vadd.f32 %v2750_v6, %v7332_v0  ;;  %v3845_v39 = vadd.f32 1.0, %v5094_v61 }
 0x351   : > { %v5096_v25 = vpop.eup %5095  ;;  %5107 = verf.f32 %v3604_v4  ;;  %v3605_v13 = vmul.f32 0.70710677, %v7431_v36  ;;  %v2752_v7 = vpop.f32.mrf.mxu0  ;;  %v3468_v12 = vmul.f32 0.5, %v7384_v63 }
 0x352   : > { %v7442_v1 = vpop.f32.mrf.mxu1  ;;  %4100 = vst [vmem:[%s5804_s16 + $0x20] sm:$0xff] %v3972_v49  ;;  %v3848_v54 = vadd.f32 1.0, %v5096_v25  ;;  %v3608_v43 = vmul.f32 0.70710677, %v7437_v56  ;;  %v7448_v2 = vadd.f32 %v7322_v42, %v2751_v3  ;;  %v3973_v22 = vmul.f32 %v3845_v39, %v3461_v37 }
 0x353   : > { %v5098_v15 = vpop.eup %5097  ;;  %5109 = verf.f32 %v3605_v13  ;;  %v2753_v20 = vadd.f32 %v2752_v7, %v7328_v5  ;;  %v2754_v19 = vpop.f32.mrf.mxu0  ;;  %v3472_v13 = vmul.f32 0.5, %v7401_v55  ;;  %v3473_v55 = vmul.f32 0.5, %v7409_v27 }
 0x354   : > { %v7451_v9 = vpop.f32.mrf.mxu1  ;;  %v3976_v62 = vmul.f32 %v3848_v54, %v3464_v60  ;;  %v3849_v33 = vadd.f32 1.0, %v5098_v15  ;;  %5111 = verf.f32 %v3608_v43  ;;  %4101 = vst [vmem:[%s5804_s16 + $0x28] sm:$0xff] %v3973_v22  ;;  %v3609_v53 = vmul.f32 0.70710677, %v7448_v2 }
 0x355   : > { %v5100_v41 = vpop.eup %5099  ;;  %v7457_v42 = vadd.f32 %v7326_v16, %v2753_v20  ;;  %v2755_v21 = vadd.f32 %v2754_v19, %v7332_v0  ;;  %v2758_v58 = vpop.f32.mrf.mxu0  ;;  %3416 = vmatmul.mubr.bf16.gmra.mxu0 %v7184_v59 }
 0x356   : > { %v7460_v23 = vpop.f32.mrf.mxu1  ;;  %3436 = vmatmul.mubr.bf16.vlgmr.msra.gmra.mxu1 %v7204_v8  ;;  %4104 = vst [vmem:[%s5804_s16 + $0x40] sm:$0xff] %v3976_v62  ;;  %v3977_v52 = vmul.f32 %v3849_v33, %v3465_v32  ;;  %v3852_v46 = vadd.f32 1.0, %v5100_v41  ;;  %v2759_v31 = vadd.f32 %v2758_v58, %v7328_v5  ;;  %3425 = vmatprep.mubr.bf16.mxu0 %v5586_v40  ;;  %5113 = verf.f32 %v3609_v53 }
 0x357   : > { %3445 = vmatprep.mubr.bf16.mxu1 %v5586_v40  ;;  %v3612_v16 = vmul.f32 0.70710677, %v7457_v42  ;;  %v7471_v4 = vadd.f32 %v7330_v17, %v2755_v21  ;;  %v2760_v59 = vpop.f32.mrf.mxu0  ;;  %v5102_v6 = vpop.eup %5101  ;;  %v3469_v40 = vmul.f32 0.5, %v7396_v51  ;;  %v3476_v58 = vmul.f32 0.5, %v7417_v10 }
 0x358   : > { %v7473_v8 = vpop.f32.mrf.mxu1  ;;  %4105 = vst [vmem:[%s5804_s16 + $0x48] sm:$0xff] %v3977_v52  ;;  %v3980_v63 = vmul.f32 %v3852_v46, %v3468_v12  ;;  %v7477_v61 = vadd.f32 %v7334_v38, %v2759_v31  ;;  %v2761_v49 = vadd.f32 %v2760_v59, %v7332_v0  ;;  %v3853_v25 = vadd.f32 1.0, %v5102_v6 }
 0x359   : > { %v5104_v3 = vpop.eup %5103  ;;  %5115 = verf.f32 %v3612_v16  ;;  %v3613_v37 = vmul.f32 0.70710677, %v7471_v4  ;;  %v2762_v17 = vpop.f32.mrf.mxu0  ;;  %v3477_v10 = vmul.f32 0.5, %v7431_v36 }
 0x35a   : > { %v7482_v39 = vpop.f32.mrf.mxu1  ;;  %4108 = vst [vmem:[%s5804_s16 + $0x60] sm:$0xff] %v3980_v63  ;;  %v3856_v7 = vadd.f32 1.0, %v5104_v3  ;;  %v3616_v38 = vmul.f32 0.70710677, %v7477_v61  ;;  %v7488_v60 = vadd.f32 %v7341_v48, %v2761_v49  ;;  %v3981_v54 = vmul.f32 %v3853_v25, %v3469_v40 }
 0x35b   : > { %5117 = verf.f32 %v3613_v37  ;;  %v2763_v51 = vadd.f32 %v2762_v17, %v7328_v5  ;;  %v2764_v43 = vpop.f32.mrf.mxu0  ;;  %v5106_v22 = vpop.eup %5105  ;;  %v3480_v40 = vmul.f32 0.5, %v7437_v56 }
 0x35c   : > { %v7491_v15 = vpop.f32.mrf.mxu1  ;;  %v3984_v20 = vmul.f32 %v3856_v7, %v3472_v13  ;;  %5119 = verf.f32 %v3616_v38  ;;  %v3617_v19 = vmul.f32 0.70710677, %v7488_v60  ;;  %4109 = vst [vmem:[%s5804_s16 + $0x68] sm:$0xff] %v3981_v54  ;;  %v3857_v62 = vadd.f32 1.0, %v5106_v22 }
 0x35d   : > { %v7497_v48 = vadd.f32 %v7344_v34, %v2763_v51  ;;  %v2765_v32 = vadd.f32 %v2764_v43, %v7332_v0  ;;  %v2768_v33 = vpop.f32.mrf.mxu0  ;;  %3426 = vmatmul.mubr.bf16.gmra.mxu0 %v7194_v18  ;;  %v3481_v51 = vmul.f32 0.5, %v7448_v2  ;;  %v3484_v2 = vmul.f32 0.5, %v7457_v42 }
 0x35e   : > { %v7500_v41 = vpop.f32.mrf.mxu1  ;;  %3446 = vmatmul.mubr.bf16.gmra.mxu1 %v7214_v28  ;;  %v5108_v53 = vpop.eup %5107  ;;  %4112 = vst [vmem:[%s5804_s16 + $0x80] sm:$0xff] %v3984_v20  ;;  %5121 = verf.f32 %v3617_v19  ;;  %v2769_v21 = vadd.f32 %v2768_v33, %v7328_v5  ;;  %v3985_v27 = vmul.f32 %v3857_v62, %v3473_v55 }
 0x35f   : > { %v3860_v34 = vadd.f32 1.0, %v5108_v53  ;;  %v3620_v52 = vmul.f32 0.70710677, %v7497_v48  ;;  %v2770_v12 = vpop.f32.mrf.mxu0  ;;  %v7511_v18 = vadd.f32 %v7349_v14, %v2765_v32 }
 0x360   : > { %v7508_v46 = vpop.f32.mrf.mxu1  ;;  %v5110_v31 = vpop.eup %5109  ;;  %v7514_v28 = vadd.f32 %v7355_v24, %v2769_v21  ;;  %v2771_v16 = vadd.f32 %v2770_v12, %v7332_v0  ;;  %4113 = vst [vmem:[%s5804_s16 + $0x88] sm:$0xff] %v3985_v27 }
 0x361   : > { %v5112_v59 = vpop.eup %5111  ;;  %v3988_v6 = vmul.f32 %v3860_v34, %v3476_v58  ;;  %v3861_v63 = vadd.f32 1.0, %v5110_v31  ;;  %5123 = verf.f32 %v3620_v52  ;;  %v2772_v49 = vpop.f32.mrf.mxu0  ;;  %v3621_v25 = vmul.f32 0.70710677, %v7511_v18 }
 0x362   : > { %v7519_v3 = vpop.f32.mrf.mxu1  ;;  %v3864_v14 = vadd.f32 1.0, %v5112_v59  ;;  %v3624_v37 = vmul.f32 0.70710677, %v7514_v28  ;;  %v7526_v17 = vadd.f32 %v7366_v44, %v2771_v16  ;;  %v2773_v36 = vadd.f32 %v2772_v49, %v7328_v5 }
 0x363   : > { %4116 = vst [vmem:[%s5804_s16 + $0xa0] sm:$0xff] %v3988_v6  ;;  %v3989_v24 = vmul.f32 %v3861_v63, %v3477_v10  ;;  %v2774_v13 = vpop.f32.mrf.mxu0  ;;  %v5114_v38 = vpop.eup %5113  ;;  %5125 = verf.f32 %v3621_v25  ;;  %v3485_v34 = vmul.f32 0.5, %v7471_v4  ;;  %v3488_v10 = vmul.f32 0.5, %v7477_v61 }
 0x364   : > { %v7529_v7 = vpop.f32.mrf.mxu1  ;;  %v3992_v54 = vmul.f32 %v3864_v14, %v3480_v40  ;;  %v2775_v56 = vadd.f32 %v2774_v13, %v7332_v0  ;;  %v3865_v43 = vadd.f32 1.0, %v5114_v38  ;;  %5127 = verf.f32 %v3624_v37 }
 0x365   : > { %4117 = vst [vmem:[%s5804_s16 + $0xa8] sm:$0xff] %v3989_v24  ;;  %v3625_v22 = vmul.f32 0.70710677, %v7526_v17  ;;  %v2778_v44 = vpop.f32.mrf.mxu0  ;;  %v7539_v55 = vadd.f32 %v7373_v26, %v2773_v36  ;;  %v3489_v14 = vmul.f32 0.5, %v7488_v60 }
 0x366   : > { %v7535_v20 = vpop.f32.mrf.mxu1  ;;  %v5116_v19 = vpop.eup %5115  ;;  %4120 = vst [vmem:[%s5804_s16 + $0xc0] sm:$0xff] %v3992_v54  ;;  %v7542_v62 = vadd.f32 %v7380_v11, %v2775_v56  ;;  %v2779_v32 = vadd.f32 %v2778_v44, %v7328_v5  ;;  %v3993_v33 = vmul.f32 %v3865_v43, %v3481_v51  ;;  %v3492_v43 = vmul.f32 0.5, %v7497_v48 }
 0x367   : > { %v3868_v53 = vadd.f32 1.0, %v5116_v19  ;;  %5129 = verf.f32 %v3625_v22  ;;  %v2780_v21 = vpop.f32.mrf.mxu0  ;;  %v3628_v26 = vmul.f32 0.70710677, %v7539_v55 }
 0x368   : > { %v7546_v27 = vpop.f32.mrf.mxu1  ;;  %v5118_v58 = vpop.eup %5117  ;;  %v3629_v52 = vmul.f32 0.70710677, %v7542_v62  ;;  %4121 = vst [vmem:[%s5804_s16 + $0xc8] sm:$0xff] %v3993_v33  ;;  %v7553_v16 = vadd.f32 %v7387_v35, %v2779_v32  ;;  %v2781_v42 = vadd.f32 %v2780_v21, %v7332_v0  ;;  %v3493_v21 = vmul.f32 0.5, %v7511_v18 }
 0x369   : > { %v5120_v11 = vpop.eup %5119  ;;  %v3996_v12 = vmul.f32 %v3868_v53, %v3484_v2  ;;  %v3869_v31 = vadd.f32 1.0, %v5118_v58  ;;  %v2782_v59 = vpop.f32.mrf.mxu0  ;;  %5131 = verf.f32 %v3628_v26  ;;  %v3496_v18 = vmul.f32 0.5, %v7514_v28 }
 0x36a   : > { %v7556_v6 = vpop.f32.mrf.mxu1  ;;  %v3872_v4 = vadd.f32 1.0, %v5120_v11  ;;  %v2783_v63 = vadd.f32 %v2782_v59, %v7328_v5  ;;  %5133 = verf.f32 %v3629_v52  ;;  %v3632_v35 = vmul.f32 0.70710677, %v7553_v16 }
 0x36b   : > { %v5122_v49 = vpop.eup %5121  ;;  %4124 = vst [vmem:[%s5804_s16 + $0xe0] sm:$0xff] %v3996_v12  ;;  %v3997_v40 = vmul.f32 %v3869_v31, %v3485_v34  ;;  %v2784_v25 = vpop.f32.mrf.mxu0  ;;  %v7566_v61 = vadd.f32 %v7398_v47, %v2781_v42 }
 0x36c   : > { %v7563_v24 = vpop.f32.mrf.mxu1  ;;  %v4000_v37 = vmul.f32 %v3872_v4, %v3488_v10  ;;  %v3873_v36 = vadd.f32 1.0, %v5122_v49  ;;  %v7569_v13 = vadd.f32 %v7405_v30, %v2783_v63  ;;  %5135 = verf.f32 %v3632_v35 }
 0x36d   : > { %4125 = vst [vmem:[%s5804_s16 + $0xe8] sm:$0xff] %v3997_v40  ;;  %v2785_v38 = vadd.f32 %v2784_v25, %v7332_v0  ;;  %v2788_v60 = vpop.f32.mrf.mxu0  ;;  %v3633_v22 = vmul.f32 0.70710677, %v7566_v61 }
 0x36e   : > { %v7573_v54 = vpop.f32.mrf.mxu1  ;;  %v5124_v56 = vpop.eup %5123  ;;  %4128 = vst [vmem:[%s5804_s16 + $0x100] sm:$0xff] %v4000_v37  ;;  %v4001_v51 = vmul.f32 %v3873_v36, %v3489_v14  ;;  %v3636_v44 = vmul.f32 0.70710677, %v7569_v13  ;;  %v2789_v19 = vadd.f32 %v2788_v60, %v7328_v5  ;;  %v3500_v60 = vmul.f32 0.5, %v7539_v55 }
 0x36f   : > { %v3876_v47 = vadd.f32 1.0, %v5124_v56  ;;  %v7580_v30 = vadd.f32 %v7412_v45, %v2785_v38  ;;  %v2790_v32 = vpop.f32.mrf.mxu0  ;;  %5137 = verf.f32 %v3633_v22  ;;  %v3501_v55 = vmul.f32 0.5, %v7542_v62 }
 0x370   : > { %v7583_v33 = vpop.f32.mrf.mxu1  ;;  %4129 = vst [vmem:[%s5804_s16 + $0x108] sm:$0xff] %v4001_v51  ;;  %v2791_v2 = vadd.f32 %v2790_v32, %v7332_v0  ;;  %v5126_v53 = vpop.eup %5125  ;;  %5139 = verf.f32 %v3636_v44  ;;  %v7592_v11 = vadd.f32 %v7420_v50, %v2789_v19  ;;  %v3497_v50 = vmul.f32 0.5, %v7526_v17 }
 0x371   : > { %v4004_v48 = vmul.f32 %v3876_v47, %v3492_v43  ;;  %v3637_v58 = vmul.f32 0.70710677, %v7580_v30  ;;  %v2792_v34 = vpop.f32.mrf.mxu0  ;;  %v5128_v26 = vpop.eup %5127  ;;  %v3877_v52 = vadd.f32 1.0, %v5126_v53 }
 0x372   : > { %v7589_v45 = vpop.f32.mrf.mxu1  ;;  %v7595_v12 = vadd.f32 %v7433_v57, %v2791_v2  ;;  %v2793_v31 = vadd.f32 %v2792_v34, %v7328_v5  ;;  %v3880_v42 = vadd.f32 1.0, %v5128_v26  ;;  %v3640_v49 = vmul.f32 0.70710677, %v7592_v11 }
 0x373   : > { %4132 = vst [vmem:[%s5804_s16 + $0x120] sm:$0xff] %v4004_v48  ;;  %5141 = verf.f32 %v3637_v58  ;;  %v2794_v59 = vpop.f32.mrf.mxu0  ;;  %v4005_v63 = vmul.f32 %v3877_v52, %v3493_v21 }
 0x374   : > { %v7600_v10 = vpop.f32.mrf.mxu1  ;;  %v5130_v4 = vpop.eup %5129  ;;  %v4008_v57 = vmul.f32 %v3880_v42, %v3496_v18  ;;  %v3641_v14 = vmul.f32 0.70710677, %v7595_v12  ;;  %v7606_v35 = vadd.f32 %v7442_v1, %v2793_v31  ;;  %5143 = verf.f32 %v3640_v49 }
 0x375   : > { %v3881_v40 = vadd.f32 1.0, %v5130_v4  ;;  %v2798_v28 = vpop.f32.mrf.mxu0  ;;  %4133 = vst [vmem:[%s5804_s16 + $0x128] sm:$0xff] %v4005_v63  ;;  %v2795_v37 = vadd.f32 %v2794_v59, %v7332_v0  ;;  %v3505_v4 = vmul.f32 0.5, %v7566_v61  ;;  %v3508_v61 = vmul.f32 0.5, %v7569_v13 }
 0x376   : > { %v7608_v25 = vpop.f32.mrf.mxu1  ;;  %v2799_v36 = vadd.f32 %v2798_v28, %v7328_v5  ;;  %v5132_v17 = vpop.eup %5131  ;;  %4136 = vst [vmem:[%s5804_s16 + $0x140] sm:$0xff] %v4008_v57  ;;  %5145 = verf.f32 %v3641_v14  ;;  %v3644_v56 = vmul.f32 0.70710677, %v7606_v35 }
 0x377   : > { %v4009_v38 = vmul.f32 %v3881_v40, %v3497_v50  ;;  %v2800_v1 = vpop.f32.mrf.mxu0  ;;  %v5134_v43 = vpop.eup %5133  ;;  %v3884_v22 = vadd.f32 1.0, %v5132_v17  ;;  %v7619_v47 = vadd.f32 %v7451_v9, %v2795_v37  ;;  %v3504_v9 = vmul.f32 0.5, %v7553_v16 }
 0x378   : > { %v7616_v51 = vpop.f32.mrf.mxu1  ;;  %v7622_v44 = vadd.f32 %v7460_v23, %v2799_v36  ;;  %v2801_v19 = vadd.f32 %v2800_v1, %v7332_v0  ;;  %v3885_v32 = vadd.f32 1.0, %v5134_v43  ;;  %5147 = verf.f32 %v3644_v56 }
 0x379   : > { %4137 = vst [vmem:[%s5804_s16 + $0x148] sm:$0xff] %v4009_v38  ;;  %v2802_v2 = vpop.f32.mrf.mxu0  ;;  %v5136_v48 = vpop.eup %5135  ;;  %v4012_v21 = vmul.f32 %v3884_v22, %v3500_v60  ;;  %v3645_v58 = vmul.f32 0.70710677, %v7619_v47 }
 0x37a   : > { %v7627_v53 = vpop.f32.mrf.mxu1  ;;  %v4013_v23 = vmul.f32 %v3885_v32, %v3501_v55  ;;  %v3888_v34 = vadd.f32 1.0, %v5136_v48  ;;  %v3648_v26 = vmul.f32 0.70710677, %v7622_v44  ;;  %v7633_v52 = vadd.f32 %v7473_v8, %v2801_v19 }
 0x37b   : > { %v2804_v62 = vpop.f32.mrf.mxu0  ;;  %4140 = vst [vmem:[%s5804_s16 + $0x160] sm:$0xff] %v4012_v21  ;;  %5149 = verf.f32 %v3645_v58  ;;  %v2803_v18 = vadd.f32 %v2802_v2, %v7328_v5  ;;  %v3512_v48 = vmul.f32 0.5, %v7592_v11  ;;  %v3513_v11 = vmul.f32 0.5, %v7595_v12 }
 0x37c   : > { %v7635_v31 = vpop.f32.mrf.mxu1  ;;  %v2805_v42 = vadd.f32 %v2804_v62, %v7332_v0  ;;  %v5138_v16 = vpop.eup %5137  ;;  %4141 = vst [vmem:[%s5804_s16 + $0x168] sm:$0xff] %v4013_v23  ;;  %v4016_v59 = vmul.f32 %v3888_v34, %v3504_v9  ;;  %5151 = verf.f32 %v3648_v26  ;;  %v3649_v63 = vmul.f32 0.70710677, %v7633_v52 }
 0x37d   : > { %v2808_v8 = vpop.f32.mrf.mxu0  ;;  %v5140_v49 = vpop.eup %5139  ;;  %v3889_v57 = vadd.f32 1.0, %v5138_v16  ;;  %v7646_v40 = vadd.f32 %v7482_v39, %v2803_v18  ;;  %v3509_v39 = vmul.f32 0.5, %v7580_v30 }
 0x37e   : > { %v7643_v50 = vpop.f32.mrf.mxu1  ;;  %v7649_v14 = vadd.f32 %v7491_v15, %v2805_v42  ;;  %v2809_v28 = vadd.f32 %v2808_v8, %v7328_v5  ;;  %4144 = vst [vmem:[%s5804_s16 + $0x180] sm:$0xff] %v4016_v59  ;;  %v3892_v37 = vadd.f32 1.0, %v5140_v49  ;;  %5153 = verf.f32 %v3649_v63 }
 0x37f   : > { %v2810_v36 = vpop.f32.mrf.mxu0  ;;  %v4017_v60 = vmul.f32 %v3889_v57, %v3505_v4  ;;  %v3652_v56 = vmul.f32 0.70710677, %v7646_v40 }
 0x380   : > { %v7654_v17 = vpop.f32.mrf.mxu1  ;;  %v5142_v38 = vpop.eup %5141  ;;  %v4020_v15 = vmul.f32 %v3892_v37, %v3508_v61  ;;  %v3653_v43 = vmul.f32 0.70710677, %v7649_v14  ;;  %v7660_v22 = vadd.f32 %v7500_v41, %v2809_v28  ;;  %v2811_v55 = vadd.f32 %v2810_v36, %v7332_v0 }
 0x381   : > { %v3893_v1 = vadd.f32 1.0, %v5142_v38  ;;  %v2812_v13 = vpop.f32.mrf.mxu0  ;;  %4145 = vst [vmem:[%s5804_s16 + $0x188] sm:$0xff] %v4017_v60  ;;  %5155 = verf.f32 %v3652_v56  ;;  %v5144_v30 = vpop.eup %5143  ;;  %v3517_v38 = vmul.f32 0.5, %v7619_v47  ;;  %v3520_v47 = vmul.f32 0.5, %v7622_v44 }
 0x382   : > { %v7662_v19 = vpop.f32.mrf.mxu1  ;;  %v2813_v32 = vadd.f32 %v2812_v13, %v7328_v5  ;;  %4148 = vst [vmem:[%s5804_s16 + $0x1a0] sm:$0xff] %v4020_v15  ;;  %5157 = verf.f32 %v3653_v43  ;;  %v3656_v21 = vmul.f32 0.70710677, %v7660_v22  ;;  %v3896_v23 = vadd.f32 1.0, %v5144_v30 }
 0x383   : > { %v4021_v2 = vmul.f32 %v3893_v1, %v3509_v39  ;;  %v2814_v41 = vpop.f32.mrf.mxu0  ;;  %v5146_v58 = vpop.eup %5145  ;;  %v7673_v34 = vadd.f32 %v7508_v46, %v2811_v55  ;;  %v3516_v46 = vmul.f32 0.5, %v7606_v35 }
 0x384   : > { %v7670_v9 = vpop.f32.mrf.mxu1  ;;  %v7676_v26 = vadd.f32 %v7519_v3, %v2813_v32  ;;  %v2815_v62 = vadd.f32 %v2814_v41, %v7332_v0  ;;  %v3897_v18 = vadd.f32 1.0, %v5146_v58  ;;  %5159 = verf.f32 %v3656_v21 }
 0x385   : > { %4149 = vst [vmem:[%s5804_s16 + $0x1a8] sm:$0xff] %v4021_v2  ;;  %v2818_v42 = vpop.f32.mrf.mxu0  ;;  %v5148_v59 = vpop.eup %5147  ;;  %v4024_v4 = vmul.f32 %v3896_v23, %v3512_v48  ;;  %v3657_v63 = vmul.f32 0.70710677, %v7673_v34 }
 0x386   : > { %v7681_v16 = vpop.f32.mrf.mxu1  ;;  %v4025_v3 = vmul.f32 %v3897_v18, %v3513_v11  ;;  %v3900_v8 = vadd.f32 1.0, %v5148_v59  ;;  %v3660_v49 = vmul.f32 0.70710677, %v7676_v26  ;;  %v7687_v57 = vadd.f32 %v7529_v7, %v2815_v62 }
 0x387   : > { %v2820_v12 = vpop.f32.mrf.mxu0  ;;  %4152 = vst [vmem:[%s5804_s16 + $0x1c0] sm:$0xff] %v4024_v4  ;;  %5161 = verf.f32 %v3657_v63  ;;  %v2819_v61 = vadd.f32 %v2818_v42, %v7328_v5  ;;  %v3524_v59 = vmul.f32 0.5, %v7646_v40  ;;  %v3525_v40 = vmul.f32 0.5, %v7649_v14 }
 0x388   : > { %v7689_v28 = vpop.f32.mrf.mxu1  ;;  %v2821_v37 = vadd.f32 %v2820_v12, %v7332_v0  ;;  %v5150_v35 = vpop.eup %5149  ;;  %4153 = vst [vmem:[%s5804_s16 + $0x1c8] sm:$0xff] %v4025_v3  ;;  %v4028_v36 = vmul.f32 %v3900_v8, %v3516_v46  ;;  %5163 = verf.f32 %v3660_v49  ;;  %v3661_v60 = vmul.f32 0.70710677, %v7687_v57 }
 0x389   : > { %v2822_v7 = vpop.f32.mrf.mxu0  ;;  %v5152_v56 = vpop.eup %5151  ;;  %v3901_v15 = vadd.f32 1.0, %v5150_v35  ;;  %v7700_v1 = vadd.f32 %v7535_v20, %v2819_v61  ;;  %v3521_v20 = vmul.f32 0.5, %v7633_v52 }
 0x38a   : > { %v7697_v39 = vpop.f32.mrf.mxu1  ;;  %v7703_v43 = vadd.f32 %v7546_v27, %v2821_v37  ;;  %v2823_v13 = vadd.f32 %v2822_v7, %v7328_v5  ;;  %4156 = vst [vmem:[%s5804_s16 + $0x1e0] sm:$0xff] %v4028_v36  ;;  %v3904_v55 = vadd.f32 1.0, %v5152_v56  ;;  %5165 = verf.f32 %v3661_v60 }
 0x38b   : > { %v2824_v32 = vpop.f32.mrf.mxu0  ;;  %v5154_v2 = vpop.eup %5153  ;;  %v4029_v48 = vmul.f32 %v3901_v15, %v3517_v38  ;;  %v3664_v21 = vmul.f32 0.70710677, %v7700_v1 }
 0x38c   : > { %v7708_v30 = vpop.f32.mrf.mxu1  ;;  %v4032_v27 = vmul.f32 %v3904_v55, %v3520_v47  ;;  %v3905_v41 = vadd.f32 1.0, %v5154_v2  ;;  %v3665_v58 = vmul.f32 0.70710677, %v7703_v43  ;;  %v7714_v23 = vadd.f32 %v7556_v6, %v2823_v13 }
 0x38d   : > { %v2828_v44 = vpop.f32.mrf.mxu0  ;;  %4157 = vst [vmem:[%s5804_s16 + $0x1e8] sm:$0xff] %v4029_v48  ;;  %5167 = verf.f32 %v3664_v21  ;;  %v2825_v11 = vadd.f32 %v2824_v32, %v7332_v0  ;;  %v3529_v2 = vmul.f32 0.5, %v7673_v34  ;;  %v3532_v34 = vmul.f32 0.5, %v7676_v26 }
 0x38e   : > { %v7716_v62 = vpop.f32.mrf.mxu1  ;;  %v2829_v18 = vadd.f32 %v2828_v44, %v7328_v5  ;;  %v5156_v52 = vpop.eup %5155  ;;  %4160 = vst [vmem:[%s5804_s16 + $0x200] sm:$0xff] %v4032_v27  ;;  %v4033_v42 = vmul.f32 %v3905_v41, %v3521_v20  ;;  %5169 = verf.f32 %v3665_v58  ;;  %v3668_v4 = vmul.f32 0.70710677, %v7714_v23 }
 0x38f   : > { %v2830_v6 = vpop.f32.mrf.mxu0  ;;  %v5158_v63 = vpop.eup %5157  ;;  %v3908_v3 = vadd.f32 1.0, %v5156_v52  ;;  %v7727_v8 = vadd.f32 %v7563_v24, %v2825_v11  ;;  %v3528_v24 = vmul.f32 0.5, %v7660_v22 }
 0x390   : > { %v7724_v46 = vpop.f32.mrf.mxu1  ;;  %v7730_v49 = vadd.f32 %v7573_v54, %v2829_v18  ;;  %v2831_v12 = vadd.f32 %v2830_v6, %v7332_v0  ;;  %4161 = vst [vmem:[%s5804_s16 + $0x208] sm:$0xff] %v4033_v42  ;;  %v3909_v61 = vadd.f32 1.0, %v5158_v63  ;;  %5171 = verf.f32 %v3668_v4 }
 0x391   : > { %v2832_v37 = vpop.f32.mrf.mxu0  ;;  %v5160_v36 = vpop.eup %5159  ;;  %v4036_v38 = vmul.f32 %v3908_v3, %v3524_v59  ;;  %v3669_v60 = vmul.f32 0.70710677, %v7727_v8 }
 0x392   : > { %v7735_v35 = vpop.f32.mrf.mxu1  ;;  %v4037_v54 = vmul.f32 %v3909_v61, %v3525_v40  ;;  %v3912_v7 = vadd.f32 1.0, %v5160_v36  ;;  %v3672_v56 = vmul.f32 0.70710677, %v7730_v49  ;;  %v7741_v15 = vadd.f32 %v7583_v33, %v2831_v12 }
 0x393   : > { %v2834_v14 = vpop.f32.mrf.mxu0  ;;  %4164 = vst [vmem:[%s5804_s16 + $0x220] sm:$0xff] %v4036_v38  ;;  %5173 = verf.f32 %v3669_v60  ;;  %v2833_v47 = vadd.f32 %v2832_v37, %v7328_v5  ;;  %v3536_v60 = vmul.f32 0.5, %v7700_v1 }
 0x394   : > { %v7743_v13 = vpop.f32.mrf.mxu1  ;;  %v2835_v55 = vadd.f32 %v2834_v14, %v7332_v0  ;;  %v5162_v22 = vpop.eup %5161  ;;  %4165 = vst [vmem:[%s5804_s16 + $0x228] sm:$0xff] %v4037_v54  ;;  %v4040_v32 = vmul.f32 %v3912_v7, %v3528_v24  ;;  %5175 = verf.f32 %v3672_v56  ;;  %v3673_v48 = vmul.f32 0.70710677, %v7741_v15 }
 0x395   : > { %v2838_v33 = vpop.f32.mrf.mxu0  ;;  %v5164_v21 = vpop.eup %5163  ;;  %v3913_v27 = vadd.f32 1.0, %v5162_v22  ;;  %v7754_v41 = vadd.f32 %v7589_v45, %v2833_v47  ;;  %v3533_v45 = vmul.f32 0.5, %v7687_v57  ;;  %v3537_v14 = vmul.f32 0.5, %v7703_v43 }
 0x396   : > { %v7751_v20 = vpop.f32.mrf.mxu1  ;;  %v7757_v58 = vadd.f32 %v7600_v10, %v2835_v55  ;;  %v2839_v44 = vadd.f32 %v2838_v33, %v7328_v5  ;;  %4168 = vst [vmem:[%s5804_s16 + $0x240] sm:$0xff] %v4040_v32  ;;  %v3916_v11 = vadd.f32 1.0, %v5164_v21  ;;  %5177 = verf.f32 %v3673_v48 }
 0x397   : > { %v2840_v18 = vpop.f32.mrf.mxu0  ;;  %v5166_v42 = vpop.eup %5165  ;;  %v4041_v59 = vmul.f32 %v3913_v27, %v3529_v2  ;;  %v3676_v4 = vmul.f32 0.70710677, %v7754_v41 }
 0x398   : > { %v7762_v52 = vpop.f32.mrf.mxu1  ;;  %v4044_v10 = vmul.f32 %v3916_v11, %v3532_v34  ;;  %v3917_v6 = vadd.f32 1.0, %v5166_v42  ;;  %v3677_v63 = vmul.f32 0.70710677, %v7757_v58  ;;  %v7768_v3 = vadd.f32 %v7608_v25, %v2839_v44 }
 0x399   : > { %v2842_v26 = vpop.f32.mrf.mxu0  ;;  %4169 = vst [vmem:[%s5804_s16 + $0x248] sm:$0xff] %v4041_v59  ;;  %5179 = verf.f32 %v3676_v4  ;;  %v2841_v40 = vadd.f32 %v2840_v18, %v7332_v0  ;;  %v3541_v4 = vmul.f32 0.5, %v7727_v8 }
 0x39a   : > { %v7770_v12 = vpop.f32.mrf.mxu1  ;;  %v2843_v61 = vadd.f32 %v2842_v26, %v7328_v5  ;;  %v5168_v57 = vpop.eup %5167  ;;  %4172 = vst [vmem:[%s5804_s16 + $0x260] sm:$0xff] %v4044_v10  ;;  %v4045_v37 = vmul.f32 %v3917_v6, %v3533_v45  ;;  %5181 = verf.f32 %v3677_v63  ;;  %v3680_v36 = vmul.f32 0.70710677, %v7768_v3 }
 0x39b   : > { %v2844_v38 = vpop.f32.mrf.mxu0  ;;  %v5170_v25 = vpop.eup %5169  ;;  %v3920_v54 = vadd.f32 1.0, %v5168_v57  ;;  %v7781_v7 = vadd.f32 %v7616_v51, %v2841_v40  ;;  %v3540_v51 = vmul.f32 0.5, %v7714_v23  ;;  %v3544_v26 = vmul.f32 0.5, %v7730_v49 }
 0x39c   : > { %v7777_v24 = vpop.f32.mrf.mxu1  ;;  %v7784_v56 = vadd.f32 %v7627_v53, %v2843_v61  ;;  %4173 = vst [vmem:[%s5804_s16 + $0x268] sm:$0xff] %v4045_v37  ;;  %v3921_v47 = vadd.f32 1.0, %v5170_v25  ;;  %5183 = verf.f32 %v3680_v36  ;;  %v2845_v55 = vadd.f32 %v2844_v38, %v7332_v0 }
 0x39d   : > { %v2848_v22 = vpop.f32.mrf.mxu0  ;;  %v5172_v1 = vpop.eup %5171  ;;  %v4048_v2 = vmul.f32 %v3920_v54, %v3536_v60  ;;  %v3681_v48 = vmul.f32 0.70710677, %v7781_v7 }
 0x39e   : > { %v7789_v32 = vpop.f32.mrf.mxu1  ;;  %v4049_v53 = vmul.f32 %v3921_v47, %v3537_v14  ;;  %v3924_v33 = vadd.f32 1.0, %v5172_v1  ;;  %v3684_v21 = vmul.f32 0.70710677, %v7784_v56  ;;  %v7795_v43 = vadd.f32 %v7635_v31, %v2845_v55 }
 0x39f   : > { %v2850_v27 = vpop.f32.mrf.mxu0  ;;  %4176 = vst [vmem:[%s5804_s16 + $0x280] sm:$0xff] %v4048_v2  ;;  %5185 = verf.f32 %v3681_v48  ;;  %v2849_v34 = vadd.f32 %v2848_v22, %v7328_v5  ;;  %v3548_v48 = vmul.f32 0.5, %v7754_v41 }
 0x3a0   : > { %v7797_v44 = vpop.f32.mrf.mxu1  ;;  %v2851_v11 = vadd.f32 %v2850_v27, %v7332_v0  ;;  %v5174_v23 = vpop.eup %5173  ;;  %4177 = vst [vmem:[%s5804_s16 + $0x288] sm:$0xff] %v4049_v53  ;;  %v4052_v18 = vmul.f32 %v3924_v33, %v3540_v51  ;;  %5187 = verf.f32 %v3684_v21  ;;  %v3685_v42 = vmul.f32 0.70710677, %v7795_v43 }
 0x3a1   : > { %v2852_v59 = vpop.f32.mrf.mxu0  ;;  %v5176_v31 = vpop.eup %5175  ;;  %v3925_v10 = vadd.f32 1.0, %v5174_v23  ;;  %v7808_v6 = vadd.f32 %v7643_v50, %v2849_v34  ;;  %v3545_v50 = vmul.f32 0.5, %v7741_v15  ;;  %v3549_v27 = vmul.f32 0.5, %v7757_v58 }
 0x3a2   : > { %v7804_v45 = vpop.f32.mrf.mxu1  ;;  %v7811_v63 = vadd.f32 %v7654_v17, %v2851_v11  ;;  %4180 = vst [vmem:[%s5804_s16 + $0x2a0] sm:$0xff] %v4052_v18  ;;  %v3928_v40 = vadd.f32 1.0, %v5176_v31  ;;  %5189 = verf.f32 %v3685_v42  ;;  %v2853_v61 = vadd.f32 %v2852_v59, %v7328_v5 }
 0x3a3   : > { %v2854_v57 = vpop.f32.mrf.mxu0  ;;  %v5178_v8 = vpop.eup %5177  ;;  %v4053_v36 = vmul.f32 %v3925_v10, %v3541_v4  ;;  %v3688_v38 = vmul.f32 0.70710677, %v7808_v6 }
 0x3a4   : > { %v7816_v37 = vpop.f32.mrf.mxu1  ;;  %v4056_v17 = vmul.f32 %v3928_v40, %v3544_v26  ;;  %v3929_v25 = vadd.f32 1.0, %v5178_v8  ;;  %v3689_v60 = vmul.f32 0.70710677, %v7811_v63  ;;  %v7822_v49 = vadd.f32 %v7662_v19, %v2853_v61 }
 0x3a5   : > { %v2858_v54 = vpop.f32.mrf.mxu0  ;;  %4181 = vst [vmem:[%s5804_s16 + $0x2a8] sm:$0xff] %v4053_v36  ;;  %5191 = verf.f32 %v3688_v38  ;;  %v2855_v47 = vadd.f32 %v2854_v57, %v7332_v0  ;;  %v1938_v40 = vsub.s32 2, %v7311_v29  ;;  %v1942_v36 = vsub.s32 3, %v7311_v29 }
 0x3a6   : > { %v7824_v14 = vpop.f32.mrf.mxu1  ;;  %v2859_v55 = vadd.f32 %v2858_v54, %v7328_v5  ;;  %v5180_v15 = vpop.eup %5179  ;;  %4184 = vst [vmem:[%s5804_s16 + $0x2c0] sm:$0xff] %v4056_v17  ;;  %v4057_v22 = vmul.f32 %v3929_v25, %v3545_v50  ;;  %5193 = verf.f32 %v3689_v60  ;;  %v3692_v1 = vmul.f32 0.70710677, %v7822_v49 }
 0x3a7   : > { %v2860_v2 = vpop.f32.mrf.mxu0  ;;  %v5182_v19 = vpop.eup %5181  ;;  %v3932_v53 = vadd.f32 1.0, %v5180_v15  ;;  %v7835_v33 = vadd.f32 %v7670_v9, %v2855_v47  ;;  %v3552_v9 = vmul.f32 0.5, %v7768_v3  ;;  %v3553_v25 = vmul.f32 0.5, %v7781_v7 }
 0x3a8   : > { %v7831_v51 = vpop.f32.mrf.mxu1  ;;  %v7838_v21 = vadd.f32 %v7681_v16, %v2859_v55  ;;  %4185 = vst [vmem:[%s5804_s16 + $0x2c8] sm:$0xff] %v4057_v22  ;;  %v3933_v34 = vadd.f32 1.0, %v5182_v19  ;;  %5195 = verf.f32 %v3692_v1  ;;  %v2861_v11 = vadd.f32 %v2860_v2, %v7332_v0 }
 0x3a9   : > { %v2862_v23 = vpop.f32.mrf.mxu0  ;;  %v5184_v42 = vpop.eup %5183  ;;  %v4060_v41 = vmul.f32 %v3932_v53, %v3548_v48  ;;  %v3693_v59 = vmul.f32 0.70710677, %v7835_v33  ;;  %v3556_v55 = vmul.f32 0.5, %v7784_v56 }
 0x3aa   : > { %v7843_v18 = vpop.f32.mrf.mxu1  ;;  %v4061_v16 = vmul.f32 %v3933_v34, %v3549_v27  ;;  %v3936_v31 = vadd.f32 1.0, %v5184_v42  ;;  %v3696_v4 = vmul.f32 0.70710677, %v7838_v21  ;;  %v7849_v58 = vadd.f32 %v7689_v28, %v2861_v11  ;;  %v5343_v11 = vld [vmem:[%s5797_s11] sm:$0xf] }
 0x3ab   : > { %v2864_v10 = vpop.f32.mrf.mxu0  ;;  %4188 = vst [vmem:[%s5804_s16 + $0x2e0] sm:$0xff] %v4060_v41  ;;  %5197 = verf.f32 %v3693_v59  ;;  %v2863_v61 = vadd.f32 %v2862_v23, %v7328_v5  ;;  %v7883_v23 = vrot.slane %v5343_v11, %v1938_v40 }
 0x3ac   : > { %v7851_v26 = vpop.f32.mrf.mxu1  ;;  %v2865_v3 = vadd.f32 %v2864_v10, %v7332_v0  ;;  %v5186_v57 = vpop.eup %5185  ;;  %4189 = vst [vmem:[%s5804_s16 + $0x2e8] sm:$0xff] %v4061_v16  ;;  %v4064_v8 = vmul.f32 %v3936_v31, %v3552_v9  ;;  %5199 = verf.f32 %v3696_v4  ;;  %v3697_v28 = vmul.f32 0.70710677, %v7849_v58 }
 0x3ad   : > { %v2868_v50 = vpop.f32.mrf.mxu0  ;;  %v5188_v17 = vpop.eup %5187  ;;  %v3937_v60 = vadd.f32 1.0, %v5186_v57  ;;  %v7864_v54 = vadd.f32 %v7697_v39, %v2863_v61  ;;  %v3557_v39 = vmul.f32 0.5, %v7795_v43  ;;  %v7888_v9 = vrot.slane %v5343_v11, %v1942_v36 }
 0x3ae   : > { %v7860_v38 = vpop.f32.mrf.mxu1  ;;  %v7867_v47 = vadd.f32 %v7708_v30, %v2865_v3  ;;  %4192 = vst [vmem:[%s5804_s16 + $0x300] sm:$0xff] %v4064_v8  ;;  %v3940_v29 = vadd.f32 1.0, %v5188_v17  ;;  %5201 = verf.f32 %v3697_v28  ;;  %v2869_v15 = vadd.f32 %v2868_v50, %v7328_v5 }
 0x3af   : > { %v2870_v22 = vpop.f32.mrf.mxu0  ;;  %v5190_v7 = vpop.eup %5189  ;;  %v4065_v2 = vmul.f32 %v3937_v60, %v3553_v25  ;;  %v3700_v30 = vmul.f32 0.70710677, %v7864_v54  ;;  %v3560_v10 = vmul.f32 0.5, %v7808_v6  ;;  %v3561_v3 = vmul.f32 0.5, %v7811_v63 }
 0x3b0   : > { %v7872_v1 = vpop.f32.mrf.mxu1  ;;  %v4068_v19 = vmul.f32 %v3940_v29, %v3556_v55  ;;  %v3941_v48 = vadd.f32 1.0, %v5190_v7  ;;  %v3701_v56 = vmul.f32 0.70710677, %v7867_v47  ;;  %v7878_v53 = vadd.f32 %v7716_v62, %v2869_v15 }
 0x3b1   : > { %v2872_v27 = vpop.f32.mrf.mxu0  ;;  %4193 = vst [vmem:[%s5804_s16 + $0x308] sm:$0xff] %v4065_v2  ;;  %5203 = verf.f32 %v3700_v30  ;;  %v2871_v43 = vadd.f32 %v2870_v22, %v7332_v0  ;;  %v3105_v6 = vadd.f32 %v7751_v20, %v7883_v23  ;;  %v3107_v15 = vadd.f32 %v7762_v52, %v7888_v9 }
 0x3b2   : > { %v7880_v34 = vpop.f32.mrf.mxu1  ;;  %v2873_v42 = vadd.f32 %v2872_v27, %v7328_v5  ;;  %v5192_v41 = vpop.eup %5191  ;;  %4196 = vst [vmem:[%s5804_s16 + $0x320] sm:$0xff] %v4068_v19  ;;  %v4069_v59 = vmul.f32 %v3941_v48, %v3557_v39  ;;  %5205 = verf.f32 %v3701_v56  ;;  %v3704_v62 = vmul.f32 0.70710677, %v7878_v53 }
 0x3b3   : > { %v2874_v16 = vpop.f32.mrf.mxu0  ;;  %v5194_v4 = vpop.eup %5193  ;;  %v3944_v40 = vadd.f32 1.0, %v5192_v41  ;;  %v7896_v61 = vadd.f32 %v7724_v46, %v2871_v43  ;;  %v3109_v20 = vadd.f32 %v7770_v12, %v7883_v23  ;;  %v3111_v7 = vadd.f32 %v7777_v24, %v7888_v9 }
 0x3b4   : > { %v7892_v31 = vpop.f32.mrf.mxu1  ;;  %v7899_v5 = vadd.f32 %v7735_v35, %v2873_v42  ;;  %4197 = vst [vmem:[%s5804_s16 + $0x328] sm:$0xff] %v4069_v59  ;;  %v3945_v57 = vadd.f32 1.0, %v5194_v4  ;;  %5207 = verf.f32 %v3704_v62  ;;  %v2875_v8 = vadd.f32 %v2874_v16, %v7332_v0 }
 0x3b5   : > { %v3297_v28 = vpop.f32.mrf.mxu0  ;;  %v5196_v50 = vpop.eup %5195  ;;  %v4072_v46 = vmul.f32 %v3944_v40, %v3560_v10  ;;  %v3564_v35 = vmul.f32 0.5, %v7822_v49  ;;  %v3705_v17 = vmul.f32 0.70710677, %v7896_v61  ;;  %v3565_v12 = vmul.f32 0.5, %v7835_v33 }
 0x3b6   : > { %v7904_v36 = vpop.f32.mrf.mxu1  ;;  %v4073_v25 = vmul.f32 %v3945_v57, %v3561_v3  ;;  %v3948_v63 = vadd.f32 1.0, %v5196_v50  ;;  %v3708_v60 = vmul.f32 0.70710677, %v7899_v5  ;;  %v7912_v0 = vadd.f32 %v7743_v13, %v2875_v8 }
 0x3b7   : > { %v3299_v29 = vpop.f32.mrf.mxu0  ;;  %4200 = vst [vmem:[%s5804_s16 + $0x340] sm:$0xff] %v4072_v46  ;;  %5209 = verf.f32 %v3705_v17  ;;  %v7921_v49 = vadd.f32 %v3297_v28, %v3105_v6  ;;  %v3568_v27 = vmul.f32 0.5, %v7838_v21  ;;  %v3115_v33 = vadd.f32 %v7789_v32, %v7883_v23 }
 0x3b8   : > { %v7914_v55 = vpop.f32.mrf.mxu1  ;;  %v5198_v22 = vpop.eup %5197  ;;  %4201 = vst [vmem:[%s5804_s16 + $0x348] sm:$0xff] %v4073_v25  ;;  %v4076_v13 = vmul.f32 %v3948_v63, %v3564_v35  ;;  %5211 = verf.f32 %v3708_v60  ;;  %v3709_v2 = vmul.f32 0.70710677, %v7912_v0  ;;  %v7931_v56 = vadd.f32 %v3299_v29, %v3107_v15 }
 0x3b9   : > { %v3301_v52 = vpop.f32.mrf.mxu0  ;;  %v5200_v30 = vpop.eup %5199  ;;  %v3949_v19 = vadd.f32 1.0, %v5198_v22  ;;  %v3586_v48 = vmul.f32 0.70710677, %v7921_v49  ;;  %v3569_v21 = vmul.f32 0.5, %v7849_v58  ;;  %v3117_v32 = vadd.f32 %v7797_v44, %v7888_v9 }
 0x3ba   : > { %v7927_v39 = vpop.f32.mrf.mxu1  ;;  %4204 = vst [vmem:[%s5804_s16 + $0x360] sm:$0xff] %v4076_v13  ;;  %v3952_v24 = vadd.f32 1.0, %v5200_v30  ;;  %5213 = verf.f32 %v3709_v2  ;;  %v7935_v11 = vadd.f32 %v3301_v52, %v3109_v20  ;;  %v3587_v62 = vmul.f32 0.70710677, %v7931_v56 }
 0x3bb   : > { %v3303_v42 = vpop.f32.mrf.mxu0  ;;  %v5202_v41 = vpop.eup %5201  ;;  %v4077_v59 = vmul.f32 %v3949_v19, %v3565_v12  ;;  %5215 = verf.f32 %v3586_v48  ;;  %v3119_v35 = vadd.f32 %v7804_v45, %v7883_v23  ;;  %v3572_v17 = vmul.f32 0.5, %v7864_v54 }
 0x3bc   : > { %v7937_v43 = vpop.f32.mrf.mxu1  ;;  %v4080_v16 = vmul.f32 %v3952_v24, %v3568_v27  ;;  %v3953_v4 = vadd.f32 1.0, %v5202_v41  ;;  %v3590_v10 = vmul.f32 0.70710677, %v7935_v11  ;;  %5217 = verf.f32 %v3587_v62 }
 0x3bd   : > { %v3307_v3 = vpop.f32.mrf.mxu0  ;;  %4205 = vst [vmem:[%s5804_s16 + $0x368] sm:$0xff] %v4077_v59  ;;  %v7947_v57 = vadd.f32 %v3303_v42, %v3111_v7  ;;  %v3573_v44 = vmul.f32 0.5, %v7867_v47  ;;  %v3121_v45 = vadd.f32 %v7816_v37, %v7888_v9  ;;  %v3576_v47 = vmul.f32 0.5, %v7878_v53 }
 0x3be   : > { %v7944_v40 = vpop.f32.mrf.mxu1  ;;  %v5204_v8 = vpop.eup %5203  ;;  %4208 = vst [vmem:[%s5804_s16 + $0x380] sm:$0xff] %v4080_v16  ;;  %v4081_v28 = vmul.f32 %v3953_v4, %v3569_v21  ;;  %5219 = verf.f32 %v3590_v10  ;;  %v7952_v50 = vadd.f32 %v3307_v3, %v3115_v33  ;;  %v3125_v19 = vadd.f32 %v7824_v14, %v7883_v23 }
 0x3bf   : > { %v3309_v6 = vpop.f32.mrf.mxu0  ;;  %v5206_v46 = vpop.eup %5205  ;;  %v3956_v25 = vadd.f32 1.0, %v5204_v8  ;;  %v3591_v63 = vmul.f32 0.70710677, %v7947_v57  ;;  %v3127_v24 = vadd.f32 %v7831_v51, %v7888_v9  ;;  %v3577_v14 = vmul.f32 0.5, %v7896_v61 }
 0x3c0   : > { %v7954_v58 = vpop.f32.mrf.mxu1  ;;  %4209 = vst [vmem:[%s5804_s16 + $0x388] sm:$0xff] %v4081_v28  ;;  %v3957_v60 = vadd.f32 1.0, %v5206_v46  ;;  %v3594_v29 = vmul.f32 0.70710677, %v7952_v50  ;;  %v7963_v15 = vadd.f32 %v3309_v6, %v3117_v32  ;;  %v3580_v21 = vmul.f32 0.5, %v7899_v5 }
 0x3c1   : > { %v3311_v22 = vpop.f32.mrf.mxu0  ;;  %v5208_v7 = vpop.eup %5207  ;;  %v4084_v54 = vmul.f32 %v3956_v25, %v3572_v17  ;;  %5221 = verf.f32 %v3591_v63  ;;  %v3129_v32 = vadd.f32 %v7843_v18, %v7883_v23  ;;  %v3581_v28 = vmul.f32 0.5, %v7912_v0 }
 0x3c2   : > { %v7965_v20 = vpop.f32.mrf.mxu1  ;;  %v7969_v13 = vadd.f32 %v3311_v22, %v3119_v35  ;;  %v4085_v2 = vmul.f32 %v3957_v60, %v3573_v44  ;;  %v3960_v52 = vadd.f32 1.0, %v5208_v7  ;;  %5223 = verf.f32 %v3594_v29 }
 0x3c3   : > { %v3313_v12 = vpop.f32.mrf.mxu0  ;;  %4212 = vst [vmem:[%s5804_s16 + $0x3a0] sm:$0xff] %v4084_v54  ;;  %v3595_v37 = vmul.f32 0.70710677, %v7963_v15  ;;  %v3458_v44 = vmul.f32 0.5, %v7921_v49  ;;  %v3131_v29 = vadd.f32 %v7851_v26, %v7888_v9  ;;  %v3135_v22 = vadd.f32 %v7860_v38, %v7883_v23 }
 0x3c4   : > { %v7972_v30 = vpop.f32.mrf.mxu1  ;;  %v3598_v48 = vmul.f32 0.70710677, %v7969_v13  ;;  %v5210_v27 = vpop.eup %5209  ;;  %4213 = vst [vmem:[%s5804_s16 + $0x3a8] sm:$0xff] %v4085_v2  ;;  %v4088_v53 = vmul.f32 %v3960_v52, %v3576_v47  ;;  %v7982_v42 = vadd.f32 %v3313_v12, %v3121_v45  ;;  %v3459_v52 = vmul.f32 0.5, %v7931_v56 }
 0x3c5   : > { %v3317_v33 = vpop.f32.mrf.mxu0  ;;  %v5212_v59 = vpop.eup %5211  ;;  %v3961_v62 = vadd.f32 1.0, %v5210_v27  ;;  %5225 = verf.f32 %v3595_v37  ;;  %v3462_v26 = vmul.f32 0.5, %v7935_v11 }
 0x3c6   : > { %v7984_v41 = vpop.f32.mrf.mxu1  ;;  %v7987_v16 = vadd.f32 %v3317_v33, %v3125_v19  ;;  %4216 = vst [vmem:[%s5804_s16 + $0x3c0] sm:$0xff] %v4088_v53  ;;  %v3964_v4 = vadd.f32 1.0, %v5212_v59  ;;  %5227 = verf.f32 %v3598_v48  ;;  %v3599_v51 = vmul.f32 0.70710677, %v7982_v42 }
 0x3c7   : > { %v3319_v3 = vpop.f32.mrf.mxu0  ;;  %v5214_v8 = vpop.eup %5213  ;;  %v4089_v61 = vmul.f32 %v3961_v62, %v3577_v14  ;;  %v3137_v33 = vadd.f32 %v7872_v1, %v7888_v9 }
 0x3c8   : > { %v7992_v10 = vpop.f32.mrf.mxu1  ;;  %v3602_v6 = vmul.f32 0.70710677, %v7987_v16  ;;  %v5216_v46 = vpop.eup %5215  ;;  %v4092_v5 = vmul.f32 %v3964_v4, %v3580_v21  ;;  %v3965_v35 = vadd.f32 1.0, %v5214_v8  ;;  %5229 = verf.f32 %v3599_v51 }
 0x3c9   : > { %v7998_v17 = vadd.f32 %v3319_v3, %v3127_v24  ;;  %v3321_v63 = vpop.f32.mrf.mxu0  ;;  %4217 = vst [vmem:[%s5804_s16 + $0x3c8] sm:$0xff] %v4089_v61  ;;  %v3842_v60 = vadd.f32 1.0, %v5216_v46  ;;  %v5218_v0 = vpop.eup %5217  ;;  %v3139_v4 = vadd.f32 %v7880_v34, %v7883_v23  ;;  %v3463_v51 = vmul.f32 0.5, %v7947_v57 }
 0x3ca   : > { %v8000_v25 = vpop.f32.mrf.mxu1  ;;  %5231 = verf.f32 %v3602_v6  ;;  %v8004_v18 = vadd.f32 %v3321_v63, %v3129_v32  ;;  %4220 = vst [vmem:[%s5804_s16 + $0x3e0] sm:$0xff] %v4092_v5  ;;  %v4093_v7 = vmul.f32 %v3965_v35, %v3581_v28  ;;  %v3843_v12 = vadd.f32 1.0, %v5218_v0 }
 0x3cb   : > { %v3603_v45 = vmul.f32 0.70710677, %v7998_v17  ;;  %v3323_v49 = vpop.f32.mrf.mxu0  ;;  %v5220_v2 = vpop.eup %5219  ;;  %v3970_v47 = vmul.f32 %v3842_v60, %v3458_v44  ;;  %v3466_v32 = vmul.f32 0.5, %v7952_v50  ;;  %v3141_v5 = vadd.f32 %v7892_v31, %v7888_v9 }
 0x3cc   : > { %v8012_v54 = vpop.f32.mrf.mxu1  ;;  %v3606_v19 = vmul.f32 0.70710677, %v8004_v18  ;;  %4221 = vst [vmem:[%s5804_s16 + $0x3e8] sm:$0xff] %v4093_v7  ;;  %v3846_v37 = vadd.f32 1.0, %v5220_v2  ;;  %v8018_v38 = vadd.f32 %v3323_v49, %v3131_v29  ;;  %v3971_v24 = vmul.f32 %v3843_v12, %v3459_v52 }
 0x3cd   : > { %5233 = verf.f32 %v3603_v45  ;;  %v3327_v27 = vpop.f32.mrf.mxu0  ;;  %4098 = vst [vmem:[%s5804_s16 + $0x10] sm:$0xff] %v3970_v47  ;;  %v3145_v0 = vadd.f32 %v7904_v36, %v7883_v23  ;;  %v3467_v29 = vmul.f32 0.5, %v7963_v15  ;;  %v3470_v45 = vmul.f32 0.5, %v7969_v13 }
 0x3ce   : > { %v8020_v48 = vpop.f32.mrf.mxu1  ;;  %5235 = verf.f32 %v3606_v19  ;;  %v8023_v53 = vadd.f32 %v3327_v27, %v3135_v22  ;;  %v5222_v56 = vpop.eup %5221  ;;  %v3974_v59 = vmul.f32 %v3846_v37, %v3462_v26  ;;  %v3607_v11 = vmul.f32 0.70710677, %v8018_v38  ;;  %4099 = vst [vmem:[%s5804_s16 + $0x18] sm:$0xff] %v3971_v24 }
 0x3cf   : > { %v3329_v62 = vpop.f32.mrf.mxu0  ;;  %v5224_v21 = vpop.eup %5223  ;;  %v3847_v3 = vadd.f32 1.0, %v5222_v56  ;;  %v3147_v36 = vadd.f32 %v7914_v55, %v7888_v9  ;;  %v3471_v13 = vmul.f32 0.5, %v7982_v42  ;;  %v3474_v55 = vmul.f32 0.5, %v7987_v16 }
 0x3d0   : > { %v8028_v14 = vpop.f32.mrf.mxu1  ;;  %v3610_v8 = vmul.f32 0.70710677, %v8023_v53  ;;  %4102 = vst [vmem:[%s5804_s16 + $0x30] sm:$0xff] %v3974_v59  ;;  %v3850_v1 = vadd.f32 1.0, %v5224_v21  ;;  %5237 = verf.f32 %v3607_v11  ;;  %v8037_v61 = vadd.f32 %v3329_v62, %v3137_v33 }
 0x3d1   : > { %v3331_v6 = vpop.f32.mrf.mxu0  ;;  %v3975_v46 = vmul.f32 %v3847_v3, %v3463_v51  ;;  %v3149_v33 = vadd.f32 %v7927_v39, %v7883_v23  ;;  %v3151_v16 = vadd.f32 %v7937_v43, %v7888_v9 }
 0x3d2   : > { %v8039_v28 = vpop.f32.mrf.mxu1  ;;  %5239 = verf.f32 %v3610_v8  ;;  %v8041_v34 = vadd.f32 %v3331_v6, %v3139_v4  ;;  %v5226_v57 = vpop.eup %5225  ;;  %v3978_v35 = vmul.f32 %v3850_v1, %v3466_v32  ;;  %v3611_v50 = vmul.f32 0.70710677, %v8037_v61 }
 0x3d3   : > { %v3333_v44 = vpop.f32.mrf.mxu0  ;;  %v5228_v60 = vpop.eup %5227  ;;  %4103 = vst [vmem:[%s5804_s16 + $0x38] sm:$0xff] %v3975_v46  ;;  %v3851_v22 = vadd.f32 1.0, %v5226_v57  ;;  %v3475_v32 = vmul.f32 0.5, %v7998_v17 }
 0x3d4   : > { %v8046_v63 = vpop.f32.mrf.mxu1  ;;  %v3614_v7 = vmul.f32 0.70710677, %v8041_v34  ;;  %4106 = vst [vmem:[%s5804_s16 + $0x50] sm:$0xff] %v3978_v35  ;;  %v3854_v31 = vadd.f32 1.0, %v5228_v60  ;;  %5241 = verf.f32 %v3611_v50  ;;  %v8055_v49 = vadd.f32 %v3333_v44, %v3141_v5 }
 0x3d5   : > { %v3337_v47 = vpop.f32.mrf.mxu0  ;;  %v5230_v52 = vpop.eup %5229  ;;  %v3979_v15 = vmul.f32 %v3851_v22, %v3467_v29  ;;  %v3155_v5 = vadd.f32 %v7944_v40, %v7883_v23  ;;  %v3478_v35 = vmul.f32 0.5, %v8004_v18  ;;  %v3157_v18 = vadd.f32 %v7954_v58, %v7888_v9 }
 0x3d6   : > { %v8057_v2 = vpop.f32.mrf.mxu1  ;;  %5243 = verf.f32 %v3614_v7  ;;  %v8061_v12 = vadd.f32 %v3337_v47, %v3145_v0  ;;  %v3982_v26 = vmul.f32 %v3854_v31, %v3470_v45  ;;  %v3855_v37 = vadd.f32 1.0, %v5230_v52 }
 0x3d7   : > { %v5232_v19 = vpop.eup %5231  ;;  %v3615_v27 = vmul.f32 0.70710677, %v8055_v49  ;;  %v3339_v56 = vpop.f32.mrf.mxu0  ;;  %4107 = vst [vmem:[%s5804_s16 + $0x58] sm:$0xff] %v3979_v15  ;;  %v3479_v45 = vmul.f32 0.5, %v8018_v38  ;;  %v3159_v15 = vadd.f32 %v7965_v20, %v7883_v23 }
 0x3d8   : > { %v8065_v24 = vpop.f32.mrf.mxu1  ;;  %v3858_v59 = vadd.f32 1.0, %v5232_v19  ;;  %v3618_v11 = vmul.f32 0.70710677, %v8061_v12  ;;  %4110 = vst [vmem:[%s5804_s16 + $0x70] sm:$0xff] %v3982_v26  ;;  %v3983_v62 = vmul.f32 %v3855_v37, %v3471_v13  ;;  %v8073_v42 = vadd.f32 %v3339_v56, %v3147_v36 }
 0x3d9   : > { %5245 = verf.f32 %v3615_v27  ;;  %v3341_v4 = vpop.f32.mrf.mxu0  ;;  %v3482_v19 = vmul.f32 0.5, %v8023_v53  ;;  %v3161_v53 = vadd.f32 %v7972_v30, %v7888_v9 }
 0x3da   : > { %v8075_v21 = vpop.f32.mrf.mxu1  ;;  %v5234_v51 = vpop.eup %5233  ;;  %v3986_v3 = vmul.f32 %v3858_v59, %v3474_v55  ;;  %5247 = verf.f32 %v3618_v11  ;;  %v8077_v39 = vadd.f32 %v3341_v4, %v3149_v33  ;;  %4111 = vst [vmem:[%s5804_s16 + $0x78] sm:$0xff] %v3983_v62  ;;  %v3619_v6 = vmul.f32 0.70710677, %v8073_v42 }
 0x3db   : > { %v5236_v8 = vpop.eup %5235  ;;  %v3859_v1 = vadd.f32 1.0, %v5234_v51  ;;  %v3343_v57 = vpop.f32.mrf.mxu0  ;;  %v3483_v59 = vmul.f32 0.5, %v8037_v61 }
 0x3dc   : > { %v8084_v46 = vpop.f32.mrf.mxu1  ;;  %4114 = vst [vmem:[%s5804_s16 + $0x90] sm:$0xff] %v3986_v3  ;;  %v3862_v50 = vadd.f32 1.0, %v5236_v8  ;;  %v3622_v44 = vmul.f32 0.70710677, %v8077_v39  ;;  %5249 = verf.f32 %v3619_v6  ;;  %v8091_v60 = vadd.f32 %v3343_v57, %v3151_v16 }
 0x3dd   : > { %v3987_v43 = vmul.f32 %v3859_v1, %v3475_v32  ;;  %v3347_v0 = vpop.f32.mrf.mxu0  ;;  %v5238_v29 = vpop.eup %5237  ;;  %v3165_v3 = vadd.f32 %v7984_v41, %v7883_v23  ;;  %v3486_v8 = vmul.f32 0.5, %v8041_v34  ;;  %v3167_v34 = vadd.f32 %v7992_v10, %v7888_v9 }
 0x3de   : > { %v8093_v17 = vpop.f32.mrf.mxu1  ;;  %v3990_v22 = vmul.f32 %v3862_v50, %v3478_v35  ;;  %5251 = verf.f32 %v3622_v44  ;;  %v8095_v7 = vadd.f32 %v3347_v0, %v3155_v5  ;;  %v3863_v31 = vadd.f32 1.0, %v5238_v29 }
 0x3df   : > { %v5240_v40 = vpop.eup %5239  ;;  %4115 = vst [vmem:[%s5804_s16 + $0x98] sm:$0xff] %v3987_v43  ;;  %v3623_v47 = vmul.f32 0.70710677, %v8091_v60  ;;  %v3349_v36 = vpop.f32.mrf.mxu0  ;;  %v3487_v50 = vmul.f32 0.5, %v8055_v49 }
 0x3e0   : > { %v8102_v52 = vpop.f32.mrf.mxu1  ;;  %4118 = vst [vmem:[%s5804_s16 + $0xb0] sm:$0xff] %v3990_v22  ;;  %v3866_v26 = vadd.f32 1.0, %v5240_v40  ;;  %v3626_v13 = vmul.f32 0.70710677, %v8095_v7  ;;  %v3991_v58 = vmul.f32 %v3863_v31, %v3479_v45  ;;  %v8109_v37 = vadd.f32 %v3349_v36, %v3157_v18 }
 0x3e1   : > { %5253 = verf.f32 %v3623_v47  ;;  %v3351_v27 = vpop.f32.mrf.mxu0  ;;  %v5242_v56 = vpop.eup %5241  ;;  %v3169_v22 = vadd.f32 %v8000_v25, %v7883_v23  ;;  %v3490_v40 = vmul.f32 0.5, %v8061_v12  ;;  %v3171_v12 = vadd.f32 %v8012_v54, %v7888_v9 }
 0x3e2   : > { %v8111_v38 = vpop.f32.mrf.mxu1  ;;  %v3994_v33 = vmul.f32 %v3866_v26, %v3482_v19  ;;  %5255 = verf.f32 %v3626_v13  ;;  %v8113_v55 = vadd.f32 %v3351_v27, %v3159_v15  ;;  %4119 = vst [vmem:[%s5804_s16 + $0xb8] sm:$0xff] %v3991_v58  ;;  %v3867_v11 = vadd.f32 1.0, %v5242_v56 }
 0x3e3   : > { %v5244_v20 = vpop.eup %5243  ;;  %v3627_v62 = vmul.f32 0.70710677, %v8109_v37  ;;  %v3353_v51 = vpop.f32.mrf.mxu0  ;;  %v3491_v26 = vmul.f32 0.5, %v8073_v42 }
 0x3e4   : > { %v8120_v4 = vpop.f32.mrf.mxu1  ;;  %4122 = vst [vmem:[%s5804_s16 + $0xd0] sm:$0xff] %v3994_v33  ;;  %v3870_v16 = vadd.f32 1.0, %v5244_v20  ;;  %v3630_v32 = vmul.f32 0.70710677, %v8113_v55  ;;  %v3995_v30 = vmul.f32 %v3867_v11, %v3483_v59  ;;  %v8127_v1 = vadd.f32 %v3353_v51, %v3161_v53 }
 0x3e5   : > { %5257 = verf.f32 %v3627_v62  ;;  %v3357_v6 = vpop.f32.mrf.mxu0  ;;  %v3175_v33 = vadd.f32 %v8020_v48, %v7883_v23  ;;  %v3494_v20 = vmul.f32 0.5, %v8077_v39  ;;  %v3177_v39 = vadd.f32 %v8028_v14, %v7888_v9 }
 0x3e6   : > { %v8129_v61 = vpop.f32.mrf.mxu1  ;;  %v5246_v57 = vpop.eup %5245  ;;  %v3998_v5 = vmul.f32 %v3870_v16, %v3486_v8  ;;  %5259 = verf.f32 %v3630_v32  ;;  %v8131_v35 = vadd.f32 %v3357_v6, %v3165_v3  ;;  %4123 = vst [vmem:[%s5804_s16 + $0xd8] sm:$0xff] %v3995_v30  ;;  %v3631_v43 = vmul.f32 0.70710677, %v8127_v1 }
 0x3e7   : > { %v5248_v41 = vpop.eup %5247  ;;  %v3871_v44 = vadd.f32 1.0, %v5246_v57  ;;  %v3359_v29 = vpop.f32.mrf.mxu0  ;;  %v3495_v16 = vmul.f32 0.5, %v8091_v60 }
 0x3e8   : > { %v8138_v0 = vpop.f32.mrf.mxu1  ;;  %4126 = vst [vmem:[%s5804_s16 + $0xf0] sm:$0xff] %v3998_v5  ;;  %v3874_v18 = vadd.f32 1.0, %v5248_v41  ;;  %v3634_v45 = vmul.f32 0.70710677, %v8131_v35  ;;  %5261 = verf.f32 %v3631_v43  ;;  %v8145_v31 = vadd.f32 %v3359_v29, %v3167_v34 }
 0x3e9   : > { %v3999_v10 = vmul.f32 %v3871_v44, %v3487_v50  ;;  %v3361_v47 = vpop.f32.mrf.mxu0  ;;  %v5250_v36 = vpop.eup %5249  ;;  %v3179_v5 = vadd.f32 %v8039_v28, %v7883_v23  ;;  %v3498_v41 = vmul.f32 0.5, %v8095_v7  ;;  %v3181_v7 = vadd.f32 %v8046_v63, %v7888_v9 }
 0x3ea   : > { %v8147_v49 = vpop.f32.mrf.mxu1  ;;  %v4002_v15 = vmul.f32 %v3874_v18, %v3490_v40  ;;  %5263 = verf.f32 %v3634_v45  ;;  %v8149_v19 = vadd.f32 %v3361_v47, %v3169_v22  ;;  %v3875_v13 = vadd.f32 1.0, %v5250_v36 }
 0x3eb   : > { %v5252_v25 = vpop.eup %5251  ;;  %4127 = vst [vmem:[%s5804_s16 + $0xf8] sm:$0xff] %v3999_v10  ;;  %v3635_v58 = vmul.f32 0.70710677, %v8145_v31  ;;  %v3363_v56 = vpop.f32.mrf.mxu0  ;;  %v3499_v18 = vmul.f32 0.5, %v8109_v37 }
 0x3ec   : > { %v8156_v27 = vpop.f32.mrf.mxu1  ;;  %4130 = vst [vmem:[%s5804_s16 + $0x110] sm:$0xff] %v4002_v15  ;;  %v3878_v53 = vadd.f32 1.0, %v5252_v25  ;;  %v3638_v59 = vmul.f32 0.70710677, %v8149_v19  ;;  %v4003_v54 = vmul.f32 %v3875_v13, %v3491_v26  ;;  %v8163_v11 = vadd.f32 %v3363_v56, %v3171_v12 }
 0x3ed   : > { %5265 = verf.f32 %v3635_v58  ;;  %v3367_v62 = vpop.f32.mrf.mxu0  ;;  %v3185_v15 = vadd.f32 %v8057_v2, %v7883_v23  ;;  %v3502_v25 = vmul.f32 0.5, %v8113_v55  ;;  %v3187_v55 = vadd.f32 %v8065_v24, %v7888_v9 }
 0x3ee   : > { %v8165_v42 = vpop.f32.mrf.mxu1  ;;  %v5254_v51 = vpop.eup %5253  ;;  %v4006_v3 = vmul.f32 %v3878_v53, %v3494_v20  ;;  %5267 = verf.f32 %v3638_v59  ;;  %v8167_v8 = vadd.f32 %v3367_v62, %v3175_v33  ;;  %4131 = vst [vmem:[%s5804_s16 + $0x118] sm:$0xff] %v4003_v54  ;;  %v3639_v30 = vmul.f32 0.70710677, %v8163_v11 }
 0x3ef   : > { %v5256_v48 = vpop.eup %5255  ;;  %v3879_v32 = vadd.f32 1.0, %v5254_v51  ;;  %v3369_v57 = vpop.f32.mrf.mxu0  ;;  %v3503_v53 = vmul.f32 0.5, %v8127_v1 }
 0x3f0   : > { %v8174_v6 = vpop.f32.mrf.mxu1  ;;  %4134 = vst [vmem:[%s5804_s16 + $0x130] sm:$0xff] %v4006_v3  ;;  %v3882_v34 = vadd.f32 1.0, %v5256_v48  ;;  %v3642_v50 = vmul.f32 0.70710677, %v8167_v8  ;;  %5269 = verf.f32 %v3639_v30  ;;  %v8181_v44 = vadd.f32 %v3369_v57, %v3177_v39 }
 0x3f1   : > { %v4007_v14 = vmul.f32 %v3879_v32, %v3495_v16  ;;  %v3371_v43 = vpop.f32.mrf.mxu0  ;;  %v3189_v3 = vadd.f32 %v8075_v21, %v7883_v23  ;;  %v3506_v48 = vmul.f32 0.5, %v8131_v35  ;;  %v3191_v35 = vadd.f32 %v8084_v46, %v7888_v9 }
 0x3f2   : > { %v8183_v60 = vpop.f32.mrf.mxu1  ;;  %v5258_v29 = vpop.eup %5257  ;;  %v4010_v22 = vmul.f32 %v3882_v34, %v3498_v41  ;;  %5271 = verf.f32 %v3642_v50  ;;  %v8185_v40 = vadd.f32 %v3371_v43, %v3179_v5  ;;  %v3643_v10 = vmul.f32 0.70710677, %v8181_v44 }
 0x3f3   : > { %v5260_v28 = vpop.eup %5259  ;;  %4135 = vst [vmem:[%s5804_s16 + $0x138] sm:$0xff] %v4007_v14  ;;  %v3883_v45 = vadd.f32 1.0, %v5258_v29  ;;  %v3373_v36 = vpop.f32.mrf.mxu0  ;;  %v3507_v34 = vmul.f32 0.5, %v8145_v31 }
 0x3f4   : > { %v8192_v47 = vpop.f32.mrf.mxu1  ;;  %4138 = vst [vmem:[%s5804_s16 + $0x150] sm:$0xff] %v4010_v22  ;;  %v3886_v12 = vadd.f32 1.0, %v5260_v28  ;;  %v3646_v26 = vmul.f32 0.70710677, %v8185_v40  ;;  %5273 = verf.f32 %v3643_v10  ;;  %v8199_v13 = vadd.f32 %v3373_v36, %v3181_v7 }
 0x3f5   : > { %v4011_v63 = vmul.f32 %v3883_v45, %v3499_v18  ;;  %v3377_v58 = vpop.f32.mrf.mxu0  ;;  %v5262_v56 = vpop.eup %5261  ;;  %v3195_v22 = vadd.f32 %v8093_v17, %v7883_v23  ;;  %v3510_v28 = vmul.f32 0.5, %v8149_v19  ;;  %v3197_v19 = vadd.f32 %v8102_v52, %v7888_v9 }
 0x3f6   : > { %v8201_v37 = vpop.f32.mrf.mxu1  ;;  %v4014_v33 = vmul.f32 %v3886_v12, %v3502_v25  ;;  %5275 = verf.f32 %v3646_v26  ;;  %v8203_v20 = vadd.f32 %v3377_v58, %v3185_v15  ;;  %v3887_v59 = vadd.f32 1.0, %v5262_v56 }
 0x3f7   : > { %v5264_v2 = vpop.eup %5263  ;;  %4139 = vst [vmem:[%s5804_s16 + $0x158] sm:$0xff] %v4011_v63  ;;  %v3647_v54 = vmul.f32 0.70710677, %v8199_v13  ;;  %v3379_v51 = vpop.f32.mrf.mxu0  ;;  %v3511_v12 = vmul.f32 0.5, %v8163_v11 }
 0x3f8   : > { %v8210_v62 = vpop.f32.mrf.mxu1  ;;  %4142 = vst [vmem:[%s5804_s16 + $0x170] sm:$0xff] %v4014_v33  ;;  %v3890_v39 = vadd.f32 1.0, %v5264_v2  ;;  %v3650_v16 = vmul.f32 0.70710677, %v8203_v20  ;;  %v4015_v24 = vmul.f32 %v3887_v59, %v3503_v53  ;;  %v8217_v32 = vadd.f32 %v3379_v51, %v3187_v55 }
 0x3f9   : > { %5277 = verf.f32 %v3647_v54  ;;  %v3381_v30 = vpop.f32.mrf.mxu0  ;;  %v3199_v33 = vadd.f32 %v8111_v38, %v7883_v23  ;;  %v3514_v2 = vmul.f32 0.5, %v8167_v8 }
 0x3fa   : > { %v8219_v1 = vpop.f32.mrf.mxu1  ;;  %v5266_v57 = vpop.eup %5265  ;;  %v4018_v5 = vmul.f32 %v3890_v39, %v3506_v48  ;;  %5279 = verf.f32 %v3650_v16  ;;  %v8221_v41 = vadd.f32 %v3381_v30, %v3189_v3  ;;  %4143 = vst [vmem:[%s5804_s16 + $0x178] sm:$0xff] %v4015_v24  ;;  %v3651_v14 = vmul.f32 0.70710677, %v8217_v32 }
 0x3fb   : > { %v5268_v21 = vpop.eup %5267  ;;  %v3891_v50 = vadd.f32 1.0, %v5266_v57  ;;  %v3383_v29 = vpop.f32.mrf.mxu0  ;;  %v3201_v3 = vadd.f32 %v8120_v4, %v7888_v9  ;;  %v3205_v39 = vadd.f32 %v8129_v61, %v7883_v23  ;;  %v3515_v16 = vmul.f32 0.5, %v8181_v44 }
 0x3fc   : > { %v8228_v43 = vpop.f32.mrf.mxu1  ;;  %4146 = vst [vmem:[%s5804_s16 + $0x190] sm:$0xff] %v4018_v5  ;;  %v3894_v7 = vadd.f32 1.0, %v5268_v21  ;;  %v3654_v18 = vmul.f32 0.70710677, %v8221_v41  ;;  %5281 = verf.f32 %v3651_v14  ;;  %v8235_v45 = vadd.f32 %v3383_v29, %v3191_v35 }
 0x3fd   : > { %v4019_v46 = vmul.f32 %v3891_v50, %v3507_v34  ;;  %v3387_v10 = vpop.f32.mrf.mxu0  ;;  %v5270_v36 = vpop.eup %5269  ;;  %v3207_v4 = vadd.f32 %v8138_v0, %v7888_v9  ;;  %v3518_v21 = vmul.f32 0.5, %v8185_v40  ;;  %v3209_v61 = vadd.f32 %v8147_v49, %v7883_v23 }
 0x3fe   : > { %v8237_v31 = vpop.f32.mrf.mxu1  ;;  %v4022_v15 = vmul.f32 %v3894_v7, %v3510_v28  ;;  %5283 = verf.f32 %v3654_v18  ;;  %v8239_v25 = vadd.f32 %v3387_v10, %v3195_v22  ;;  %v3895_v26 = vadd.f32 1.0, %v5270_v36 }
 0x3ff   : > { %v5272_v17 = vpop.eup %5271  ;;  %4147 = vst [vmem:[%s5804_s16 + $0x198] sm:$0xff] %v4019_v46  ;;  %v3655_v63 = vmul.f32 0.70710677, %v8235_v45  ;;  %v3389_v56 = vpop.f32.mrf.mxu0  ;;  %v3211_v0 = vadd.f32 %v8156_v27, %v7888_v9  ;;  %v3215_v49 = vadd.f32 %v8165_v42, %v7883_v23  ;;  %v3519_v18 = vmul.f32 0.5, %v8199_v13 }
 0x400   : > { %v8246_v58 = vpop.f32.mrf.mxu1  ;;  %4150 = vst [vmem:[%s5804_s16 + $0x1b0] sm:$0xff] %v4022_v15  ;;  %v3898_v55 = vadd.f32 1.0, %v5272_v17  ;;  %v3658_v53 = vmul.f32 0.70710677, %v8239_v25  ;;  %v4023_v52 = vmul.f32 %v3895_v26, %v3511_v12  ;;  %v8253_v59 = vadd.f32 %v3389_v56, %v3197_v19 }
 0x401   : > { %5285 = verf.f32 %v3655_v63  ;;  %v3391_v54 = vpop.f32.mrf.mxu0  ;;  %v5274_v51 = vpop.eup %5273  ;;  %v3217_v27 = vadd.f32 %v8174_v6, %v7888_v9  ;;  %v3522_v17 = vmul.f32 0.5, %v8203_v20  ;;  %v3219_v42 = vadd.f32 %v8183_v60, %v7883_v23 }
 0x402   : > { %v8255_v11 = vpop.f32.mrf.mxu1  ;;  %v4026_v38 = vmul.f32 %v3898_v55, %v3514_v2  ;;  %5287 = verf.f32 %v3658_v53  ;;  %v8259_v48 = vadd.f32 %v3391_v54, %v3199_v33  ;;  %4151 = vst [vmem:[%s5804_s16 + $0x1b8] sm:$0xff] %v4023_v52  ;;  %v3899_v24 = vadd.f32 1.0, %v5274_v51 }
 0x403   : > { %v5276_v8 = vpop.eup %5275  ;;  %v3659_v30 = vmul.f32 0.70710677, %v8253_v59  ;;  %v3393_v5 = vpop.f32.mrf.mxu0  ;;  %v8303_v6 = vadd.f32 %v8192_v47, %v7888_v9  ;;  %v8310_v60 = vadd.f32 %v8201_v37, %v7883_v23  ;;  %v3523_v53 = vmul.f32 0.5, %v8217_v32 }
 0x404   : > { %v8266_v57 = vpop.f32.mrf.mxu1  ;;  %4154 = vst [vmem:[%s5804_s16 + $0x1d0] sm:$0xff] %v4026_v38  ;;  %v3902_v35 = vadd.f32 1.0, %v5276_v8  ;;  %v3662_v34 = vmul.f32 0.70710677, %v8259_v48  ;;  %v4027_v44 = vmul.f32 %v3899_v24, %v3515_v16  ;;  %v8275_v50 = vadd.f32 %v3393_v5, %v3201_v3 }
 0x405   : > { %5289 = verf.f32 %v3659_v30  ;;  %v3397_v29 = vpop.f32.mrf.mxu0  ;;  %v8319_v47 = vadd.f32 %v8210_v62, %v7888_v9  ;;  %v3526_v38 = vmul.f32 0.5, %v8221_v41  ;;  %v8325_v32 = vadd.f32 %v8219_v1, %v7883_v23 }
 0x406   : > { %v8277_v14 = vpop.f32.mrf.mxu1  ;;  %v5278_v22 = vpop.eup %5277  ;;  %v4030_v40 = vmul.f32 %v3902_v35, %v3518_v21  ;;  %5291 = verf.f32 %v3662_v34  ;;  %v8281_v28 = vadd.f32 %v3397_v29, %v3205_v39  ;;  %4155 = vst [vmem:[%s5804_s16 + $0x1d8] sm:$0xff] %v4027_v44  ;;  %v3663_v10 = vmul.f32 0.70710677, %v8275_v50 }
 0x407   : > { %v5280_v7 = vpop.eup %5279  ;;  %v3903_v46 = vadd.f32 1.0, %v5278_v22  ;;  %v3399_v15 = vpop.f32.mrf.mxu0  ;;  %v8333_v41 = vadd.f32 %v8228_v43, %v7888_v9  ;;  %v3527_v1 = vmul.f32 0.5, %v8235_v45  ;;  %v8341_v34 = vadd.f32 %v8237_v31, %v7883_v23 }
 0x408   : > { %v8288_v36 = vpop.f32.mrf.mxu1  ;;  %4158 = vst [vmem:[%s5804_s16 + $0x1f0] sm:$0xff] %v4030_v40  ;;  %v3906_v19 = vadd.f32 1.0, %v5280_v7  ;;  %v3666_v12 = vmul.f32 0.70710677, %v8281_v28  ;;  %5293 = verf.f32 %v3663_v10  ;;  %v8297_v26 = vadd.f32 %v3399_v15, %v3207_v4 }
 0x409   : > { %v4031_v13 = vmul.f32 %v3903_v46, %v3519_v18  ;;  %v3401_v56 = vpop.f32.mrf.mxu0  ;;  %v5282_v33 = vpop.eup %5281  ;;  %v3530_v43 = vmul.f32 0.5, %v8239_v25  ;;  %v8355_v31 = vadd.f32 %v8255_v11, %v7883_v23  ;;  %v3531_v10 = vmul.f32 0.5, %v8253_v59 }
 0x40a   : > { %v8299_v63 = vpop.f32.mrf.mxu1  ;;  %v4034_v20 = vmul.f32 %v3906_v19, %v3522_v17  ;;  %5295 = verf.f32 %v3666_v12  ;;  %v8305_v2 = vadd.f32 %v3401_v56, %v3209_v61  ;;  %v3907_v52 = vadd.f32 1.0, %v5282_v33 }
 0x40b   : > { %v5284_v55 = vpop.eup %5283  ;;  %4159 = vst [vmem:[%s5804_s16 + $0x1f8] sm:$0xff] %v4031_v13  ;;  %v3667_v54 = vmul.f32 0.70710677, %v8297_v26  ;;  %v3403_v3 = vpop.f32.mrf.mxu0  ;;  %v3534_v11 = vmul.f32 0.5, %v8259_v48  ;;  %v3535_v59 = vmul.f32 0.5, %v8275_v50 }
 0x40c   : > { %v8314_v51 = vpop.f32.mrf.mxu1  ;;  %4162 = vst [vmem:[%s5804_s16 + $0x210] sm:$0xff] %v4034_v20  ;;  %v3910_v8 = vadd.f32 1.0, %v5284_v55  ;;  %v3670_v37 = vmul.f32 0.70710677, %v8305_v2  ;;  %v4035_v39 = vmul.f32 %v3907_v52, %v3523_v53  ;;  %v8327_v16 = vadd.f32 %v3403_v3, %v3211_v0 }
 0x40d   : > { %5297 = verf.f32 %v3667_v54  ;;  %v3407_v30 = vpop.f32.mrf.mxu0  ;;  %v8350_v0 = vadd.f32 %v8246_v58, %v7888_v9  ;;  %v3538_v20 = vmul.f32 0.5, %v8281_v28  ;;  %v3247_v28 = vadd.f32 %v8288_v36, %v7888_v9 }
 0x40e   : > { %v8329_v24 = vpop.f32.mrf.mxu1  ;;  %v5286_v62 = vpop.eup %5285  ;;  %v4038_v5 = vmul.f32 %v3910_v8, %v3526_v38  ;;  %5299 = verf.f32 %v3670_v37  ;;  %v8335_v4 = vadd.f32 %v3407_v30, %v3215_v49  ;;  %4163 = vst [vmem:[%s5804_s16 + $0x218] sm:$0xff] %v4035_v39  ;;  %v3671_v61 = vmul.f32 0.70710677, %v8327_v16 }
 0x40f   : > { %v5288_v21 = vpop.eup %5287  ;;  %v3911_v35 = vadd.f32 1.0, %v5286_v62  ;;  %v3409_v29 = vpop.f32.mrf.mxu0  ;;  %v3542_v62 = vmul.f32 0.5, %v8305_v2 }
 0x410   : > { %v8344_v44 = vpop.f32.mrf.mxu1  ;;  %4166 = vst [vmem:[%s5804_s16 + $0x230] sm:$0xff] %v4038_v5  ;;  %v3914_v22 = vadd.f32 1.0, %v5288_v21  ;;  %v3674_v45 = vmul.f32 0.70710677, %v8335_v4  ;;  %5301 = verf.f32 %v3671_v61  ;;  %v8357_v7 = vadd.f32 %v3409_v29, %v3217_v27 }
 0x411   : > { %v4039_v40 = vmul.f32 %v3911_v35, %v3527_v1  ;;  %v3411_v25 = vpop.f32.mrf.mxu0  ;;  %v8368_v27 = vadd.f32 %v8266_v57, %v7888_v9 }
 0x412   : > { %v8359_v49 = vpop.f32.mrf.mxu1  ;;  %v5290_v18 = vpop.eup %5289  ;;  %v4042_v46 = vmul.f32 %v3914_v22, %v3530_v43  ;;  %5303 = verf.f32 %v3674_v45  ;;  %v8362_v58 = vadd.f32 %v3411_v25, %v3219_v42  ;;  %v3675_v19 = vmul.f32 0.70710677, %v8357_v7 }
 0x413   : > { %v5292_v15 = vpop.eup %5291  ;;  %4167 = vst [vmem:[%s5804_s16 + $0x238] sm:$0xff] %v4039_v40  ;;  %v3915_v17 = vadd.f32 1.0, %v5290_v18  ;;  %v3413_v13 = vpop.f32.mrf.mxu0  ;;  %v3245_v42 = vadd.f32 %v8277_v14, %v7883_v23  ;;  %v3251_v45 = vadd.f32 %v8314_v51, %v7888_v9 }
 0x414   : > { %v8371_v12 = vpop.f32.mrf.mxu1  ;;  %4170 = vst [vmem:[%s5804_s16 + $0x250] sm:$0xff] %v4042_v46  ;;  %v3918_v56 = vadd.f32 1.0, %v5292_v15  ;;  %v3678_v33 = vmul.f32 0.70710677, %v8362_v58  ;;  %5305 = verf.f32 %v3675_v19  ;;  %v8380_v57 = vadd.f32 %v3413_v13, %v8303_v6 }
 0x415   : > { %v4043_v48 = vmul.f32 %v3915_v17, %v3531_v10  ;;  %v3417_v55 = vpop.f32.mrf.mxu0  ;;  %v5294_v52 = vpop.eup %5293  ;;  %v3249_v6 = vadd.f32 %v8299_v63, %v7883_v23  ;;  %v3543_v46 = vmul.f32 0.5, %v8327_v16 }
 0x416   : > { %v3437_v53 = vpop.f32.mrf.mxu1  ;;  %v4046_v54 = vmul.f32 %v3918_v56, %v3534_v11  ;;  %5307 = verf.f32 %v3678_v33  ;;  %v8383_v50 = vadd.f32 %v3417_v55, %v8310_v60  ;;  %v3919_v38 = vadd.f32 1.0, %v5294_v52 }
 0x417   : > { %v8385_v3 = vadd.f32 %v3437_v53, %v3245_v42  ;;  %v5296_v14 = vpop.eup %5295  ;;  %4171 = vst [vmem:[%s5804_s16 + $0x258] sm:$0xff] %v4043_v48  ;;  %v3679_v8 = vmul.f32 0.70710677, %v8380_v57  ;;  %v3419_v37 = vpop.f32.mrf.mxu0  ;;  %v3539_v60 = vmul.f32 0.5, %v8297_v26  ;;  %v3546_v33 = vmul.f32 0.5, %v8335_v4 }
 0x418   : > { %v3439_v39 = vpop.f32.mrf.mxu1  ;;  %4174 = vst [vmem:[%s5804_s16 + $0x270] sm:$0xff] %v4046_v54  ;;  %v3922_v30 = vadd.f32 1.0, %v5296_v14  ;;  %v3682_v5 = vmul.f32 0.70710677, %v8383_v50  ;;  %v4047_v21 = vmul.f32 %v3919_v38, %v3535_v59  ;;  %v8399_v1 = vadd.f32 %v3419_v37, %v8319_v47 }
 0x419   : > { %5309 = verf.f32 %v3679_v8  ;;  %v3698_v36 = vmul.f32 0.70710677, %v8385_v3  ;;  %v3421_v63 = vpop.f32.mrf.mxu0  ;;  %v8401_v43 = vadd.f32 %v3439_v39, %v3247_v28  ;;  %v3257_v52 = vadd.f32 %v8344_v44, %v7888_v9 }
 0x41a   : > { %v3441_v35 = vpop.f32.mrf.mxu1  ;;  %v5298_v61 = vpop.eup %5297  ;;  %v4050_v29 = vmul.f32 %v3922_v30, %v3538_v20  ;;  %5311 = verf.f32 %v3682_v5  ;;  %v8404_v26 = vadd.f32 %v3421_v63, %v8325_v32  ;;  %4175 = vst [vmem:[%s5804_s16 + $0x278] sm:$0xff] %v4047_v21  ;;  %v3683_v47 = vmul.f32 0.70710677, %v8399_v1 }
 0x41b   : > { %v5300_v2 = vpop.eup %5299  ;;  %v3923_v22 = vadd.f32 1.0, %v5298_v61  ;;  %5313 = verf.f32 %v3698_v36  ;;  %v3423_v40 = vpop.f32.mrf.mxu0  ;;  %v3255_v32 = vadd.f32 %v8329_v24, %v7883_v23  ;;  %v3699_v10 = vmul.f32 0.70710677, %v8401_v43 }
 0x41c   : > { %v3443_v25 = vpop.f32.mrf.mxu1  ;;  %4178 = vst [vmem:[%s5804_s16 + $0x290] sm:$0xff] %v4050_v29  ;;  %v3926_v18 = vadd.f32 1.0, %v5300_v2  ;;  %5315 = verf.f32 %v3683_v47  ;;  %v3686_v17 = vmul.f32 0.70710677, %v8404_v26  ;;  %v8416_v51 = vadd.f32 %v3441_v35, %v3249_v6 }
 0x41d   : > { %v4051_v15 = vmul.f32 %v3923_v22, %v3539_v60  ;;  %v3427_v11 = vpop.f32.mrf.mxu0  ;;  %v5302_v13 = vpop.eup %5301  ;;  %5317 = verf.f32 %v3699_v10  ;;  %v8419_v59 = vadd.f32 %v3423_v40, %v8333_v41  ;;  %v8421_v16 = vadd.f32 %v3443_v25, %v3251_v45 }
 0x41e   : > { %v3447_v19 = vpop.f32.mrf.mxu1  ;;  %v4054_v56 = vmul.f32 %v3926_v18, %v3542_v62  ;;  %v3927_v42 = vadd.f32 1.0, %v5302_v13  ;;  %5319 = verf.f32 %v3686_v17  ;;  %v3702_v48 = vmul.f32 0.70710677, %v8416_v51 }
 0x41f   : > { %v5304_v24 = vpop.eup %5303  ;;  %4179 = vst [vmem:[%s5804_s16 + $0x298] sm:$0xff] %v4051_v15  ;;  %v3429_v20 = vpop.f32.mrf.mxu0  ;;  %v3259_v41 = vadd.f32 %v8359_v49, %v7883_v23  ;;  %v3687_v54 = vmul.f32 0.70710677, %v8419_v59  ;;  %v3703_v4 = vmul.f32 0.70710677, %v8421_v16  ;;  %v8434_v38 = vadd.f32 %v3427_v11, %v8341_v34 }
 0x420   : > { %v3449_v55 = vpop.f32.mrf.mxu1  ;;  %4182 = vst [vmem:[%s5804_s16 + $0x2b0] sm:$0xff] %v4054_v56  ;;  %v3930_v53 = vadd.f32 1.0, %v5304_v24  ;;  %v4055_v14 = vmul.f32 %v3927_v42, %v3543_v46  ;;  %5321 = verf.f32 %v3702_v48  ;;  %v8436_v8 = vadd.f32 %v3447_v19, %v3255_v32 }
 0x421   : > { %v5306_v28 = vpop.eup %5305  ;;  %5323 = verf.f32 %v3687_v54  ;;  %v8439_v44 = vadd.f32 %v3429_v20, %v8350_v0  ;;  %v3547_v23 = vmul.f32 0.5, %v8357_v7  ;;  %v3690_v39 = vmul.f32 0.70710677, %v8434_v38  ;;  %v3431_v30 = vpop.f32.mrf.mxu0 }
 0x422   : > { %v4058_v6 = vmul.f32 %v3930_v53, %v3546_v33  ;;  %4183 = vst [vmem:[%s5804_s16 + $0x2b8] sm:$0xff] %v4055_v14  ;;  %v3931_v49 = vadd.f32 1.0, %v5306_v28  ;;  %5325 = verf.f32 %v3703_v4  ;;  %v3451_v60 = vpop.f32.mrf.mxu1  ;;  %v3550_v34 = vmul.f32 0.5, %v8362_v58 }
 0x423   : > { %v5308_v37 = vpop.eup %5307  ;;  %v3261_v5 = vadd.f32 %v8371_v12, %v7888_v9  ;;  %v3706_v0 = vmul.f32 0.70710677, %v8436_v8  ;;  %5327 = verf.f32 %v3690_v39  ;;  %v3691_v7 = vmul.f32 0.70710677, %v8439_v44  ;;  %v3433_v22 = vpop.f32.mrf.mxu0 }
 0x424   : > { %4186 = vst [vmem:[%s5804_s16 + $0x2d0] sm:$0xff] %v4058_v6  ;;  %v3934_v62 = vadd.f32 1.0, %v5308_v37  ;;  %v4059_v21 = vmul.f32 %v3931_v49, %v3547_v23  ;;  %v8450_v36 = vadd.f32 %v3449_v55, %v3257_v52  ;;  %v8453_v61 = vadd.f32 %v3431_v30, %v8355_v31  ;;  %v3453_v45 = vpop.f32.mrf.mxu1 }
 0x425   : > { %5329 = verf.f32 %v3706_v0  ;;  %v8455_v58 = vadd.f32 %v3451_v60, %v3259_v41  ;;  %v3551_v9 = vmul.f32 0.5, %v8380_v57  ;;  %v3554_v40 = vmul.f32 0.5, %v8383_v50 }
 0x426   : > { %v5310_v63 = vpop.eup %5309  ;;  %v4062_v35 = vmul.f32 %v3934_v62, %v3550_v34  ;;  %4187 = vst [vmem:[%s5804_s16 + $0x2d8] sm:$0xff] %v4059_v21  ;;  %5331 = verf.f32 %v3691_v7  ;;  %v3707_v2 = vmul.f32 0.70710677, %v8450_v36  ;;  %v3570_v31 = vmul.f32 0.5, %v8385_v3 }
 0x427   : > { %v5312_v29 = vpop.eup %5311  ;;  %v3935_v12 = vadd.f32 1.0, %v5310_v63  ;;  %v3694_v18 = vmul.f32 0.70710677, %v8453_v61  ;;  %v3710_v57 = vmul.f32 0.70710677, %v8455_v58  ;;  %v8466_v17 = vadd.f32 %v3433_v22, %v8368_v27 }
 0x428   : > { %v5314_v47 = vpop.eup %5313  ;;  %4190 = vst [vmem:[%s5804_s16 + $0x2f0] sm:$0xff] %v4062_v35  ;;  %v3938_v25 = vadd.f32 1.0, %v5312_v29  ;;  %5333 = verf.f32 %v3707_v2  ;;  %v8468_v11 = vadd.f32 %v3453_v45, %v3261_v5  ;;  %v3555_v19 = vmul.f32 0.5, %v8399_v1 }
 0x429   : > { %v4063_v46 = vmul.f32 %v3935_v12, %v3551_v9  ;;  %v3954_v32 = vadd.f32 1.0, %v5314_v47  ;;  %v5316_v10 = vpop.eup %5315  ;;  %5335 = verf.f32 %v3694_v18  ;;  %v3571_v24 = vmul.f32 0.5, %v8401_v43 }
 0x42a   : > { %v4066_v15 = vmul.f32 %v3938_v25, %v3554_v40  ;;  %v5318_v50 = vpop.eup %5317  ;;  %v3939_v13 = vadd.f32 1.0, %v5316_v10  ;;  %5337 = verf.f32 %v3710_v57  ;;  %v3695_v33 = vmul.f32 0.70710677, %v8466_v17 }
 0x42b   : > { %4191 = vst [vmem:[%s5804_s16 + $0x2f8] sm:$0xff] %v4063_v46  ;;  %v4082_v3 = vmul.f32 %v3954_v32, %v3570_v31  ;;  %v5320_v56 = vpop.eup %5319  ;;  %v3955_v42 = vadd.f32 1.0, %v5318_v50  ;;  %v3558_v48 = vmul.f32 0.5, %v8404_v26  ;;  %v3711_v55 = vmul.f32 0.70710677, %v8468_v11 }
 0x42c   : > { %4194 = vst [vmem:[%s5804_s16 + $0x310] sm:$0xff] %v4066_v15  ;;  %v4067_v27 = vmul.f32 %v3939_v13, %v3555_v19  ;;  %v3942_v20 = vadd.f32 1.0, %v5320_v56  ;;  %5339 = verf.f32 %v3695_v33  ;;  %v3574_v43 = vmul.f32 0.5, %v8416_v51 }
 0x42d   : > { %4210 = vst [vmem:[%s5804_s16 + $0x390] sm:$0xff] %v4082_v3  ;;  %v5322_v1 = vpop.eup %5321  ;;  %v4083_v53 = vmul.f32 %v3955_v42, %v3571_v24  ;;  %5341 = verf.f32 %v3711_v55  ;;  %v3559_v26 = vmul.f32 0.5, %v8419_v59  ;;  %v3575_v6 = vmul.f32 0.5, %v8421_v16 }
 0x42e   : > { %v5324_v52 = vpop.eup %5323  ;;  %4195 = vst [vmem:[%s5804_s16 + $0x318] sm:$0xff] %v4067_v27  ;;  %v4070_v41 = vmul.f32 %v3942_v20, %v3558_v48  ;;  %v3958_v54 = vadd.f32 1.0, %v5322_v1  ;;  %v3562_v30 = vmul.f32 0.5, %v8434_v38  ;;  %v3578_v59 = vmul.f32 0.5, %v8436_v8 }
 0x42f   : > { %v5326_v14 = vpop.eup %5325  ;;  %4211 = vst [vmem:[%s5804_s16 + $0x398] sm:$0xff] %v4083_v53  ;;  %v3943_v4 = vadd.f32 1.0, %v5324_v52  ;;  %v3563_v16 = vmul.f32 0.5, %v8439_v44  ;;  %v3579_v35 = vmul.f32 0.5, %v8450_v36  ;;  %v3566_v9 = vmul.f32 0.5, %v8453_v61 }
 0x430   : > { %4198 = vst [vmem:[%s5804_s16 + $0x330] sm:$0xff] %v4070_v41  ;;  %v4086_v28 = vmul.f32 %v3958_v54, %v3574_v43  ;;  %v3959_v37 = vadd.f32 1.0, %v5326_v14  ;;  %v5328_v23 = vpop.eup %5327  ;;  %v3582_v2 = vmul.f32 0.5, %v8455_v58  ;;  %v3567_v61 = vmul.f32 0.5, %v8466_v17 }
 0x431   : > { %v4071_v49 = vmul.f32 %v3943_v4, %v3559_v26  ;;  %v3946_v60 = vadd.f32 1.0, %v5328_v23  ;;  %v3583_v31 = vmul.f32 0.5, %v8468_v11 }
 0x432   : > { %v5330_v39 = vpop.eup %5329  ;;  %4214 = vst [vmem:[%s5804_s16 + $0x3b0] sm:$0xff] %v4086_v28  ;;  %v4087_v51 = vmul.f32 %v3959_v37, %v3575_v6 }
 0x433   : > { %v5332_v34 = vpop.eup %5331  ;;  %4199 = vst [vmem:[%s5804_s16 + $0x338] sm:$0xff] %v4071_v49  ;;  %v3962_v62 = vadd.f32 1.0, %v5330_v39  ;;  %v4074_v5 = vmul.f32 %v3946_v60, %v3562_v30 }
 0x434   : > { %4215 = vst [vmem:[%s5804_s16 + $0x3b8] sm:$0xff] %v4087_v51  ;;  %v3947_v0 = vadd.f32 1.0, %v5332_v34 }
 0x435   : > { %v5334_v21 = vpop.eup %5333  ;;  %v4090_v7 = vmul.f32 %v3962_v62, %v3578_v59  ;;  %4202 = vst [vmem:[%s5804_s16 + $0x350] sm:$0xff] %v4074_v5 }
 0x436   : > { %v5336_v63 = vpop.eup %5335  ;;  %v4075_v38 = vmul.f32 %v3947_v0, %v3563_v16  ;;  %v3963_v29 = vadd.f32 1.0, %v5334_v21 }
 0x437   : > { %v5338_v8 = vpop.eup %5337  ;;  %4218 = vst [vmem:[%s5804_s16 + $0x3d0] sm:$0xff] %v4090_v7  ;;  %v3950_v12 = vadd.f32 1.0, %v5336_v63 }
 0x438   : > { %4203 = vst [vmem:[%s5804_s16 + $0x358] sm:$0xff] %v4075_v38  ;;  %v4091_v44 = vmul.f32 %v3963_v29, %v3579_v35  ;;  %v3966_v22 = vadd.f32 1.0, %v5338_v8 }
 0x439   : > { %v4078_v45 = vmul.f32 %v3950_v12, %v3566_v9  ;;  %v5340_v47 = vpop.eup %5339 }
 0x43a   : > { %4219 = vst [vmem:[%s5804_s16 + $0x3d8] sm:$0xff] %v4091_v44  ;;  %v4094_v36 = vmul.f32 %v3966_v22, %v3582_v2  ;;  %v5342_v40 = vpop.eup %5341  ;;  %v3951_v25 = vadd.f32 1.0, %v5340_v47 }
 0x43b   : > { %4206 = vst [vmem:[%s5804_s16 + $0x370] sm:$0xff] %v4078_v45  ;;  %v3967_v58 = vadd.f32 1.0, %v5342_v40 }
 0x43c   : > { %4222 = vst [vmem:[%s5804_s16 + $0x3f0] sm:$0xff] %v4094_v36  ;;  %v4079_v18 = vmul.f32 %v3951_v25, %v3567_v61 }
 0x43d   : > { %v4095_v46 = vmul.f32 %v3967_v58, %v3583_v31 }
 0x43e   : > { %4207 = vst [vmem:[%s5804_s16 + $0x378] sm:$0xff] %v4079_v18 }
 0x43f   : > { %4223 = vst [vmem:[%s5804_s16 + $0x3f8] sm:$0xff] %v4095_v46 }
 0x440   : > { %5491 = shalt.err (!%p5488_p4)
}
 0x441   : > { %s5492_s9 = scalar_lea.hbm %s8506_s21, 16384  ;;  %s5496_s1 = scalar_lea.hbm %s8562_s5, 49152 }
 0x442   : > { %p5493_p2 = scmp.ne.s32.totalorder %s8506_s21, %s5492_s9  ;;  %p5497_p5 = scmp.lt.s32.totalorder %s8506_s21, %s8562_s5 }
 0x443   : > { %p5498_p0 = scmp.lt.s32.totalorder %s5496_s1, %s5492_s9 }
 0x444   : > { %p5494_p12 = pnand %p5493_p2, %p8913_p7 }
 0x445   : > { %p5499_p3 = por %p5498_p0, %p5497_p5 }
 0x446   : > { %p5495_p13 = pneg %p5494_p12 }
 0x448   : > { %p5500_p6 = pnand %p5499_p3, %p5495_p13 }
 0x44a   : > { %5503 = shalt.err (!%p5500_p6)
}
 0x44b   : > { %s5588_s12 = smov 512   ;;  %s5589_s2 = smov 1536  }
 0x44c   : > { %s5590_s6 = smov 32  }
 0x44d   : > { %4724 = dma.vmem_to_hbm [thread:$0]  (%p8913_p7), %s8508_s28, 16384, %s8506_s21, %s4225_s14, %s5588_s12, %s5589_s2, %s5590_s6  }
 0x44e PF: > { %s8914_s11 = sld [smem:[#allocation19_spill]]  ;;  %p4754_p1 = scmp.ge.s32.totalorder %s5574_s23, 2 }
 0x44f   : > { %s4256_s27 = sand.u32 1, %s5554_s18  }
 0x450   : > { %s4257_s16 = scalar_lea.sflag [#allocation5], %s4256_s27 }
 0x454   : > { %p8915_p8 = scmp.ne.s32.totalorder %s8914_s11, 0 }
 0x456   : > { %p4744_p9 = pnand %p4754_p1, %p8915_p8 }
 0x458   : > { %p4745_p10 = pneg %p4744_p9 }
 0x45a   : > { %5549 = dma.done.wait (%p4745_p10), %s4257_s16, 16384  }
 0x45b   : > { %5551 = vsyncadd (%p4745_p10), %s4257_s16, 4294950912  ;;  %s23_s23 = sadd.s32 1, %s5574_s23   ;;  %s8916_s29 = sld [smem:[#allocation21_spill]] }
 0x45c   : > { %p20_p11 = scmp.ge.s32.totalorder %s23_s23, 5   ;;  %s8917_s3 = sld [smem:[#allocation20_spill]] }
 0x45d   : > { %s8918_s18 = smov %s5558_s19  ;;  %s8919_s19 = smov %s5562_s20 }
 0x45e   : > { %s8921_s21 = smov %s5570_s22  ;;  %22 = sbr.rel (!%p20_p11) target bundleno = 13 (0xd), region = 116 }
 0x461   : > { %s8920_s20 = smov %s8916_s29 }
 0x462   : > { %s8922_s22 = smov %s8917_s3 }
 0x463   :  { %4262 = vsyncpa [#allocation4], 1 }
 0x464   :  { %4264 = vsyncpa [#allocation4 + $0x1], 1 }
 0x465   :  { %4265 = vsyncpa [#allocation7], 1 }
 0x466   :  { %4267 = vsyncpa [#allocation7 + $0x1], 1 }
 0x467   :  { %4268 = vsyncpa [#allocation10], 1 }
 0x468   :  { %4269 = vsyncpa [#allocation5], 1 }
 0x469   :  { %4271 = vsyncpa [#allocation5 + $0x1], 1 }

</bundles_post_ra>
